<compile_context>
chip_gen: v7x
topology: tpu7x:2x2x1
jax: 0.10.0
libtpu: 0.0.40
codegen_flags: <defaults>
</compile_context>

<pallas_src>
import functools

import jax
import jax.numpy as jnp
from jax import lax
from jax.experimental import pallas as pl
from jax.experimental.pallas import tpu as pltpu

# ---- "cfg" constants (small, deterministic) -------------------------------
DIM_IN = 4            # input channel dim of ROI features
CONV_HEAD_DIM = 32    # cfg.FAST_RCNN.CONV_HEAD_DIM
NUM_STACKED_CONVS = 2 # cfg.FAST_RCNN.NUM_STACKED_CONVS
MLP_HEAD_DIM = 128    # cfg.FAST_RCNN.MLP_HEAD_DIM
ROI_SIZE = 8          # cfg.FAST_RCNN.ROI_XFORM_RESOLUTION
NUM_GROUPS = 8        # net_utils.get_group_gn(CONV_HEAD_DIM)
GN_EPS = 1e-5         # cfg.GROUP_NORM.EPSILON
N_ROIS = 2            # number of ROIs (batch for the head)


# ---------------------------------------------------------------------------
# In-kernel GroupNorm + ReLU on lane-merged activations.
# acc2d: (TB*R, R*C) f32, lanes ordered (w, c).  Returns (TB, R, R*C).
# ---------------------------------------------------------------------------
def _gn_relu_lane(acc2d, gamma_wc, beta_wc, sg, bg, *, TB, R, RC, count, eps):
    x3 = acc2d.reshape(TB, R, RC)                 # safe: last dim unchanged
    rsum = jnp.sum(x3, axis=1)                    # (TB, RC) sum over h
    rsq = jnp.sum(x3 * x3, axis=1)                # (TB, RC)
    inv_count = 1.0 / count
    # per-(roi, group) stats via tiny one-hot matmuls (lanes -> groups)
    g_mean = jnp.dot(rsum, sg, preferred_element_type=jnp.float32) * inv_count
    g_msq = jnp.dot(rsq, sg, preferred_element_type=jnp.float32) * inv_count
    g_var = g_msq - g_mean * g_mean
    mean_wc = jnp.dot(g_mean, bg, preferred_element_type=jnp.float32)  # (TB, RC)
    var_wc = jnp.dot(g_var, bg, preferred_element_type=jnp.float32)    # (TB, RC)
    scale = lax.rsqrt(var_wc + eps) * gamma_wc                         # (TB, RC)
    shift = beta_wc - mean_wc * scale                                  # (TB, RC)
    y = x3 * scale[:, None, :] + shift[:, None, :]
    return jnp.maximum(y, 0.0)                    # (TB, R, RC)


# ---------------------------------------------------------------------------
# Fused head kernel: conv1+GN+ReLU -> conv2+GN+ReLU -> flatten -> FC+ReLU
# ---------------------------------------------------------------------------
def head_kernel(x_ref, w1_ref, g1_ref, b1_ref, w2_ref, g2_ref, b2_ref,
                sg_ref, bg_ref, fcw_ref, fcb_ref, o_ref,
                xpad1_ref, xpad2_ref, *, TB, R, CIN, C, G, eps):
    RC = R * C
    sg = sg_ref[...]                        # (RC, G) group one-hot (sum)
    bg = bg_ref[...]                        # (G, RC) group one-hot (broadcast)
    count = float(R * R * (C // G))         # GN element count per (roi, group)

    # ---------------- conv1: 3x3 / pad 1 / no bias --------------------------
    # in-kernel zero padding; activations lane-merged as (b, h, w*CIN + ci)
    xpad1_ref[...] = jnp.zeros_like(xpad1_ref)
    xpad1_ref[:, 1:R + 1, CIN:(R + 1) * CIN] = x_ref[...]
    xp1 = xpad1_ref[...]                    # (TB, R+2, (R+2)*CIN)
    k1 = R * CIN
    acc1 = jnp.zeros((TB * R, RC), jnp.float32)
    # Cin=4 is tiny: 9 full-lane-width tap matmuls against kron(I_R, W_tap)
    # blocks (avoids an unaligned lane concat; MXU cost is negligible).
    for dy in range(3):
        for dx in range(3):
            row0 = (dy * 3 + dx) * k1
            patch = xp1[:, dy:dy + R, dx * CIN:(dx + R) * CIN]
            acc1 = acc1 + jnp.dot(patch.reshape(TB * R, k1),
                                  w1_ref[row0:row0 + k1, :],
                                  preferred_element_type=jnp.float32)
    y1 = _gn_relu_lane(acc1, g1_ref[...], b1_ref[...], sg, bg,
                       TB=TB, R=R, RC=RC, count=count, eps=eps)  # (TB, R, RC)

    # ---------------- conv2: single im2col matmul ---------------------------
    xpad2_ref[...] = jnp.zeros_like(xpad2_ref)
    xpad2_ref[:, 1:R + 1, C:(R + 1) * C] = y1
    xp2 = xpad2_ref[...]                    # (TB, R+2, (R+2)*C)
    # patch pieces are (TB, R, R*C=256) -> concat offsets are 128-aligned
    patches = jnp.concatenate(
        [xp2[:, dy:dy + R, dx * C:(dx + R) * C]
         for dy in range(3) for dx in range(3)], axis=-1)        # (TB, R, 9*RC)
    acc2 = jnp.dot(patches.reshape(TB * R, 9 * RC), w2_ref[...],
                   preferred_element_type=jnp.float32)           # (TB*R, RC)
    y2 = _gn_relu_lane(acc2, g2_ref[...], b2_ref[...], sg, bg,
                       TB=TB, R=R, RC=RC, count=count, eps=eps)  # (TB, R, RC)

    # ---- flatten (h, w, c order; NCHW permutation folded into fcw) + FC ----
    flat = jnp.concatenate([y2[:, h, :] for h in range(R)], axis=-1)  # (TB, R*RC)
    out = jnp.dot(flat, fcw_ref[...], preferred_element_type=jnp.float32)
    o_ref[...] = jnp.maximum(out + fcb_ref[...], 0.0)            # (TB, MLP)


# ---------------------------------------------------------------------------
# Parameter init (PyTorch layouts: conv OIHW, fc (out, in)) + one-time prep.
# ---------------------------------------------------------------------------
def init_params(key):
    params = {"convs": []}
    dim_in = DIM_IN
    for _ in range(NUM_STACKED_CONVS):
        key, wk = jax.random.split(key)
        std = (2.0 / (CONV_HEAD_DIM * 9)) ** 0.5        # MSRAFill ~ He (fan_out)
        w = jax.random.normal(wk, (CONV_HEAD_DIM, dim_in, 3, 3),
                              dtype=jnp.float32) * std  # (Cout, Cin, 3, 3)
        gamma = jnp.ones((CONV_HEAD_DIM,), jnp.float32)
        beta = jnp.zeros((CONV_HEAD_DIM,), jnp.float32)
        params["convs"].append((w, gamma, beta))
        dim_in = CONV_HEAD_DIM
    fc_in = dim_in * ROI_SIZE * ROI_SIZE
    key, wk = jax.random.split(key)
    std = (2.0 / (fc_in + MLP_HEAD_DIM)) ** 0.5         # XavierFill
    params["fc_w"] = jax.random.normal(wk, (MLP_HEAD_DIM, fc_in),
                                       dtype=jnp.float32) * std
    params["fc_b"] = jnp.zeros((MLP_HEAD_DIM,), jnp.float32)
    return params


def _conv_lane_weights(w_oihw, R):
    """(Cout, Cin, 3, 3) -> stacked kron(I_R, W_tap) blocks: (9*R*Cin, R*Cout).

    Rows ordered (dy, dx, w', cin), cols ordered (w, cout) - matches the
    lane-merged (w, c) activation layout and the in-kernel tap/concat order.
    """
    cout, cin, kh, kw = w_oihw.shape
    eye = jnp.eye(R, dtype=w_oihw.dtype)
    blocks = []
    for dy in range(kh):
        for dx in range(kw):
            tap = w_oihw[:, :, dy, dx].T                # (Cin, Cout)
            blocks.append(jnp.kron(eye, tap))           # (R*Cin, R*Cout)
    return jnp.concatenate(blocks, axis=0)


def prepare_params(params, *, R=ROI_SIZE, groups=NUM_GROUPS):
    """One-time conversion of PyTorch-layout params into kernel operands."""
    C = params["convs"][0][0].shape[0]                  # CONV_HEAD_DIM
    cpg = C // groups
    prepped = {"convs": []}
    for (w, gamma, beta) in params["convs"]:
        prepped["convs"].append((
            _conv_lane_weights(w, R),                   # (9*R*Cin, R*C)
            jnp.tile(gamma, R).reshape(1, R * C),       # gamma on (w, c) lanes
            jnp.tile(beta, R).reshape(1, R * C),
        ))
    # one-hot group sum / broadcast matrices over the (w, c) lane axis
    lane_group = jnp.tile(jnp.arange(C) // cpg, R)                       # (R*C,)
    sg = (lane_group[:, None] == jnp.arange(groups)[None, :]).astype(jnp.float32)
    prepped["sg"] = sg                                                   # (R*C, G)
    prepped["bg"] = sg.T                                                 # (G, R*C)
    # FC: fold PyTorch's NCHW flatten order (c, h, w) into rows ordered
    # (h, w, c) and pre-transpose to (Din, Dout) - done once, not per call.
    mlp, din = params["fc_w"].shape
    fcw = params["fc_w"].reshape(mlp, C, R, R)           # (m, c, h, w)
    fcw = jnp.transpose(fcw, (2, 3, 1, 0)).reshape(R * R * C, mlp)
    prepped["fc_w"] = fcw
    prepped["fc_b"] = params["fc_b"].reshape(1, mlp)
    return prepped


# ---------------------------------------------------------------------------
# Full head forward. Takes ROI-pooled features in NCHW (PyTorch convention).
# ---------------------------------------------------------------------------
@jax.jit
def roi_xconv1fc_gn_head_forward(prepped, x_nchw):
    assert len(prepped["convs"]) == 2, "fused kernel is built for the 2-conv cfg"
    N, Cin, R, _ = x_nchw.shape
    (w1, g1, b1), (w2, g2, b2) = prepped["convs"]
    sg, bg = prepped["sg"], prepped["bg"]
    fcw, fcb = prepped["fc_w"], prepped["fc_b"]
    RC = g1.shape[1]
    C = RC // R
    G = sg.shape[1]
    MLP = fcw.shape[1]

    # only per-forward glue: channels lane-minor, lane-merged (N, R, R*Cin)
    x_lane = jnp.transpose(x_nchw, (0, 2, 3, 1)).reshape(N, R, R * Cin)

    TB = N if N <= 8 else 8          # ROI tile per grid step ("parallel" axis)
    assert N % TB == 0

    kern = functools.partial(head_kernel, TB=TB, R=R, CIN=Cin, C=C, G=G,
                             eps=GN_EPS)
    return pl.pallas_call(
        kern,
        out_shape=jax.ShapeDtypeStruct((N, MLP), jnp.float32),
        grid_spec=pltpu.PrefetchScalarGridSpec(
            num_scalar_prefetch=0,
            grid=(N // TB,),
            in_specs=[
                pl.BlockSpec((TB, R, R * Cin), lambda n: (n, 0, 0)),
                pl.BlockSpec(w1.shape, lambda n: (0, 0)),
                pl.BlockSpec((1, RC), lambda n: (0, 0)),
                pl.BlockSpec((1, RC), lambda n: (0, 0)),
                pl.BlockSpec(w2.shape, lambda n: (0, 0)),
                pl.BlockSpec((1, RC), lambda n: (0, 0)),
                pl.BlockSpec((1, RC), lambda n: (0, 0)),
                pl.BlockSpec(sg.shape, lambda n: (0, 0)),
                pl.BlockSpec(bg.shape, lambda n: (0, 0)),
                pl.BlockSpec(fcw.shape, lambda n: (0, 0)),
                pl.BlockSpec((1, MLP), lambda n: (0, 0)),
            ],
            out_specs=pl.BlockSpec((TB, MLP), lambda n: (n, 0)),
            scratch_shapes=[
                pltpu.VMEM((TB, R + 2, (R + 2) * Cin), jnp.float32),  # pad buf 1
                pltpu.VMEM((TB, R + 2, (R + 2) * C), jnp.float32),    # pad buf 2
            ],
        ),
        compiler_params=pltpu.CompilerParams(
            dimension_semantics=("parallel",)),
    )(x_lane, w1, g1, b1, w2, g2, b2, sg, bg, fcw, fcb)


if __name__ == "__main__":
    key = jax.random.PRNGKey(0)
    pkey, xkey = jax.random.split(key)
    params = init_params(pkey)
    prepped = prepare_params(params)     # one-time weight prep (folded at init)
    # ROI-pooled features, NCHW as PyTorch would see post roi_xform
    x = jax.random.normal(xkey, (N_ROIS, DIM_IN, ROI_SIZE, ROI_SIZE),
                          dtype=jnp.float32)
    out = roi_xconv1fc_gn_head_forward(prepped, x)
    jax.block_until_ready(out)
    assert out.shape == (N_ROIS, MLP_HEAD_DIM)
    assert bool(jnp.all(jnp.isfinite(out)))
    print("KERNEL_OK")
</pallas_src>

<mosaic_0001>
module attributes {stable_mosaic.version = 11 : i64} {
  func.func @head_kernel(%arg0: i32, %arg1: memref<2x8x32xf32, #tpu.memory_space<vmem>>, %arg2: memref<288x256xf32, #tpu.memory_space<vmem>>, %arg3: memref<1x256xf32, #tpu.memory_space<vmem>>, %arg4: memref<1x256xf32, #tpu.memory_space<vmem>>, %arg5: memref<2304x256xf32, #tpu.memory_space<vmem>>, %arg6: memref<1x256xf32, #tpu.memory_space<vmem>>, %arg7: memref<1x256xf32, #tpu.memory_space<vmem>>, %arg8: memref<256x8xf32, #tpu.memory_space<vmem>>, %arg9: memref<8x256xf32, #tpu.memory_space<vmem>>, %arg10: memref<2048x128xf32, #tpu.memory_space<vmem>>, %arg11: memref<1x128xf32, #tpu.memory_space<vmem>>, %arg12: memref<2x128xf32, #tpu.memory_space<vmem>>, %arg13: memref<2x10x40xf32, #tpu.memory_space<vmem>>, %arg14: memref<2x10x320xf32, #tpu.memory_space<vmem>>) attributes {dimension_semantics = [#tpu.dimension_semantics<parallel>], iteration_bounds = array<i64: 1>, scalar_prefetch = 0 : i64, scratch_operands = 2 : i64, tpu.core_type = #tpu.core_type<tc>, window_params = [{transform_indices = @transform_0, window_bounds = array<i64: 2, 8, 32>}, {pipeline_mode = #tpu.pipeline_mode<synchronous>, transform_indices = @transform_1, window_bounds = array<i64: 288, 256>}, {pipeline_mode = #tpu.pipeline_mode<synchronous>, transform_indices = @transform_2, window_bounds = array<i64: 1, 256>}, {pipeline_mode = #tpu.pipeline_mode<synchronous>, transform_indices = @transform_3, window_bounds = array<i64: 1, 256>}, {pipeline_mode = #tpu.pipeline_mode<synchronous>, transform_indices = @transform_4, window_bounds = array<i64: 2304, 256>}, {pipeline_mode = #tpu.pipeline_mode<synchronous>, transform_indices = @transform_5, window_bounds = array<i64: 1, 256>}, {pipeline_mode = #tpu.pipeline_mode<synchronous>, transform_indices = @transform_6, window_bounds = array<i64: 1, 256>}, {pipeline_mode = #tpu.pipeline_mode<synchronous>, transform_indices = @transform_7, window_bounds = array<i64: 256, 8>}, {pipeline_mode = #tpu.pipeline_mode<synchronous>, transform_indices = @transform_8, window_bounds = array<i64: 8, 256>}, {pipeline_mode = #tpu.pipeline_mode<synchronous>, transform_indices = @transform_9, window_bounds = array<i64: 2048, 128>}, {pipeline_mode = #tpu.pipeline_mode<synchronous>, transform_indices = @transform_10, window_bounds = array<i64: 1, 128>}, {transform_indices = @transform_11, window_bounds = array<i64: 2, 128>}]} {
    %c0 = arith.constant 0 : index
    %c0_0 = arith.constant 0 : index
    %0 = vector.load %arg8[%c0, %c0_0] : memref<256x8xf32, #tpu.memory_space<vmem>>, vector<256x8xf32>
    %c0_1 = arith.constant 0 : index
    %c0_2 = arith.constant 0 : index
    %1 = vector.load %arg9[%c0_1, %c0_2] : memref<8x256xf32, #tpu.memory_space<vmem>>, vector<8x256xf32>
    %cst = arith.constant 0.000000e+00 : f32
    %2 = vector.broadcast %cst : f32 to vector<2x10x40xf32>
    %c0_3 = arith.constant 0 : index
    %c0_4 = arith.constant 0 : index
    %c0_5 = arith.constant 0 : index
    %3 = vector.load %arg13[%c0_3, %c0_4, %c0_5] : memref<2x10x40xf32, #tpu.memory_space<vmem>>, vector<2x10x40xf32>
    tpu.vector_store %arg13[%c0_3, %c0_4, %c0_5], %2 {strides = array<i32>} : memref<2x10x40xf32, #tpu.memory_space<vmem>>, vector<2x10x40xf32>,
    %c0_6 = arith.constant 0 : index
    %c0_7 = arith.constant 0 : index
    %c0_8 = arith.constant 0 : index
    %4 = vector.load %arg1[%c0_6, %c0_7, %c0_8] : memref<2x8x32xf32, #tpu.memory_space<vmem>>, vector<2x8x32xf32>
    %c0_9 = arith.constant 0 : index
    %c1 = arith.constant 1 : index
    %c4 = arith.constant 4 : index
    %5 = vector.load %arg13[%c0_9, %c1, %c4] : memref<2x10x40xf32, #tpu.memory_space<vmem>>, vector<2x8x32xf32>
    tpu.vector_store %arg13[%c0_9, %c1, %c4], %4 {strides = array<i32>} : memref<2x10x40xf32, #tpu.memory_space<vmem>>, vector<2x8x32xf32>,
    %c0_10 = arith.constant 0 : index
    %c0_11 = arith.constant 0 : index
    %c0_12 = arith.constant 0 : index
    %6 = vector.load %arg13[%c0_10, %c0_11, %c0_12] : memref<2x10x40xf32, #tpu.memory_space<vmem>>, vector<2x10x40xf32>
    %cst_13 = arith.constant 0.000000e+00 : f32
    %7 = vector.broadcast %cst_13 : f32 to vector<16x256xf32>
    %8 = vector.extract_strided_slice %6 {offsets = [0, 0, 0], sizes = [2, 8, 32], strides = [1, 1, 1]} : vector<2x10x40xf32> to vector<2x8x32xf32>
    %9 = vector.shape_cast %8 : vector<2x8x32xf32> to vector<16x32xf32>
    %c0_14 = arith.constant 0 : index
    %c0_15 = arith.constant 0 : index
    %10 = vector.load %arg2[%c0_14, %c0_15] : memref<288x256xf32, #tpu.memory_space<vmem>>, vector<32x256xf32>
    %cst_16 = arith.constant dense<0.000000e+00> : vector<16x256xf32>
    %11 = tpu.matmul %9, %10, %cst_16 {dimension_numbers = #tpu.dot_dimension_numbers<[1], [0], [0], [1], [0, 0, 1, 1], [], []>} : vector<16x32xf32>, vector<32x256xf32>, vector<16x256xf32> -> vector<16x256xf32>
    %12 = arith.addf %7, %11 : vector<16x256xf32>
    %13 = vector.extract_strided_slice %6 {offsets = [0, 0, 4], sizes = [2, 8, 32], strides = [1, 1, 1]} : vector<2x10x40xf32> to vector<2x8x32xf32>
    %14 = vector.shape_cast %13 : vector<2x8x32xf32> to vector<16x32xf32>
    %c32 = arith.constant 32 : index
    %c0_17 = arith.constant 0 : index
    %15 = vector.load %arg2[%c32, %c0_17] : memref<288x256xf32, #tpu.memory_space<vmem>>, vector<32x256xf32>
    %cst_18 = arith.constant dense<0.000000e+00> : vector<16x256xf32>
    %16 = tpu.matmul %14, %15, %cst_18 {dimension_numbers = #tpu.dot_dimension_numbers<[1], [0], [0], [1], [0, 0, 1, 1], [], []>} : vector<16x32xf32>, vector<32x256xf32>, vector<16x256xf32> -> vector<16x256xf32>
    %17 = arith.addf %12, %16 : vector<16x256xf32>
    %18 = vector.extract_strided_slice %6 {offsets = [0, 0, 8], sizes = [2, 8, 32], strides = [1, 1, 1]} : vector<2x10x40xf32> to vector<2x8x32xf32>
    %19 = vector.shape_cast %18 : vector<2x8x32xf32> to vector<16x32xf32>
    %c64 = arith.constant 64 : index
    %c0_19 = arith.constant 0 : index
    %20 = vector.load %arg2[%c64, %c0_19] : memref<288x256xf32, #tpu.memory_space<vmem>>, vector<32x256xf32>
    %cst_20 = arith.constant dense<0.000000e+00> : vector<16x256xf32>
    %21 = tpu.matmul %19, %20, %cst_20 {dimension_numbers = #tpu.dot_dimension_numbers<[1], [0], [0], [1], [0, 0, 1, 1], [], []>} : vector<16x32xf32>, vector<32x256xf32>, vector<16x256xf32> -> vector<16x256xf32>
    %22 = arith.addf %17, %21 : vector<16x256xf32>
    %23 = vector.extract_strided_slice %6 {offsets = [0, 1, 0], sizes = [2, 8, 32], strides = [1, 1, 1]} : vector<2x10x40xf32> to vector<2x8x32xf32>
    %24 = vector.shape_cast %23 : vector<2x8x32xf32> to vector<16x32xf32>
    %c96 = arith.constant 96 : index
    %c0_21 = arith.constant 0 : index
    %25 = vector.load %arg2[%c96, %c0_21] : memref<288x256xf32, #tpu.memory_space<vmem>>, vector<32x256xf32>
    %cst_22 = arith.constant dense<0.000000e+00> : vector<16x256xf32>
    %26 = tpu.matmul %24, %25, %cst_22 {dimension_numbers = #tpu.dot_dimension_numbers<[1], [0], [0], [1], [0, 0, 1, 1], [], []>} : vector<16x32xf32>, vector<32x256xf32>, vector<16x256xf32> -> vector<16x256xf32>
    %27 = arith.addf %22, %26 : vector<16x256xf32>
    %28 = vector.extract_strided_slice %6 {offsets = [0, 1, 4], sizes = [2, 8, 32], strides = [1, 1, 1]} : vector<2x10x40xf32> to vector<2x8x32xf32>
    %29 = vector.shape_cast %28 : vector<2x8x32xf32> to vector<16x32xf32>
    %c128 = arith.constant 128 : index
    %c0_23 = arith.constant 0 : index
    %30 = vector.load %arg2[%c128, %c0_23] : memref<288x256xf32, #tpu.memory_space<vmem>>, vector<32x256xf32>
    %cst_24 = arith.constant dense<0.000000e+00> : vector<16x256xf32>
    %31 = tpu.matmul %29, %30, %cst_24 {dimension_numbers = #tpu.dot_dimension_numbers<[1], [0], [0], [1], [0, 0, 1, 1], [], []>} : vector<16x32xf32>, vector<32x256xf32>, vector<16x256xf32> -> vector<16x256xf32>
    %32 = arith.addf %27, %31 : vector<16x256xf32>
    %33 = vector.extract_strided_slice %6 {offsets = [0, 1, 8], sizes = [2, 8, 32], strides = [1, 1, 1]} : vector<2x10x40xf32> to vector<2x8x32xf32>
    %34 = vector.shape_cast %33 : vector<2x8x32xf32> to vector<16x32xf32>
    %c160 = arith.constant 160 : index
    %c0_25 = arith.constant 0 : index
    %35 = vector.load %arg2[%c160, %c0_25] : memref<288x256xf32, #tpu.memory_space<vmem>>, vector<32x256xf32>
    %cst_26 = arith.constant dense<0.000000e+00> : vector<16x256xf32>
    %36 = tpu.matmul %34, %35, %cst_26 {dimension_numbers = #tpu.dot_dimension_numbers<[1], [0], [0], [1], [0, 0, 1, 1], [], []>} : vector<16x32xf32>, vector<32x256xf32>, vector<16x256xf32> -> vector<16x256xf32>
    %37 = arith.addf %32, %36 : vector<16x256xf32>
    %38 = vector.extract_strided_slice %6 {offsets = [0, 2, 0], sizes = [2, 8, 32], strides = [1, 1, 1]} : vector<2x10x40xf32> to vector<2x8x32xf32>
    %39 = vector.shape_cast %38 : vector<2x8x32xf32> to vector<16x32xf32>
    %c192 = arith.constant 192 : index
    %c0_27 = arith.constant 0 : index
    %40 = vector.load %arg2[%c192, %c0_27] : memref<288x256xf32, #tpu.memory_space<vmem>>, vector<32x256xf32>
    %cst_28 = arith.constant dense<0.000000e+00> : vector<16x256xf32>
    %41 = tpu.matmul %39, %40, %cst_28 {dimension_numbers = #tpu.dot_dimension_numbers<[1], [0], [0], [1], [0, 0, 1, 1], [], []>} : vector<16x32xf32>, vector<32x256xf32>, vector<16x256xf32> -> vector<16x256xf32>
    %42 = arith.addf %37, %41 : vector<16x256xf32>
    %43 = vector.extract_strided_slice %6 {offsets = [0, 2, 4], sizes = [2, 8, 32], strides = [1, 1, 1]} : vector<2x10x40xf32> to vector<2x8x32xf32>
    %44 = vector.shape_cast %43 : vector<2x8x32xf32> to vector<16x32xf32>
    %c224 = arith.constant 224 : index
    %c0_29 = arith.constant 0 : index
    %45 = vector.load %arg2[%c224, %c0_29] : memref<288x256xf32, #tpu.memory_space<vmem>>, vector<32x256xf32>
    %cst_30 = arith.constant dense<0.000000e+00> : vector<16x256xf32>
    %46 = tpu.matmul %44, %45, %cst_30 {dimension_numbers = #tpu.dot_dimension_numbers<[1], [0], [0], [1], [0, 0, 1, 1], [], []>} : vector<16x32xf32>, vector<32x256xf32>, vector<16x256xf32> -> vector<16x256xf32>
    %47 = arith.addf %42, %46 : vector<16x256xf32>
    %48 = vector.extract_strided_slice %6 {offsets = [0, 2, 8], sizes = [2, 8, 32], strides = [1, 1, 1]} : vector<2x10x40xf32> to vector<2x8x32xf32>
    %49 = vector.shape_cast %48 : vector<2x8x32xf32> to vector<16x32xf32>
    %c256 = arith.constant 256 : index
    %c0_31 = arith.constant 0 : index
    %50 = vector.load %arg2[%c256, %c0_31] : memref<288x256xf32, #tpu.memory_space<vmem>>, vector<32x256xf32>
    %cst_32 = arith.constant dense<0.000000e+00> : vector<16x256xf32>
    %51 = tpu.matmul %49, %50, %cst_32 {dimension_numbers = #tpu.dot_dimension_numbers<[1], [0], [0], [1], [0, 0, 1, 1], [], []>} : vector<16x32xf32>, vector<32x256xf32>, vector<16x256xf32> -> vector<16x256xf32>
    %52 = arith.addf %47, %51 : vector<16x256xf32>
    %c0_33 = arith.constant 0 : index
    %c0_34 = arith.constant 0 : index
    %53 = vector.load %arg3[%c0_33, %c0_34] : memref<1x256xf32, #tpu.memory_space<vmem>>, vector<1x256xf32>
    %c0_35 = arith.constant 0 : index
    %c0_36 = arith.constant 0 : index
    %54 = vector.load %arg4[%c0_35, %c0_36] : memref<1x256xf32, #tpu.memory_space<vmem>>, vector<1x256xf32>
    %55 = vector.shape_cast %52 : vector<16x256xf32> to vector<2x8x256xf32>
    %cst_37 = arith.constant dense<0.000000e+00> : vector<2x256xf32>
    %56 = vector.multi_reduction <add>, %55, %cst_37 [1] : vector<2x8x256xf32> to vector<2x256xf32>
    %57 = arith.mulf %55, %55 : vector<2x8x256xf32>
    %cst_38 = arith.constant dense<0.000000e+00> : vector<2x256xf32>
    %58 = vector.multi_reduction <add>, %57, %cst_38 [1] : vector<2x8x256xf32> to vector<2x256xf32>
    %cst_39 = arith.constant dense<0.000000e+00> : vector<2x8xf32>
    %59 = tpu.matmul %56, %0, %cst_39 {dimension_numbers = #tpu.dot_dimension_numbers<[1], [0], [0], [1], [0, 0, 1, 1], [], []>} : vector<2x256xf32>, vector<256x8xf32>, vector<2x8xf32> -> vector<2x8xf32>
    %cst_40 = arith.constant 3.906250e-03 : f32
    %60 = vector.broadcast %cst_40 : f32 to vector<2x8xf32>
    %61 = arith.mulf %59, %60 : vector<2x8xf32>
    %cst_41 = arith.constant dense<0.000000e+00> : vector<2x8xf32>
    %62 = tpu.matmul %58, %0, %cst_41 {dimension_numbers = #tpu.dot_dimension_numbers<[1], [0], [0], [1], [0, 0, 1, 1], [], []>} : vector<2x256xf32>, vector<256x8xf32>, vector<2x8xf32> -> vector<2x8xf32>
    %cst_42 = arith.constant 3.906250e-03 : f32
    %63 = vector.broadcast %cst_42 : f32 to vector<2x8xf32>
    %64 = arith.mulf %62, %63 : vector<2x8xf32>
    %65 = arith.mulf %61, %61 : vector<2x8xf32>
    %66 = arith.subf %64, %65 : vector<2x8xf32>
    %cst_43 = arith.constant dense<0.000000e+00> : vector<2x256xf32>
    %67 = tpu.matmul %61, %1, %cst_43 {dimension_numbers = #tpu.dot_dimension_numbers<[1], [0], [0], [1], [0, 0, 1, 1], [], []>} : vector<2x8xf32>, vector<8x256xf32>, vector<2x256xf32> -> vector<2x256xf32>
    %cst_44 = arith.constant dense<0.000000e+00> : vector<2x256xf32>
    %68 = tpu.matmul %66, %1, %cst_44 {dimension_numbers = #tpu.dot_dimension_numbers<[1], [0], [0], [1], [0, 0, 1, 1], [], []>} : vector<2x8xf32>, vector<8x256xf32>, vector<2x256xf32> -> vector<2x256xf32>
    %cst_45 = arith.constant 9.99999974E-6 : f32
    %69 = vector.broadcast %cst_45 : f32 to vector<2x256xf32>
    %70 = arith.addf %68, %69 : vector<2x256xf32>
    %71 = math.rsqrt %70 : vector<2x256xf32>
    %72 = vector.broadcast %53 : vector<1x256xf32> to vector<2x256xf32>
    %73 = arith.mulf %71, %72 : vector<2x256xf32>
    %74 = arith.mulf %67, %73 : vector<2x256xf32>
    %75 = vector.broadcast %54 : vector<1x256xf32> to vector<2x256xf32>
    %76 = arith.subf %75, %74 : vector<2x256xf32>
    %77 = vector.shape_cast %73 : vector<2x256xf32> to vector<2x1x256xf32>
    %78 = vector.broadcast %77 : vector<2x1x256xf32> to vector<2x8x256xf32>
    %79 = arith.mulf %55, %78 : vector<2x8x256xf32>
    %80 = vector.shape_cast %76 : vector<2x256xf32> to vector<2x1x256xf32>
    %81 = vector.broadcast %80 : vector<2x1x256xf32> to vector<2x8x256xf32>
    %82 = arith.addf %79, %81 : vector<2x8x256xf32>
    %cst_46 = arith.constant 0.000000e+00 : f32
    %83 = vector.broadcast %cst_46 : f32 to vector<2x8x256xf32>
    %84 = arith.maximumf %82, %83 : vector<2x8x256xf32>
    %cst_47 = arith.constant 0.000000e+00 : f32
    %85 = vector.broadcast %cst_47 : f32 to vector<2x10x320xf32>
    %c0_48 = arith.constant 0 : index
    %c0_49 = arith.constant 0 : index
    %c0_50 = arith.constant 0 : index
    %86 = vector.load %arg14[%c0_48, %c0_49, %c0_50] : memref<2x10x320xf32, #tpu.memory_space<vmem>>, vector<2x10x320xf32>
    tpu.vector_store %arg14[%c0_48, %c0_49, %c0_50], %85 {strides = array<i32>} : memref<2x10x320xf32, #tpu.memory_space<vmem>>, vector<2x10x320xf32>,
    %c0_51 = arith.constant 0 : index
    %c1_52 = arith.constant 1 : index
    %c32_53 = arith.constant 32 : index
    %87 = vector.load %arg14[%c0_51, %c1_52, %c32_53] : memref<2x10x320xf32, #tpu.memory_space<vmem>>, vector<2x8x256xf32>
    tpu.vector_store %arg14[%c0_51, %c1_52, %c32_53], %84 {strides = array<i32>} : memref<2x10x320xf32, #tpu.memory_space<vmem>>, vector<2x8x256xf32>,
    %c0_54 = arith.constant 0 : index
    %c0_55 = arith.constant 0 : index
    %c0_56 = arith.constant 0 : index
    %88 = vector.load %arg14[%c0_54, %c0_55, %c0_56] : memref<2x10x320xf32, #tpu.memory_space<vmem>>, vector<2x10x320xf32>
    %89 = vector.extract_strided_slice %88 {offsets = [0, 0, 0], sizes = [2, 8, 256], strides = [1, 1, 1]} : vector<2x10x320xf32> to vector<2x8x256xf32>
    %90 = vector.extract_strided_slice %88 {offsets = [0, 0, 32], sizes = [2, 8, 256], strides = [1, 1, 1]} : vector<2x10x320xf32> to vector<2x8x256xf32>
    %91 = vector.extract_strided_slice %88 {offsets = [0, 0, 64], sizes = [2, 8, 256], strides = [1, 1, 1]} : vector<2x10x320xf32> to vector<2x8x256xf32>
    %92 = vector.extract_strided_slice %88 {offsets = [0, 1, 0], sizes = [2, 8, 256], strides = [1, 1, 1]} : vector<2x10x320xf32> to vector<2x8x256xf32>
    %93 = vector.extract_strided_slice %88 {offsets = [0, 1, 32], sizes = [2, 8, 256], strides = [1, 1, 1]} : vector<2x10x320xf32> to vector<2x8x256xf32>
    %94 = vector.extract_strided_slice %88 {offsets = [0, 1, 64], sizes = [2, 8, 256], strides = [1, 1, 1]} : vector<2x10x320xf32> to vector<2x8x256xf32>
    %95 = vector.extract_strided_slice %88 {offsets = [0, 2, 0], sizes = [2, 8, 256], strides = [1, 1, 1]} : vector<2x10x320xf32> to vector<2x8x256xf32>
    %96 = vector.extract_strided_slice %88 {offsets = [0, 2, 32], sizes = [2, 8, 256], strides = [1, 1, 1]} : vector<2x10x320xf32> to vector<2x8x256xf32>
    %97 = vector.extract_strided_slice %88 {offsets = [0, 2, 64], sizes = [2, 8, 256], strides = [1, 1, 1]} : vector<2x10x320xf32> to vector<2x8x256xf32>
    %98 = tpu.concatenate %89, %90, %91, %92, %93, %94, %95, %96, %97 in 2 : vector<2x8x256xf32>, vector<2x8x256xf32>, vector<2x8x256xf32>, vector<2x8x256xf32>, vector<2x8x256xf32>, vector<2x8x256xf32>, vector<2x8x256xf32>, vector<2x8x256xf32>, vector<2x8x256xf32> -> vector<2x8x2304xf32>
    %99 = vector.shape_cast %98 : vector<2x8x2304xf32> to vector<16x2304xf32>
    %c0_57 = arith.constant 0 : index
    %c0_58 = arith.constant 0 : index
    %100 = vector.load %arg5[%c0_57, %c0_58] : memref<2304x256xf32, #tpu.memory_space<vmem>>, vector<2304x256xf32>
    %cst_59 = arith.constant dense<0.000000e+00> : vector<16x256xf32>
    %101 = tpu.matmul %99, %100, %cst_59 {dimension_numbers = #tpu.dot_dimension_numbers<[1], [0], [0], [1], [0, 0, 1, 1], [], []>} : vector<16x2304xf32>, vector<2304x256xf32>, vector<16x256xf32> -> vector<16x256xf32>
    %c0_60 = arith.constant 0 : index
    %c0_61 = arith.constant 0 : index
    %102 = vector.load %arg6[%c0_60, %c0_61] : memref<1x256xf32, #tpu.memory_space<vmem>>, vector<1x256xf32>
    %c0_62 = arith.constant 0 : index
    %c0_63 = arith.constant 0 : index
    %103 = vector.load %arg7[%c0_62, %c0_63] : memref<1x256xf32, #tpu.memory_space<vmem>>, vector<1x256xf32>
    %104 = vector.shape_cast %101 : vector<16x256xf32> to vector<2x8x256xf32>
    %cst_64 = arith.constant dense<0.000000e+00> : vector<2x256xf32>
    %105 = vector.multi_reduction <add>, %104, %cst_64 [1] : vector<2x8x256xf32> to vector<2x256xf32>
    %106 = arith.mulf %104, %104 : vector<2x8x256xf32>
    %cst_65 = arith.constant dense<0.000000e+00> : vector<2x256xf32>
    %107 = vector.multi_reduction <add>, %106, %cst_65 [1] : vector<2x8x256xf32> to vector<2x256xf32>
    %cst_66 = arith.constant dense<0.000000e+00> : vector<2x8xf32>
    %108 = tpu.matmul %105, %0, %cst_66 {dimension_numbers = #tpu.dot_dimension_numbers<[1], [0], [0], [1], [0, 0, 1, 1], [], []>} : vector<2x256xf32>, vector<256x8xf32>, vector<2x8xf32> -> vector<2x8xf32>
    %cst_67 = arith.constant 3.906250e-03 : f32
    %109 = vector.broadcast %cst_67 : f32 to vector<2x8xf32>
    %110 = arith.mulf %108, %109 : vector<2x8xf32>
    %cst_68 = arith.constant dense<0.000000e+00> : vector<2x8xf32>
    %111 = tpu.matmul %107, %0, %cst_68 {dimension_numbers = #tpu.dot_dimension_numbers<[1], [0], [0], [1], [0, 0, 1, 1], [], []>} : vector<2x256xf32>, vector<256x8xf32>, vector<2x8xf32> -> vector<2x8xf32>
    %cst_69 = arith.constant 3.906250e-03 : f32
    %112 = vector.broadcast %cst_69 : f32 to vector<2x8xf32>
    %113 = arith.mulf %111, %112 : vector<2x8xf32>
    %114 = arith.mulf %110, %110 : vector<2x8xf32>
    %115 = arith.subf %113, %114 : vector<2x8xf32>
    %cst_70 = arith.constant dense<0.000000e+00> : vector<2x256xf32>
    %116 = tpu.matmul %110, %1, %cst_70 {dimension_numbers = #tpu.dot_dimension_numbers<[1], [0], [0], [1], [0, 0, 1, 1], [], []>} : vector<2x8xf32>, vector<8x256xf32>, vector<2x256xf32> -> vector<2x256xf32>
    %cst_71 = arith.constant dense<0.000000e+00> : vector<2x256xf32>
    %117 = tpu.matmul %115, %1, %cst_71 {dimension_numbers = #tpu.dot_dimension_numbers<[1], [0], [0], [1], [0, 0, 1, 1], [], []>} : vector<2x8xf32>, vector<8x256xf32>, vector<2x256xf32> -> vector<2x256xf32>
    %cst_72 = arith.constant 9.99999974E-6 : f32
    %118 = vector.broadcast %cst_72 : f32 to vector<2x256xf32>
    %119 = arith.addf %117, %118 : vector<2x256xf32>
    %120 = math.rsqrt %119 : vector<2x256xf32>
    %121 = vector.broadcast %102 : vector<1x256xf32> to vector<2x256xf32>
    %122 = arith.mulf %120, %121 : vector<2x256xf32>
    %123 = arith.mulf %116, %122 : vector<2x256xf32>
    %124 = vector.broadcast %103 : vector<1x256xf32> to vector<2x256xf32>
    %125 = arith.subf %124, %123 : vector<2x256xf32>
    %126 = vector.shape_cast %122 : vector<2x256xf32> to vector<2x1x256xf32>
    %127 = vector.broadcast %126 : vector<2x1x256xf32> to vector<2x8x256xf32>
    %128 = arith.mulf %104, %127 : vector<2x8x256xf32>
    %129 = vector.shape_cast %125 : vector<2x256xf32> to vector<2x1x256xf32>
    %130 = vector.broadcast %129 : vector<2x1x256xf32> to vector<2x8x256xf32>
    %131 = arith.addf %128, %130 : vector<2x8x256xf32>
    %cst_73 = arith.constant 0.000000e+00 : f32
    %132 = vector.broadcast %cst_73 : f32 to vector<2x8x256xf32>
    %133 = arith.maximumf %131, %132 : vector<2x8x256xf32>
    %134 = vector.extract_strided_slice %133 {offsets = [0, 0, 0], sizes = [2, 1, 256], strides = [1, 1, 1]} : vector<2x8x256xf32> to vector<2x1x256xf32>
    %135 = vector.shape_cast %134 : vector<2x1x256xf32> to vector<2x256xf32>
    %136 = vector.extract_strided_slice %133 {offsets = [0, 1, 0], sizes = [2, 1, 256], strides = [1, 1, 1]} : vector<2x8x256xf32> to vector<2x1x256xf32>
    %137 = vector.shape_cast %136 : vector<2x1x256xf32> to vector<2x256xf32>
    %138 = vector.extract_strided_slice %133 {offsets = [0, 2, 0], sizes = [2, 1, 256], strides = [1, 1, 1]} : vector<2x8x256xf32> to vector<2x1x256xf32>
    %139 = vector.shape_cast %138 : vector<2x1x256xf32> to vector<2x256xf32>
    %140 = vector.extract_strided_slice %133 {offsets = [0, 3, 0], sizes = [2, 1, 256], strides = [1, 1, 1]} : vector<2x8x256xf32> to vector<2x1x256xf32>
    %141 = vector.shape_cast %140 : vector<2x1x256xf32> to vector<2x256xf32>
    %142 = vector.extract_strided_slice %133 {offsets = [0, 4, 0], sizes = [2, 1, 256], strides = [1, 1, 1]} : vector<2x8x256xf32> to vector<2x1x256xf32>
    %143 = vector.shape_cast %142 : vector<2x1x256xf32> to vector<2x256xf32>
    %144 = vector.extract_strided_slice %133 {offsets = [0, 5, 0], sizes = [2, 1, 256], strides = [1, 1, 1]} : vector<2x8x256xf32> to vector<2x1x256xf32>
    %145 = vector.shape_cast %144 : vector<2x1x256xf32> to vector<2x256xf32>
    %146 = vector.extract_strided_slice %133 {offsets = [0, 6, 0], sizes = [2, 1, 256], strides = [1, 1, 1]} : vector<2x8x256xf32> to vector<2x1x256xf32>
    %147 = vector.shape_cast %146 : vector<2x1x256xf32> to vector<2x256xf32>
    %148 = vector.extract_strided_slice %133 {offsets = [0, 7, 0], sizes = [2, 1, 256], strides = [1, 1, 1]} : vector<2x8x256xf32> to vector<2x1x256xf32>
    %149 = vector.shape_cast %148 : vector<2x1x256xf32> to vector<2x256xf32>
    %150 = tpu.concatenate %135, %137, %139, %141, %143, %145, %147, %149 in 1 : vector<2x256xf32>, vector<2x256xf32>, vector<2x256xf32>, vector<2x256xf32>, vector<2x256xf32>, vector<2x256xf32>, vector<2x256xf32>, vector<2x256xf32> -> vector<2x2048xf32>
    %c0_74 = arith.constant 0 : index
    %c0_75 = arith.constant 0 : index
    %151 = vector.load %arg10[%c0_74, %c0_75] : memref<2048x128xf32, #tpu.memory_space<vmem>>, vector<2048x128xf32>
    %cst_76 = arith.constant dense<0.000000e+00> : vector<2x128xf32>
    %152 = tpu.matmul %150, %151, %cst_76 {dimension_numbers = #tpu.dot_dimension_numbers<[1], [0], [0], [1], [0, 0, 1, 1], [], []>} : vector<2x2048xf32>, vector<2048x128xf32>, vector<2x128xf32> -> vector<2x128xf32>
    %c0_77 = arith.constant 0 : index
    %c0_78 = arith.constant 0 : index
    %153 = vector.load %arg11[%c0_77, %c0_78] : memref<1x128xf32, #tpu.memory_space<vmem>>, vector<1x128xf32>
    %154 = vector.broadcast %153 : vector<1x128xf32> to vector<2x128xf32>
    %155 = arith.addf %152, %154 : vector<2x128xf32>
    %cst_79 = arith.constant 0.000000e+00 : f32
    %156 = vector.broadcast %cst_79 : f32 to vector<2x128xf32>
    %157 = arith.maximumf %155, %156 : vector<2x128xf32>
    %c0_80 = arith.constant 0 : index
    %c0_81 = arith.constant 0 : index
    %158 = vector.load %arg12[%c0_80, %c0_81] : memref<2x128xf32, #tpu.memory_space<vmem>>, vector<2x128xf32>
    tpu.vector_store %arg12[%c0_80, %c0_81], %157 {strides = array<i32>} : memref<2x128xf32, #tpu.memory_space<vmem>>, vector<2x128xf32>,
    return
  }
  func.func @transform_0(%arg0: i32) -> (i32, i32, i32) {
    %c0_i32 = arith.constant 0 : i32
    %c0_i32_0 = arith.constant 0 : i32
    %c0_i32_1 = arith.constant 0 : i32
    return %arg0, %c0_i32, %c0_i32_0 : i32, i32, i32
  }
  func.func @transform_1(%arg0: i32) -> (i32, i32) {
    %c0_i32 = arith.constant 0 : i32
    %c0_i32_0 = arith.constant 0 : i32
    %c0_i32_1 = arith.constant 0 : i32
    return %c0_i32, %c0_i32_0 : i32, i32
  }
  func.func @transform_2(%arg0: i32) -> (i32, i32) {
    %c0_i32 = arith.constant 0 : i32
    %c0_i32_0 = arith.constant 0 : i32
    %c0_i32_1 = arith.constant 0 : i32
    return %c0_i32, %c0_i32_0 : i32, i32
  }
  func.func @transform_3(%arg0: i32) -> (i32, i32) {
    %c0_i32 = arith.constant 0 : i32
    %c0_i32_0 = arith.constant 0 : i32
    %c0_i32_1 = arith.constant 0 : i32
    return %c0_i32, %c0_i32_0 : i32, i32
  }
  func.func @transform_4(%arg0: i32) -> (i32, i32) {
    %c0_i32 = arith.constant 0 : i32
    %c0_i32_0 = arith.constant 0 : i32
    %c0_i32_1 = arith.constant 0 : i32
    return %c0_i32, %c0_i32_0 : i32, i32
  }
  func.func @transform_5(%arg0: i32) -> (i32, i32) {
    %c0_i32 = arith.constant 0 : i32
    %c0_i32_0 = arith.constant 0 : i32
    %c0_i32_1 = arith.constant 0 : i32
    return %c0_i32, %c0_i32_0 : i32, i32
  }
  func.func @transform_6(%arg0: i32) -> (i32, i32) {
    %c0_i32 = arith.constant 0 : i32
    %c0_i32_0 = arith.constant 0 : i32
    %c0_i32_1 = arith.constant 0 : i32
    return %c0_i32, %c0_i32_0 : i32, i32
  }
  func.func @transform_7(%arg0: i32) -> (i32, i32) {
    %c0_i32 = arith.constant 0 : i32
    %c0_i32_0 = arith.constant 0 : i32
    %c0_i32_1 = arith.constant 0 : i32
    return %c0_i32, %c0_i32_0 : i32, i32
  }
  func.func @transform_8(%arg0: i32) -> (i32, i32) {
    %c0_i32 = arith.constant 0 : i32
    %c0_i32_0 = arith.constant 0 : i32
    %c0_i32_1 = arith.constant 0 : i32
    return %c0_i32, %c0_i32_0 : i32, i32
  }
  func.func @transform_9(%arg0: i32) -> (i32, i32) {
    %c0_i32 = arith.constant 0 : i32
    %c0_i32_0 = arith.constant 0 : i32
    %c0_i32_1 = arith.constant 0 : i32
    return %c0_i32, %c0_i32_0 : i32, i32
  }
  func.func @transform_10(%arg0: i32) -> (i32, i32) {
    %c0_i32 = arith.constant 0 : i32
    %c0_i32_0 = arith.constant 0 : i32
    %c0_i32_1 = arith.constant 0 : i32
    return %c0_i32, %c0_i32_0 : i32, i32
  }
  func.func @transform_11(%arg0: i32) -> (i32, i32) {
    %c0_i32 = arith.constant 0 : i32
    %c0_i32_0 = arith.constant 0 : i32
    return %arg0, %c0_i32 : i32, i32
  }
}

</mosaic_0001>

<bundles_post_ra>
// kernel: roi_xconv1fc_gn_head_forward.1
= control target key start
LH: loop header
LB: loop body
LE: loop exit
PB: predicated region body
PF: predicated region fallthrough
CT: control target
= control target key end

     0   :  { %16 = vsyncpa [#allocation5], 0  ;;  %s7315_s0 = inlined_call_operand.vmem [shape: f32[2,8,32], index: 0, kind: input, shape index: {}]   ;;  %s7316_s1 = inlined_call_operand.hbm [shape: f32[288,256], index: 1, kind: input, shape index: {}]   ;;  %s7317_s2 = inlined_call_operand.hbm [shape: f32[1,256], index: 2, kind: input, shape index: {}]   ;;  %s7318_s3 = inlined_call_operand.hbm [shape: f32[1,256], index: 3, kind: input, shape index: {}]   ;;  %s7319_s4 = inlined_call_operand.hbm [shape: f32[2304,256], index: 4, kind: input, shape index: {}]   ;;  %s7320_s5 = inlined_call_operand.hbm [shape: f32[1,256], index: 5, kind: input, shape index: {}]   ;;  %s7321_s6 = inlined_call_operand.hbm [shape: f32[1,256], index: 6, kind: input, shape index: {}]   ;;  %s7322_s7 = inlined_call_operand.vmem [shape: f32[256,8], index: 7, kind: input, shape index: {}]   ;;  %s7323_s8 = inlined_call_operand.hbm [shape: f32[8,256], index: 8, kind: input, shape index: {}]   ;;  %s7324_s9 = inlined_call_operand.hbm [shape: f32[2048,128], index: 9, kind: input, shape index: {}]   ;;  %s7325_s10 = inlined_call_operand.hbm [shape: f32[1,128], index: 10, kind: input, shape index: {}]   ;;  %s7326_s11 = inlined_call_operand.hbm [shape: f32[2,128], index: 11, kind: output, shape index: {}]  }
   0x1   :  { %17 = vsyncpa [#allocation8], 0 }
   0x2   :  { %18 = vsyncpa [#allocation11], 0 }
   0x3   :  { %19 = vsyncpa [#allocation14], 0 }
   0x4   :  { %20 = vsyncpa [#allocation17], 0 }
   0x5   :  { %21 = vsyncpa [#allocation6], 0  ;;  %s6361_s17 = smov [#allocation7]   ;;  %s6129_s21 = scalar_lea.hbm %s7317_s2, 32 }
   0x6   :  { %s42_s18 = sshll.u32 %s6361_s17, 4  ;;  %p6130_p0 = scmp.ne.s32.totalorder %s7317_s2, %s6129_s21  ;;  %s43_s18 = int_to_ptr.vmem [resolvable:$true] %s42_s18 }
   0x7   :  { %p6133_p1 = scmp.lt.u32.totalorder %s6129_s21, %s7317_s2 }
   0x9   :  { %p6135_p2 = pnand %p6133_p1, %p6130_p0 }
   0xb   :  { %6138 = shalt.err (!%p6135_p2)
}
   0xc   :  { %s6139_s26 = scalar_lea.vmem %s43_s18, 32  ;;  %p6144_p4 = scmp.lt.s32.totalorder %s43_s18, %s43_s18 }
   0xd   :  { %p6140_p3 = scmp.ne.s32.totalorder %s43_s18, %s6139_s26  ;;  %p6145_p5 = scmp.lt.s32.totalorder %s6139_s26, %s6139_s26 }
   0xf   :  { %p6146_p6 = por %p6145_p5, %p6144_p4 }
  0x11   :  { %p6147_p7 = pnand %p6146_p6, %p6140_p3 }
  0x13   :  { %6150 = shalt.err (!%p6147_p7)
}
  0x14   :  { %45 = dma.hbm_to_vmem [thread:$0]  %s7317_s2, 32, %s43_s18, [#allocation8]  }
  0x15   :  { %s6362_s29 = smov [#allocation10]   ;;  %s6363_s12 = smov [#allocation13]  }
  0x16   :  { %s61_s30 = sshll.u32 %s6362_s29, 4  ;;  %s84_s13 = sshll.u32 %s6363_s12, 4  ;;  %s62_s30 = int_to_ptr.vmem [resolvable:$true] %s61_s30  ;;  %s85_s13 = int_to_ptr.vmem [resolvable:$true] %s84_s13 }
  0x17   :  { %s6151_s16 = scalar_lea.hbm %s7319_s4, 73728 }
  0x18   :  { %p6152_p8 = scmp.ne.s32.totalorder %s7319_s4, %s6151_s16  ;;  %p6155_p9 = scmp.lt.u32.totalorder %s6151_s16, %s7319_s4 }
  0x1a   :  { %p6157_p10 = pnand %p6155_p9, %p6152_p8 }
  0x1c   :  { %6160 = shalt.err (!%p6157_p10)
}
  0x1d   :  { %s6161_s2 = scalar_lea.vmem %s62_s30, 73728  ;;  %p6166_p12 = scmp.lt.s32.totalorder %s62_s30, %s62_s30 }
  0x1e   :  { %p6162_p11 = scmp.ne.s32.totalorder %s62_s30, %s6161_s2  ;;  %p6167_p13 = scmp.lt.s32.totalorder %s6161_s2, %s6161_s2 }
  0x20   :  { %p6168_p0 = por %p6167_p13, %p6166_p12 }
  0x22   :  { %p6169_p1 = pnand %p6168_p0, %p6162_p11 }
  0x24   :  { %6172 = shalt.err (!%p6169_p1)
}
  0x25   :  { %s6364_s18 = smov 256   ;;  %s6365_s22 = smov 16  }
  0x26   :  { %67 = dma.hbm_to_vmem [thread:$0]  %s7319_s4, 73728, %s62_s30, [#allocation11], %s6364_s18, %s6364_s18, %s6365_s22  }
  0x27   :  { %s6173_s27 = scalar_lea.hbm %s7321_s6, 32 }
  0x28   :  { %p6174_p2 = scmp.ne.s32.totalorder %s7321_s6, %s6173_s27  ;;  %p6177_p3 = scmp.lt.u32.totalorder %s6173_s27, %s7321_s6 }
  0x2a   :  { %p6179_p4 = pnand %p6177_p3, %p6174_p2 }
  0x2c   :  { %6182 = shalt.err (!%p6179_p4)
}
  0x2d   :  { %s6183_s15 = scalar_lea.vmem %s85_s13, 32  ;;  %p6188_p6 = scmp.lt.s32.totalorder %s85_s13, %s85_s13 }
  0x2e   :  { %p6184_p5 = scmp.ne.s32.totalorder %s85_s13, %s6183_s15  ;;  %p6189_p7 = scmp.lt.s32.totalorder %s6183_s15, %s6183_s15 }
  0x30   :  { %p6190_p8 = por %p6189_p7, %p6188_p6 }
  0x32   :  { %p6191_p9 = pnand %p6190_p8, %p6184_p5 }
  0x34   :  { %6194 = shalt.err (!%p6191_p9)
}
  0x35   :  { %87 = dma.hbm_to_vmem [thread:$0]  %s7321_s6, 32, %s85_s13, [#allocation14]  }
  0x36   :  { %s6366_s16 = smov [#allocation16]   ;;  %s6195_s21 = scalar_lea.hbm %s7324_s9, 32768 }
  0x37   :  { %s105_s17 = sshll.u32 %s6366_s16, 4  ;;  %p6196_p10 = scmp.ne.s32.totalorder %s7324_s9, %s6195_s21  ;;  %s106_s17 = int_to_ptr.vmem [resolvable:$true] %s105_s17 }
  0x38   :  { %p6199_p11 = scmp.lt.u32.totalorder %s6195_s21, %s7324_s9 }
  0x3a   :  { %p6201_p12 = pnand %p6199_p11, %p6196_p10 }
  0x3c   :  { %6204 = shalt.err (!%p6201_p12)
}
  0x3d   :  { %s6205_s26 = scalar_lea.vmem %s106_s17, 32768  ;;  %p6210_p0 = scmp.lt.s32.totalorder %s106_s17, %s106_s17 }
  0x3e   :  { %p6206_p13 = scmp.ne.s32.totalorder %s106_s17, %s6205_s26  ;;  %p6211_p1 = scmp.lt.s32.totalorder %s6205_s26, %s6205_s26 }
  0x40   :  { %p6212_p2 = por %p6211_p1, %p6210_p0 }
  0x42   :  { %p6213_p3 = pnand %p6212_p2, %p6206_p13 }
  0x44   :  { %6216 = shalt.err (!%p6213_p3)
}
  0x45   :  { %s6367_s6 = smov 128   ;;  %s6368_s13 = smov 8  }
  0x46   :  { %111 = dma.hbm_to_vmem [thread:$0]  %s7324_s9, 32768, %s106_s17, [#allocation17], %s6367_s6, %s6367_s6, %s6368_s13  }
  0x47   :  { %s6369_s29 = smov [#allocation4]   ;;  %s6370_s14 = smov [#allocation9]  }
  0x48   :  { %s29_s12 = sshll.u32 %s6369_s29, 4  ;;  %s52_s15 = sshll.u32 %s6370_s14, 4  ;;  %s30_s12 = int_to_ptr.vmem [resolvable:$true] %s29_s12  ;;  %s53_s15 = int_to_ptr.vmem [resolvable:$true] %s52_s15 }
  0x49   :  { %s6217_s16 = scalar_lea.hbm %s7316_s1, 9216 }
  0x4a   :  { %p6218_p4 = scmp.ne.s32.totalorder %s7316_s1, %s6217_s16  ;;  %p6221_p5 = scmp.lt.u32.totalorder %s6217_s16, %s7316_s1 }
  0x4c   :  { %p6223_p6 = pnand %p6221_p5, %p6218_p4 }
  0x4e   :  { %6226 = shalt.err (!%p6223_p6)
}
  0x4f   :  { %s6227_s9 = scalar_lea.vmem %s30_s12, 9216  ;;  %p6232_p8 = scmp.lt.s32.totalorder %s30_s12, %s30_s12 }
  0x50   :  { %p6228_p7 = scmp.ne.s32.totalorder %s30_s12, %s6227_s9  ;;  %p6233_p9 = scmp.lt.s32.totalorder %s6227_s9, %s6227_s9 }
  0x52   :  { %p6234_p10 = por %p6233_p9, %p6232_p8 }
  0x54   :  { %p6235_p11 = pnand %p6234_p10, %p6228_p7 }
  0x56   :  { %6238 = shalt.err (!%p6235_p11)
}
  0x57   :  { %35 = dma.hbm_to_vmem [thread:$0]  %s7316_s1, 9216, %s30_s12, [#allocation5], %s6364_s18, %s6364_s18, %s6365_s22  }
  0x58   :  { %s6239_s26 = scalar_lea.hbm %s7318_s3, 32 }
  0x59   :  { %p6240_p12 = scmp.ne.s32.totalorder %s7318_s3, %s6239_s26  ;;  %p6243_p13 = scmp.lt.u32.totalorder %s6239_s26, %s7318_s3 }
  0x5b   :  { %p6245_p0 = pnand %p6243_p13, %p6240_p12 }
  0x5d   :  { %6248 = shalt.err (!%p6245_p0)
}
  0x5e   :  { %s6249_s29 = scalar_lea.vmem %s53_s15, 32  ;;  %p6254_p2 = scmp.lt.s32.totalorder %s53_s15, %s53_s15 }
  0x5f   :  { %p6250_p1 = scmp.ne.s32.totalorder %s53_s15, %s6249_s29  ;;  %p6255_p3 = scmp.lt.s32.totalorder %s6249_s29, %s6249_s29 }
  0x61   :  { %p6256_p4 = por %p6255_p3, %p6254_p2 }
  0x63   :  { %p6257_p5 = pnand %p6256_p4, %p6250_p1 }
  0x65   :  { %6260 = shalt.err (!%p6257_p5)
}
  0x66   :  { %55 = dma.hbm_to_vmem [thread:$0]  %s7318_s3, 32, %s53_s15, [#allocation8]  }
  0x67   :  { %s6371_s22 = smov [#allocation12]   ;;  %s6372_s14 = smov [#allocation15]  }
  0x68   :  { %s74_s12 = sshll.u32 %s6371_s22, 4  ;;  %s96_s4 = sshll.u32 %s6372_s14, 4  ;;  %s75_s12 = int_to_ptr.vmem [resolvable:$true] %s74_s12  ;;  %s97_s4 = int_to_ptr.vmem [resolvable:$true] %s96_s4 }
  0x69   :  { %s6261_s19 = scalar_lea.hbm %s7320_s5, 32 }
  0x6a   :  { %p6262_p6 = scmp.ne.s32.totalorder %s7320_s5, %s6261_s19  ;;  %p6265_p7 = scmp.lt.u32.totalorder %s6261_s19, %s7320_s5 }
  0x6c   :  { %p6267_p8 = pnand %p6265_p7, %p6262_p6 }
  0x6e   :  { %6270 = shalt.err (!%p6267_p8)
}
  0x6f   :  { %s6271_s3 = scalar_lea.vmem %s75_s12, 32  ;;  %p6276_p10 = scmp.lt.s32.totalorder %s75_s12, %s75_s12 }
  0x70   :  { %p6272_p9 = scmp.ne.s32.totalorder %s75_s12, %s6271_s3  ;;  %p6277_p11 = scmp.lt.s32.totalorder %s6271_s3, %s6271_s3 }
  0x72   :  { %p6278_p12 = por %p6277_p11, %p6276_p10 }
  0x74   :  { %p6279_p13 = pnand %p6278_p12, %p6272_p9 }
  0x76   :  { %6282 = shalt.err (!%p6279_p13)
}
  0x77   :  { %77 = dma.hbm_to_vmem [thread:$0]  %s7320_s5, 32, %s75_s12, [#allocation11]  }
  0x78   :  { %s6283_s25 = scalar_lea.hbm %s7323_s8, 256 }
  0x79   :  { %p6284_p0 = scmp.ne.s32.totalorder %s7323_s8, %s6283_s25  ;;  %p6287_p1 = scmp.lt.u32.totalorder %s6283_s25, %s7323_s8 }
  0x7b   :  { %p6289_p2 = pnand %p6287_p1, %p6284_p0 }
  0x7d   :  { %6292 = shalt.err (!%p6289_p2)
}
  0x7e   :  { %s6293_s28 = scalar_lea.vmem %s97_s4, 256  ;;  %p6298_p4 = scmp.lt.s32.totalorder %s97_s4, %s97_s4 }
  0x7f   :  { %p6294_p3 = scmp.ne.s32.totalorder %s97_s4, %s6293_s28  ;;  %p6299_p5 = scmp.lt.s32.totalorder %s6293_s28, %s6293_s28 }
  0x81   :  { %p6300_p6 = por %p6299_p5, %p6298_p4 }
  0x83   :  { %p6301_p7 = pnand %p6300_p6, %p6294_p3 }
  0x85   :  { %6304 = shalt.err (!%p6301_p7)
}
  0x86   :  { %99 = dma.hbm_to_vmem [thread:$0]  %s7323_s8, 256, %s97_s4, [#allocation14]  }
  0x87   :  { %s6373_s1 = smov [#allocation18]   ;;  %s6305_s14 = scalar_lea.hbm %s7325_s10, 16 }
  0x88   :  { %s118_s18 = sshll.u32 %s6373_s1, 4  ;;  %p6306_p8 = scmp.ne.s32.totalorder %s7325_s10, %s6305_s14  ;;  %s119_s18 = int_to_ptr.vmem [resolvable:$true] %s118_s18 }
  0x89   :  { %p6309_p9 = scmp.lt.u32.totalorder %s6305_s14, %s7325_s10 }
  0x8b   :  { %p6311_p10 = pnand %p6309_p9, %p6306_p8 }
  0x8d   :  { %6314 = shalt.err (!%p6311_p10)
}
  0x8e   :  { %s6315_s21 = scalar_lea.vmem %s119_s18, 16  ;;  %s6319_s8 = scalar_lea.vmem %s119_s18, 32 }
  0x8f   :  { %p6316_p11 = scmp.ne.s32.totalorder %s119_s18, %s6315_s21  ;;  %p6320_p12 = scmp.lt.s32.totalorder %s119_s18, %s119_s18 }
  0x90   :  { %p6321_p13 = scmp.lt.s32.totalorder %s6319_s8, %s6315_s21 }
  0x92   :  { %p6322_p0 = por %p6321_p13, %p6320_p12 }
  0x94   :  { %p6323_p1 = pnand %p6322_p0, %p6316_p11 }
  0x96   :  { %6326 = shalt.err (!%p6323_p1)
}
  0x97   :  { %121 = dma.hbm_to_vmem [thread:$0]  %s7325_s10, 16, %s119_s18, [#allocation17]  }
  0x98   :  { %6349 = dma.done.wait [#allocation5], 9216  }
  0x99   :  { %6350 = vsyncadd [#allocation5], 4294958080 }
  0x9a   :  { %6351 = dma.done.wait [#allocation8], 64  }
  0x9b   :  { %6352 = vsyncadd [#allocation8], 4294967232 }
  0x9c   :  { %6353 = dma.done.wait [#allocation11], 73760  }
  0x9d   :  { %6354 = vsyncadd [#allocation11], 4294893536 }
  0x9e   :  { %6355 = dma.done.wait [#allocation14], 288  }
  0x9f   :  { %6356 = vsyncadd [#allocation14], 4294967008 }
  0xa0   :  { %6357 = dma.done.wait [#allocation17], 32784  }
  0xa1   :  { %6358 = vsyncadd [#allocation17], 4294934512  ;;  %vm183_vm0 = vcmask 326656   ;;  %vm185_vm1 = vcmask 320512   ;;  %v6374_v0 = vmov 0.0   ;;  %v189_v1 = vld [vmem:[%s7315_s0] sm:$0xff] }
  0xa2   :  { %184 = vst.msk [vmem:[#allocation2] sm:$0xff] %vm183_vm0, %v6374_v0  ;;  %187 = vst.msk [vmem:[#allocation2 + $0x10] sm:$0xff] %vm183_vm0, %v6374_v0  ;;  %297 = vmatprep.mubr.f32.mxu0 %v6374_v0  ;;  %s6375_s3 = smov 4   ;;  %v190_v2 = vld [vmem:[%s7315_s0 + $0x8] sm:$0xff]  ;;  %v217_v4 = vld [vmem:[#allocation4 + $0x58] sm:$0xff]  ;;  %vm199_vm2 = vcmask 293920  }
  0xa3   :  { %186 = vst.msk [vmem:[#allocation2 + $0x8] sm:$0x3] %vm185_vm1, %v6374_v0  ;;  %188 = vst.msk [vmem:[#allocation2 + $0x18] sm:$0x3] %vm185_vm1, %v6374_v0  ;;  %193 = vrot.lane.b32.xlu0 %v189_v1, %s6375_s3  ;;  %v215_v3 = vld [vmem:[#allocation4 + $0x48] sm:$0xff]  ;;  %v214_v5 = vld [vmem:[#allocation4 + $0x40] sm:$0xff] }
  0xa4   :  { %1574 = vst [vmem:[#allocation3] sm:$0xff] %v6374_v0  ;;  %1575 = vst [vmem:[#allocation3 + $0x8] sm:$0xff] %v6374_v0  ;;  %v4931_v6 = vpack.c.bf16 %v217_v4, %v215_v3  ;;  %v216_v7 = vld [vmem:[#allocation4 + $0x50] sm:$0xff]  ;;  %v219_v8 = vld [vmem:[#allocation4 + $0x68] sm:$0xff]  ;;  %vm490_vm3 = vcmask 1046528   ;;  %s6376_s0 = smov 120  }
  0xa5   :  { %1578 = vst [vmem:[#allocation3 + $0x18] sm:$0x3] %v6374_v0  ;;  %1579 = vst [vmem:[#allocation3 + $0x20] sm:$0x3] %v6374_v0  ;;  %v221_v9 = vld [vmem:[#allocation4 + $0x78] sm:$0xff]  ;;  %v4933_v10 = vpack.c.bf16 %v216_v7, %v214_v5  ;;  %v218_v12 = vld [vmem:[#allocation4 + $0x60] sm:$0xff] }
  0xa6   :  { %1582 = vst [vmem:[#allocation3 + $0x30] sm:$0xff] %v6374_v0  ;;  %1583 = vst [vmem:[#allocation3 + $0x38] sm:$0xff] %v6374_v0  ;;  %v4935_v11 = vpack.c.bf16 %v221_v9, %v219_v8  ;;  %v220_v13 = vld [vmem:[#allocation4 + $0x70] sm:$0xff]  ;;  %v207_v14 = vld [vmem:[#allocation4 + $0x8] sm:$0xff]  ;;  %4932 = vmatprep.subr.bf16.mxu0 %v4931_v6  ;;  %s6377_s23 = smov 124   ;;  %vm784_vm4 = vcmask 1045504  }
  0xa7   :  { %1585 = vst [vmem:[#allocation3 + $0x48] sm:$0x3] %v6374_v0  ;;  %1586 = vst [vmem:[#allocation3 + $0x50] sm:$0x3] %v6374_v0  ;;  %195 = vrot.lane.b32.xlu0 %v190_v2, %s6375_s3  ;;  %v209_v15 = vld [vmem:[#allocation4 + $0x18] sm:$0xff]  ;;  %4934 = vmatpush1.bf16.msra.mxu0 %v4933_v10  ;;  %v4937_v16 = vpack.c.bf16 %v220_v13, %v218_v12  ;;  %v165_v36 = vld [vmem:[%s7322_s7 + $0x80] sm:$0xff] }
  0xa8   :  { %4936 = vmatprep.subr.bf16.mxu0 %v4935_v11  ;;  %v4939_v17 = vpack.c.bf16 %v209_v15, %v207_v14  ;;  %v166_v37 = vld [vmem:[%s7322_s7 + $0x88] sm:$0xff]  ;;  %v149_v38 = vld [vmem:[%s7322_s7] sm:$0xff]  ;;  %v167_v41 = vld [vmem:[%s7322_s7 + $0x90] sm:$0xff]  ;;  %vm228_vm5 = vcmask 261120   ;;  %vm1136_vm6 = vcmask 1041409   ;;  %vm1293_vm7 = vcmask 64512  }
  0xa9   :  { %v6617_v39 = vpack.c.bf16 %v166_v37, %v165_v36  ;;  %v150_v40 = vld [vmem:[%s7322_s7 + $0x8] sm:$0xff]  ;;  %v168_v42 = vld [vmem:[%s7322_s7 + $0x98] sm:$0xff]  ;;  %v151_v45 = vld [vmem:[%s7322_s7 + $0x10] sm:$0xff]  ;;  %vm1576_vm8 = vcmask 523264   ;;  %vm1580_vm9 = vcmask 517120   ;;  %vm1615_vm10 = vcmask 261121  }
  0xaa   :  { %v6628_v43 = vpack.c.bf16 %v150_v40, %v149_v38  ;;  %v6630_v44 = vpack.c.bf16 %v168_v42, %v167_v41  ;;  %v152_v46 = vld [vmem:[%s7322_s7 + $0x18] sm:$0xff]  ;;  %v169_v47 = vld [vmem:[%s7322_s7 + $0xa0] sm:$0xff]  ;;  %v170_v48 = vld [vmem:[%s7322_s7 + $0xa8] sm:$0xff]  ;;  %1577 = vst.msk [vmem:[#allocation3 + $0x10] sm:$0xff] %vm1576_vm8, %v6374_v0  ;;  %vm1620_vm11 = vcmask 253952   ;;  %vm1612_vm12 = vcmask 1047809  }
  0xab   :  { %4938 = vmatpush1.bf16.msra.mxu0 %v4937_v16  ;;  %5004 = vmatprep.subr.bf16.mxu1 %v6617_v39  ;;  %v6646_v49 = vpack.c.bf16 %v152_v46, %v151_v45  ;;  %v6649_v50 = vpack.c.bf16 %v170_v48, %v169_v47  ;;  %v153_v51 = vld [vmem:[%s7322_s7 + $0x20] sm:$0xff]  ;;  %v154_v52 = vld [vmem:[%s7322_s7 + $0x28] sm:$0xff]  ;;  %v171_v53 = vld [vmem:[%s7322_s7 + $0xb0] sm:$0xff]  ;;  %1581 = vst.msk [vmem:[#allocation3 + $0x28] sm:$0x3] %vm1580_vm9, %v6374_v0  ;;  %vm1617_vm13 = vcmask 1040640  }
  0xac   :  { %4940 = vmatprep.subr.bf16.mxu0 %v4939_v17  ;;  %5006 = vmatpush3.bf16.msra.mxu1 %v6628_v43  ;;  %v172_v54 = vld [vmem:[%s7322_s7 + $0xb8] sm:$0xff]  ;;  %v6664_v55 = vpack.c.bf16 %v154_v52, %v153_v51  ;;  %v206_v57 = vld [vmem:[#allocation4] sm:$0xff]  ;;  %v208_v58 = vld [vmem:[#allocation4 + $0x10] sm:$0xff]  ;;  %1584 = vst.msk [vmem:[#allocation3 + $0x40] sm:$0xff] %vm1576_vm8, %v6374_v0  ;;  %s6380_s28 = smov 64   ;;  %s6381_s5 = smov 96  }
  0xad   :  { %5008 = vmatprep.subr.bf16.mxu1 %v6630_v44  ;;  %v6667_v56 = vpack.c.bf16 %v172_v54, %v171_v53  ;;  %v211_v59 = vld [vmem:[#allocation4 + $0x28] sm:$0xff]  ;;  %v213_v60 = vld [vmem:[#allocation4 + $0x38] sm:$0xff]  ;;  %v4941_v61 = vpack.c.bf16 %v208_v58, %v206_v57  ;;  %v210_v63 = vld [vmem:[#allocation4 + $0x20] sm:$0xff]  ;;  %1587 = vst.msk [vmem:[#allocation3 + $0x58] sm:$0x3] %vm1580_vm9, %v6374_v0  ;;  %vm1658_vm14 = vcmask 785408  }
  0xae   :  { %v4943_v62 = vpack.c.bf16 %v213_v60, %v211_v59  ;;  %v212_v1 = vld [vmem:[#allocation4 + $0x30] sm:$0xff]  ;;  %v392_v3 = vld [vmem:[#allocation4 + $0x88] sm:$0xff]  ;;  %v394_v4 = vld [vmem:[#allocation4 + $0x98] sm:$0xff]  ;;  %s6382_s29 = smov [#allocation19]  }
  0xaf   :  { %v4945_v5 = vpack.c.bf16 %v212_v1, %v210_v63  ;;  %v4947_v6 = vpack.c.bf16 %v394_v4, %v392_v3  ;;  %v391_v7 = vld [vmem:[#allocation4 + $0x80] sm:$0xff]  ;;  %v393_v8 = vld [vmem:[#allocation4 + $0x90] sm:$0xff]  ;;  %v396_v10 = vld [vmem:[#allocation4 + $0xa8] sm:$0xff]  ;;  %s4475_s1 = sshll.u32 %s6382_s29, 4  ;;  %s4476_s1 = int_to_ptr.vmem [resolvable:$true] %s4475_s1 }
  0xb0   :  { %5010 = vmatpush3.bf16.msra.mxu1 %v6646_v49  ;;  %v398_v11 = vld [vmem:[#allocation4 + $0xb8] sm:$0xff]  ;;  %v4949_v12 = vpack.c.bf16 %v393_v8, %v391_v7  ;;  %v395_v14 = vld [vmem:[#allocation4 + $0xa0] sm:$0xff]  ;;  %v397_v15 = vld [vmem:[#allocation4 + $0xb0] sm:$0xff]  ;;  %s6327_s18 = scalar_lea.vmem %s4476_s1, 32  ;;  %p6332_p3 = scmp.lt.s32.totalorder %s4476_s1, %s4476_s1 }
  0xb1   :  { %5012 = vmatprep.subr.bf16.mxu1 %v6649_v50  ;;  %v4951_v13 = vpack.c.bf16 %v398_v11, %v396_v10  ;;  %v498_v16 = vld [vmem:[#allocation4 + $0xc8] sm:$0xff]  ;;  %v500_v17 = vld [vmem:[#allocation4 + $0xd8] sm:$0xff]  ;;  %v592_v38 = vld [vmem:[#allocation4 + $0x110] sm:$0xff]  ;;  %p6328_p2 = scmp.ne.s32.totalorder %s4476_s1, %s6327_s18  ;;  %p6333_p4 = scmp.lt.s32.totalorder %s6327_s18, %s6327_s18 }
  0xb2   :  { %v595_v41 = vld [vmem:[#allocation4 + $0x128] sm:$0xff]  ;;  %v597_v42 = vld [vmem:[#allocation4 + $0x138] sm:$0xff]  ;;  %v594_v47 = vld [vmem:[#allocation4 + $0x120] sm:$0xff] }
  0xb3   :  { %v4967_v46 = vpack.c.bf16 %v597_v42, %v595_v41  ;;  %v596_v48 = vld [vmem:[#allocation4 + $0x130] sm:$0xff]  ;;  %v688_v51 = vld [vmem:[#allocation4 + $0x148] sm:$0xff]  ;;  %v690_v52 = vld [vmem:[#allocation4 + $0x158] sm:$0xff]  ;;  %p6334_p5 = por %p6333_p4, %p6332_p3 }
  0xb4   :  { %5014 = vmatpush3.bf16.msra.mxu1 %v6664_v55  ;;  %v4969_v53 = vpack.c.bf16 %v596_v48, %v594_v47  ;;  %v4971_v54 = vpack.c.bf16 %v690_v52, %v688_v51  ;;  %v687_v57 = vld [vmem:[#allocation4 + $0x140] sm:$0xff]  ;;  %v689_v58 = vld [vmem:[#allocation4 + $0x150] sm:$0xff]  ;;  %v692_v59 = vld [vmem:[#allocation4 + $0x168] sm:$0xff] }
  0xb5   :  { %5016 = vmatprep.subr.bf16.mxu1 %v6667_v56  ;;  %v694_v60 = vld [vmem:[#allocation4 + $0x178] sm:$0xff]  ;;  %v693_v63 = vld [vmem:[#allocation4 + $0x170] sm:$0xff]  ;;  %v796_v8 = vld [vmem:[#allocation4 + $0x1a8] sm:$0xff]  ;;  %p6335_p6 = pnand %p6334_p5, %p6328_p2 }
  0xb6   :  { %v794_v3 = vld [vmem:[#allocation4 + $0x198] sm:$0xff]  ;;  %v155_v52 = vld [vmem:[%s7322_s7 + $0x30] sm:$0xff] }
 0x115   :  { %v194_v18 = vpop.permute.xlu0 %193 }
 0x116   :  { %200 = vst.msk [vmem:[#allocation2 + $0x1] sm:$0xff] %vm199_vm2, %v194_v18  ;;  %v4953_v18 = vpack.c.bf16 %v397_v15, %v395_v14  ;;  %v885_v15 = vld [vmem:[#allocation4 + $0x1c8] sm:$0xff] }
 0x119   :  { %v196_v19 = vpop.permute.xlu0 %195 }
 0x11a   :  { %201 = vst.msk [vmem:[#allocation2 + $0x11] sm:$0xff] %vm199_vm2, %v196_v19  ;;  %v4955_v19 = vpack.c.bf16 %v500_v17, %v498_v16  ;;  %v887_v16 = vld [vmem:[#allocation4 + $0x1d8] sm:$0xff] }
 0x11d   :  { %v6576_v20 = vld [vmem:[#allocation2] sm:$0xff]  ;;  %v203_v21 = vld [vmem:[#allocation2 + $0x8] sm:$0x3] }
 0x11e   :  { %399 = vrot.lane.b32.xlu0 %v6576_v20, %s6376_s0  ;;  %224 = vrot.lane.b32.xlu1 %v6576_v20, %s6377_s23  ;;  %v491_v22 = vrot.slane %v6576_v20, 1  ;;  %v492_v23 = vrot.slane %v203_v21, 1  ;;  %v785_v29 = vrot.slane %v6576_v20, 2  ;;  %v786_v30 = vrot.slane %v203_v21, 2  ;;  %v497_v21 = vld [vmem:[#allocation4 + $0xc0] sm:$0xff] }
 0x120   :  { %v6582_v24 = vsel %vm490_vm3, %v491_v22, %v492_v23  ;;  %v6596_v32 = vsel %vm784_vm4, %v785_v29, %v786_v30  ;;  %v499_v22 = vld [vmem:[#allocation4 + $0xd0] sm:$0xff]  ;;  %v502_v23 = vld [vmem:[#allocation4 + $0xe8] sm:$0xff] }
 0x121   :  { %v6584_v25 = vld [vmem:[#allocation2 + $0x10] sm:$0xff]  ;;  %v205_v26 = vld [vmem:[#allocation2 + $0x18] sm:$0x3] }
 0x122   :  { %226 = vrot.lane.b32.xlu1 %v6584_v25, %s6377_s23  ;;  %598 = vrot.lane.b32.xlu0 %v6582_v24, %s6377_s23  ;;  %v494_v27 = vrot.slane %v6584_v25, 1  ;;  %v495_v28 = vrot.slane %v205_v26, 1  ;;  %v788_v33 = vrot.slane %v6584_v25, 2  ;;  %v789_v34 = vrot.slane %v205_v26, 2  ;;  %v504_v26 = vld [vmem:[#allocation4 + $0xf8] sm:$0xff]  ;;  %v503_v29 = vld [vmem:[#allocation4 + $0xf0] sm:$0xff] }
 0x124   :  { %v6593_v31 = vsel %vm490_vm3, %v494_v27, %v495_v28  ;;  %v6604_v35 = vsel %vm784_vm4, %v788_v33, %v789_v34  ;;  %v4957_v27 = vpack.c.bf16 %v499_v22, %v497_v21  ;;  %v4959_v28 = vpack.c.bf16 %v504_v26, %v502_v23  ;;  %v591_v33 = vld [vmem:[#allocation4 + $0x108] sm:$0xff]  ;;  %v593_v34 = vld [vmem:[#allocation4 + $0x118] sm:$0xff]  ;;  %v886_v21 = vld [vmem:[#allocation4 + $0x1d0] sm:$0xff] }
 0x125   :  { %v4963_v37 = vpack.c.bf16 %v593_v34, %v591_v33  ;;  %v889_v23 = vld [vmem:[#allocation4 + $0x1e8] sm:$0xff]  ;;  %v891_v26 = vld [vmem:[#allocation4 + $0x1f8] sm:$0xff] }
 0x126   :  { %401 = vrot.lane.b32.xlu1 %v6584_v25, %s6376_s0  ;;  %695 = vrot.lane.b32.xlu0 %v6582_v24, %s6376_s0  ;;  %v984_v33 = vld [vmem:[#allocation4 + $0x218] sm:$0xff] }
 0x12a   :  { %600 = vrot.lane.b32.xlu1 %v6593_v31, %s6377_s23  ;;  %892 = vrot.lane.b32.xlu0 %v6596_v32, %s6377_s23 }
 0x12e   :  { %697 = vrot.lane.b32.xlu1 %v6593_v31, %s6376_s0  ;;  %989 = vrot.lane.b32.xlu0 %v6596_v32, %s6376_s0 }
 0x132   :  { %894 = vrot.lane.b32.xlu1 %v6604_v35, %s6377_s23 }
 0x136   :  { %991 = vrot.lane.b32.xlu1 %v6604_v35, %s6376_s0 }
 0x190   :  { %v225_v2 = vpop.permute.xlu1 %224  ;;  %v400_v30 = vpop.permute.xlu0 %399 }
 0x191   :  { %4488 = vmatmul.mubr.msk.f32.vlgmr.msra.gmra.mrb[0].mxu0 %vm228_vm5, %v225_v2  ;;  %v792_v2 = vld [vmem:[#allocation4 + $0x188] sm:$0xff] }
 0x192   :  { %4942 = vmatpush1.bf16.msra.mxu0 %v4941_v61  ;;  %303 = vmatprep.mubr.f32.mxu0 %v6374_v0  ;;  %v4973_v61 = vpack.c.bf16 %v689_v58, %v687_v57  ;;  %v173_v57 = vld [vmem:[%s7322_s7 + $0xc0] sm:$0xff]  ;;  %v174_v58 = vld [vmem:[%s7322_s7 + $0xc8] sm:$0xff] }
 0x193   :  { %4944 = vmatprep.subr.bf16.mxu0 %v4943_v62  ;;  %v4975_v62 = vpack.c.bf16 %v694_v60, %v692_v59  ;;  %v6727_v59 = vpack.c.bf16 %v174_v58, %v173_v57  ;;  %v157_v60 = vld [vmem:[%s7322_s7 + $0x40] sm:$0xff] }
 0x194   :  { %v227_v9 = vpop.permute.xlu1 %226  ;;  %v599_v1 = vpop.permute.xlu0 %598 }
 0x195   :  { %4489 = vmatmul.mubr.msk.f32.gmra.mrb[2].mxu0 %vm228_vm5, %v227_v9  ;;  %v798_v9 = vld [vmem:[#allocation4 + $0x1b8] sm:$0xff] }
 0x196   :  { %4946 = vmatpush1.bf16.msra.mxu0 %v4945_v5  ;;  %378 = vmatprep.mubr.f32.mxu0 %v6374_v0  ;;  %v4979_v5 = vpack.c.bf16 %v794_v3, %v792_v2  ;;  %v4983_v11 = vpack.c.bf16 %v798_v9, %v796_v8  ;;  %v159_v2 = vld [vmem:[%s7322_s7 + $0x50] sm:$0xff]  ;;  %v160_v3 = vld [vmem:[%s7322_s7 + $0x58] sm:$0xff]  ;;  %v162_v8 = vld [vmem:[%s7322_s7 + $0x68] sm:$0xff] }
 0x197   :  { %4948 = vmatprep.subr.bf16.mxu0 %v4947_v6  ;;  %v793_v6 = vld [vmem:[#allocation4 + $0x190] sm:$0xff] }
 0x198   :  { %v402_v40 = vpop.permute.xlu1 %401  ;;  %v696_v14 = vpop.permute.xlu0 %695 }
 0x199   :  { %4490 = vmatmul.mubr.msk.f32.vlgmr.msra.gmra.mrb[0].mxu0 %vm228_vm5, %v6576_v20  ;;  %v501_v20 = vld [vmem:[#allocation4 + $0xe0] sm:$0xff] }
 0x19a   :  { %4950 = vmatpush1.bf16.msra.mxu0 %v4949_v12  ;;  %384 = vmatprep.mubr.f32.mxu0 %v6374_v0  ;;  %v4961_v36 = vpack.c.bf16 %v503_v29, %v501_v20  ;;  %v795_v12 = vld [vmem:[#allocation4 + $0x1a0] sm:$0xff]  ;;  %v890_v29 = vld [vmem:[#allocation4 + $0x1f0] sm:$0xff] }
 0x19b   :  { %4952 = vmatprep.subr.bf16.mxu0 %v4951_v13  ;;  %v797_v13 = vld [vmem:[#allocation4 + $0x1b0] sm:$0xff]  ;;  %v888_v20 = vld [vmem:[#allocation4 + $0x1e0] sm:$0xff] }
 0x19c   :  { %v601_v7 = vpop.permute.xlu1 %600  ;;  %v4985_v17 = vpack.c.bf16 %v797_v13, %v795_v12  ;;  %v4993_v34 = vpack.c.bf16 %v890_v29, %v888_v20  ;;  %v163_v13 = vld [vmem:[%s7322_s7 + $0x70] sm:$0xff] }
 0x19d   :  { %4491 = vmatmul.mubr.msk.f32.gmra.mrb[2].mxu0 %vm228_vm5, %v6584_v25  ;;  %v590_v25 = vld [vmem:[#allocation4 + $0x100] sm:$0xff] }
 0x19e   :  { %4954 = vmatpush1.bf16.msra.mxu0 %v4953_v18  ;;  %471 = vmatprep.mubr.f32.mxu0 %v6374_v0  ;;  %v4965_v45 = vpack.c.bf16 %v592_v38, %v590_v25  ;;  %v4987_v18 = vpack.c.bf16 %v887_v16, %v885_v15  ;;  %v983_v25 = vld [vmem:[#allocation4 + $0x210] sm:$0xff]  ;;  %v986_v38 = vld [vmem:[#allocation4 + $0x228] sm:$0xff] }
 0x19f   :  { %4956 = vmatprep.subr.bf16.mxu0 %v4955_v19  ;;  %v884_v19 = vld [vmem:[#allocation4 + $0x1c0] sm:$0xff] }
 0x1a0   :  { %v698_v22 = vpop.permute.xlu1 %697 }
 0x1a1   :  { %4492 = vmatmul.mubr.msk.f32.vlgmr.msra.gmra.mrb[0].mxu0 %vm228_vm5, %v400_v30  ;;  %v982_v30 = vld [vmem:[#allocation4 + $0x208] sm:$0xff] }
 0x1a2   :  { %4958 = vmatpush1.bf16.msra.mxu0 %v4957_v27  ;;  %477 = vmatprep.mubr.f32.mxu0 %v6374_v0  ;;  %v4989_v27 = vpack.c.bf16 %v886_v21, %v884_v19 }
 0x1a3   :  { %4960 = vmatprep.subr.bf16.mxu0 %v4959_v28  ;;  %v4991_v28 = vpack.c.bf16 %v891_v26, %v889_v23 }
 0x1a4   :  { %v895_v48 = vpop.permute.xlu1 %894 }
 0x1a5   :  { %4493 = vmatmul.mubr.msk.f32.gmra.mrb[2].mxu0 %vm228_vm5, %v402_v40  ;;  %v988_v40 = vld [vmem:[#allocation4 + $0x238] sm:$0xff] }
 0x1a6   :  { %4962 = vmatpush1.bf16.msra.mxu0 %v4961_v36  ;;  %573 = vmatprep.mubr.f32.mxu0 %v6374_v0  ;;  %v4995_v36 = vpack.c.bf16 %v984_v33, %v982_v30  ;;  %v4999_v42 = vpack.c.bf16 %v988_v40, %v986_v38 }
 0x1a7   :  { %4964 = vmatprep.subr.bf16.mxu0 %v4963_v37  ;;  %v981_v37 = vld [vmem:[#allocation4 + $0x200] sm:$0xff] }
 0x1a8   :  { %v4997_v41 = vpack.c.bf16 %v983_v25, %v981_v37  ;;  %v992_v51 = vpop.permute.xlu1 %991 }
 0x1a9   :  { %4494 = vmatmul.mubr.msk.f32.vlgmr.msra.gmra.mrb[0].mxu0 %vm228_vm5, %v6582_v24  ;;  %v691_v24 = vld [vmem:[#allocation4 + $0x160] sm:$0xff] }
 0x1aa   :  { %4966 = vmatpush1.bf16.msra.mxu0 %v4965_v45  ;;  %579 = vmatprep.mubr.f32.mxu0 %v6374_v0  ;;  %v4977_v4 = vpack.c.bf16 %v693_v63, %v691_v24  ;;  %v987_v45 = vld [vmem:[#allocation4 + $0x230] sm:$0xff]  ;;  %v176_v63 = vld [vmem:[%s7322_s7 + $0xd8] sm:$0xff] }
 0x1ab   :  { %4968 = vmatprep.subr.bf16.mxu0 %v4967_v46  ;;  %v893_v46 = vpop.permute.xlu0 %892  ;;  %v175_v24 = vld [vmem:[%s7322_s7 + $0xd0] sm:$0xff] }
 0x1ad   :  { %4495 = vmatmul.mubr.msk.f32.gmra.mrb[2].mxu0 %vm228_vm5, %v6593_v31  ;;  %v791_v31 = vld [vmem:[#allocation4 + $0x180] sm:$0xff] }
 0x1ae   :  { %4970 = vmatpush1.bf16.msra.mxu0 %v4969_v53  ;;  %670 = vmatprep.mubr.f32.mxu0 %v6374_v0  ;;  %v4981_v10 = vpack.c.bf16 %v793_v6, %v791_v31  ;;  %v156_v53 = vld [vmem:[%s7322_s7 + $0x38] sm:$0xff]  ;;  %v178_v31 = vld [vmem:[%s7322_s7 + $0xe8] sm:$0xff] }
 0x1af   :  { %4972 = vmatprep.subr.bf16.mxu0 %v4971_v54  ;;  %v6718_v54 = vpack.c.bf16 %v156_v53, %v155_v52 }
 0x1b1   :  { %4496 = vmatmul.mubr.msk.f32.vlgmr.msra.gmra.mrb[0].mxu0 %vm228_vm5, %v599_v1  ;;  %5018 = vmatpush3.bf16.msra.mxu1 %v6718_v54  ;;  %v6745_v1 = vpack.c.bf16 %v176_v63, %v175_v24 }
 0x1b2   :  { %4974 = vmatpush1.bf16.msra.mxu0 %v4973_v61  ;;  %676 = vmatprep.mubr.f32.mxu0 %v6374_v0  ;;  %v158_v61 = vld [vmem:[%s7322_s7 + $0x48] sm:$0xff] }
 0x1b3   :  { %4976 = vmatprep.subr.bf16.mxu0 %v4975_v62  ;;  %v6735_v62 = vpack.c.bf16 %v158_v61, %v157_v60  ;;  %5020 = vmatprep.subr.bf16.mxu1 %v6727_v59 }
 0x1b5   :  { %4497 = vmatmul.mubr.msk.f32.gmra.mrb[2].mxu0 %vm228_vm5, %v601_v7  ;;  %5022 = vmatpush3.bf16.msra.mxu1 %v6735_v62  ;;  %v161_v7 = vld [vmem:[%s7322_s7 + $0x60] sm:$0xff] }
 0x1b6   :  { %4978 = vmatpush1.bf16.msra.mxu0 %v4977_v4  ;;  %767 = vmatprep.mubr.f32.mxu0 %v6374_v0  ;;  %v6753_v4 = vpack.c.bf16 %v160_v3, %v159_v2  ;;  %v6771_v9 = vpack.c.bf16 %v162_v8, %v161_v7 }
 0x1b7   :  { %4980 = vmatprep.subr.bf16.mxu0 %v4979_v5  ;;  %5024 = vmatprep.subr.bf16.mxu1 %v6745_v1  ;;  %v177_v5 = vld [vmem:[%s7322_s7 + $0xe0] sm:$0xff] }
 0x1b8   :  { %v6763_v6 = vpack.c.bf16 %v178_v31, %v177_v5 }
 0x1b9   :  { %4498 = vmatmul.mubr.msk.f32.vlgmr.msra.gmra.mrb[0].mxu0 %vm228_vm5, %v696_v14  ;;  %5026 = vmatpush3.bf16.msra.mxu1 %v6753_v4  ;;  %v164_v14 = vld [vmem:[%s7322_s7 + $0x78] sm:$0xff] }
 0x1ba   :  { %4982 = vmatpush1.bf16.msra.mxu0 %v4981_v10  ;;  %773 = vmatprep.mubr.f32.mxu0 %v6374_v0  ;;  %v179_v10 = vld [vmem:[%s7322_s7 + $0xf0] sm:$0xff]  ;;  %v6789_v15 = vpack.c.bf16 %v164_v14, %v163_v13 }
 0x1bb   :  { %4984 = vmatprep.subr.bf16.mxu0 %v4983_v11  ;;  %5028 = vmatprep.subr.bf16.mxu1 %v6763_v6  ;;  %v180_v11 = vld [vmem:[%s7322_s7 + $0xf8] sm:$0xff]  ;;  %s6379_s7 = smov 32  }
 0x1bc   :  { %v6781_v12 = vpack.c.bf16 %v180_v11, %v179_v10 }
 0x1bd   :  { %4499 = vmatmul.mubr.msk.f32.gmra.mrb[2].mxu0 %vm228_vm5, %v698_v22  ;;  %5030 = vmatpush3.bf16.msra.mxu1 %v6771_v9 }
 0x1be   :  { %4986 = vmatpush1.bf16.msra.mxu0 %v4985_v17  ;;  %867 = vmatprep.mubr.f32.mxu0 %v6374_v0 }
 0x1bf   :  { %4988 = vmatprep.subr.bf16.mxu0 %v4987_v18  ;;  %5032 = vmatprep.subr.bf16.mxu1 %v6781_v12 }
 0x1c1   :  { %4500 = vmatmul.mubr.msk.f32.vlgmr.msra.gmra.mrb[0].mxu0 %vm228_vm5, %v6596_v32  ;;  %v985_v32 = vld [vmem:[#allocation4 + $0x220] sm:$0xff]  ;;  %5034 = vmatpush3.bf16.msra.mxu1 %v6789_v15 }
 0x1c2   :  { %4990 = vmatpush1.bf16.msra.mxu0 %v4989_v27  ;;  %873 = vmatprep.mubr.f32.mxu0 %v6374_v0  ;;  %v5001_v47 = vpack.c.bf16 %v987_v45, %v985_v32 }
 0x1c3   :  { %4992 = vmatprep.subr.bf16.mxu0 %v4991_v28  ;;  %5036 = vmatprep.subr.bf16.mxu1 %v6617_v39 }
 0x1c5   :  { %4501 = vmatmul.mubr.msk.f32.gmra.mrb[2].mxu0 %vm228_vm5, %v6604_v35  ;;  %v990_v35 = vpop.permute.xlu0 %989 }
 0x1c6   :  { %4994 = vmatpush1.bf16.msra.mxu0 %v4993_v34  ;;  %964 = vmatprep.mubr.f32.mxu0 %v6374_v0 }
 0x1c7   :  { %4996 = vmatprep.subr.bf16.mxu0 %v4995_v36 }
 0x1c9   :  { %4502 = vmatmul.mubr.msk.f32.vlgmr.msra.gmra.mrb[0].mxu0 %vm228_vm5, %v893_v46 }
 0x1ca   :  { %4998 = vmatpush1.bf16.msra.mxu0 %v4997_v41  ;;  %970 = vmatprep.mubr.f32.mxu0 %v6374_v0 }
 0x1cb   :  { %5000 = vmatprep.subr.bf16.mxu0 %v4999_v42 }
 0x1cd   :  { %4503 = vmatmul.mubr.msk.f32.gmra.mrb[2].mxu0 %vm228_vm5, %v895_v48 }
 0x1ce   :  { %5002 = vmatpush1.bf16.msra.mxu0 %v5001_v47  ;;  %1061 = vmatprep.mubr.f32.mxu0 %v6374_v0 }
 0x1d1   :  { %4504 = vmatmul.mubr.msk.f32.vlgmr.msra.gmra.mrb[0].mxu0 %vm228_vm5, %v990_v35 }
 0x1d2   :  { %1067 = vmatprep.mubr.f32.mxu0 %v6374_v0 }
 0x1d5   :  { %4505 = vmatmul.mubr.msk.f32.gmra.mrb[2].mxu0 %vm228_vm5, %v992_v51 }
 0x2a4   :  { %v6794_v16 = vpop.f32.mrb[0].mxu0 }
 0x2a5   :  { %v1080_v17 = vrot.slane %v6794_v16, 4  ;;  %v1104_v18 = vmul.f32 %v6794_v16, %v6794_v16  ;;  %v6799_v19 = vpop.f32.mrb[1].mxu0 }
 0x2a6   :  { %v1086_v21 = vrot.slane %v6799_v19, 4  ;;  %v1105_v22 = vmul.f32 %v6799_v19, %v6799_v19 }
 0x2a7   :  { %v1081_v23 = vadd.f32 %v1080_v17, %v6794_v16  ;;  %v1108_v26 = vrot.slane %v1104_v18, 4 }
 0x2a8   :  { %v1087_v27 = vadd.f32 %v1086_v21, %v6799_v19  ;;  %v1114_v28 = vrot.slane %v1105_v22, 4  ;;  %v6806_v20 = vpop.f32.mrb[2].mxu0 }
 0x2a9   :  { %v1082_v29 = vrot.slane %v1081_v23, 2  ;;  %v1109_v30 = vadd.f32 %v1108_v26, %v1104_v18  ;;  %v1092_v33 = vrot.slane %v6806_v20, 4  ;;  %v1106_v34 = vmul.f32 %v6806_v20, %v6806_v20  ;;  %v6811_v36 = vpop.f32.mrb[3].mxu0 }
 0x2aa   :  { %v1088_v37 = vrot.slane %v1087_v27, 2  ;;  %v1115_v25 = vadd.f32 %v1114_v28, %v1105_v22  ;;  %v1098_v38 = vrot.slane %v6811_v36, 4  ;;  %v1107_v40 = vmul.f32 %v6811_v36, %v6811_v36 }
 0x2ab   :  { %v1083_v41 = vadd.f32 %v1082_v29, %v1081_v23  ;;  %v1110_v42 = vrot.slane %v1109_v30, 2  ;;  %v1093_v32 = vadd.f32 %v1092_v33, %v6806_v20  ;;  %v1120_v45 = vrot.slane %v1106_v34, 4 }
 0x2ac   :  { %v1116_v46 = vrot.slane %v1115_v25, 2  ;;  %v1099_v47 = vadd.f32 %v1098_v38, %v6811_v36  ;;  %v1126_v48 = vrot.slane %v1107_v40, 4  ;;  %v1089_v35 = vadd.f32 %v1088_v37, %v1087_v27  ;;  %v181_v38 = vld [vmem:[#allocation15] sm:$0xff] }
 0x2ad   :  { %v1111_v51 = vadd.f32 %v1110_v42, %v1109_v30  ;;  %v1094_v52 = vrot.slane %v1093_v32, 2  ;;  %v1121_v53 = vadd.f32 %v1120_v45, %v1106_v34  ;;  %v1084_v63 = vrot.slane %v1083_v41, 1 }
 0x2ae   :  { %v1100_v57 = vrot.slane %v1099_v47, 2  ;;  %v1127_v58 = vadd.f32 %v1126_v48, %v1107_v40  ;;  %v1117_v60 = vadd.f32 %v1116_v46, %v1115_v25  ;;  %v1090_v3 = vrot.slane %v1089_v35, 1  ;;  %v182_v25 = vld [vmem:[#allocation15 + $0x8] sm:$0xff] }
 0x2af   :  { %v1095_v61 = vadd.f32 %v1094_v52, %v1093_v32  ;;  %v1122_v24 = vrot.slane %v1121_v53, 2  ;;  %v1112_v8 = vrot.slane %v1111_v51, 1  ;;  %v1085_v14 = vadd.f32 %v1084_v63, %v1083_v41  ;;  %v1818_v52 = vld [vmem:[#allocation10 + $0x8] sm:$0xff] }
 0x2b0   :  { %v1128_v2 = vrot.slane %v1127_v58, 2  ;;  %v1101_v5 = vadd.f32 %v1100_v57, %v1099_v47  ;;  %v1118_v11 = vrot.slane %v1117_v60, 1  ;;  %v1091_v21 = vadd.f32 %v1090_v3, %v1089_v35  ;;  %v1817_v57 = vld [vmem:[#allocation10] sm:$0xff] }
 0x2b1   :  { %v1123_v31 = vadd.f32 %v1122_v24, %v1121_v53  ;;  %v1096_v7 = vrot.slane %v1095_v61, 1  ;;  %v1113_v27 = vadd.f32 %v1112_v8, %v1111_v51  ;;  %v1820_v53 = vld [vmem:[#allocation10 + $0x18] sm:$0xff]  ;;  %v1821_v3 = vld [vmem:[#allocation10 + $0x20] sm:$0xff] }
 0x2b2   :  { %v1102_v10 = vrot.slane %v1101_v5, 1  ;;  %v1129_v13 = vadd.f32 %v1128_v2, %v1127_v58  ;;  %v1119_v30 = vadd.f32 %v1118_v11, %v1117_v60  ;;  %v5067_v58 = vpack.c.bf16 %v1820_v53, %v1818_v52  ;;  %v1819_v60 = vld [vmem:[#allocation10 + $0x10] sm:$0xff]  ;;  %v1824_v24 = vld [vmem:[#allocation10 + $0x38] sm:$0xff]  ;;  %v1825_v11 = vld [vmem:[#allocation10 + $0x40] sm:$0xff] }
 0x2b3   :  { %v1097_v17 = vadd.f32 %v1096_v7, %v1095_v61  ;;  %v1124_v18 = vrot.slane %v1123_v31, 1  ;;  %v1822_v61 = vld [vmem:[#allocation10 + $0x28] sm:$0xff]  ;;  %v5069_v63 = vpack.c.bf16 %v1819_v60, %v1817_v57  ;;  %v1828_v7 = vld [vmem:[#allocation10 + $0x58] sm:$0xff]  ;;  %v1845_v57 = vld [vmem:[#allocation10 + $0xe0] sm:$0xff] }
 0x2b4   :  { %v1103_v22 = vadd.f32 %v1102_v10, %v1101_v5  ;;  %v1130_v23 = vrot.slane %v1129_v13, 1  ;;  %v5071_v2 = vpack.c.bf16 %v1824_v24, %v1822_v61  ;;  %v1823_v5 = vld [vmem:[#allocation10 + $0x30] sm:$0xff]  ;;  %v1850_v60 = vld [vmem:[#allocation10 + $0x108] sm:$0xff]  ;;  %v1852_v61 = vld [vmem:[#allocation10 + $0x118] sm:$0xff] }
 0x2b5   :  { %v1137_v26 = vsel %vm1136_vm6, %v1097_v17, %v1085_v14  ;;  %v1125_v28 = vadd.f32 %v1124_v18, %v1123_v31  ;;  %v1826_v31 = vld [vmem:[#allocation10 + $0x48] sm:$0xff]  ;;  %v5073_v8 = vpack.c.bf16 %v1823_v5, %v1821_v3  ;;  %v1832_v17 = vld [vmem:[#allocation10 + $0x78] sm:$0xff]  ;;  %v1851_v3 = vld [vmem:[#allocation10 + $0x110] sm:$0xff] }
 0x2b6   :  { %v1138_v29 = vsel %vm1136_vm6, %v1103_v22, %v1091_v21  ;;  %v1131_v33 = vadd.f32 %v1130_v23, %v1129_v13  ;;  %v5075_v10 = vpack.c.bf16 %v1828_v7, %v1826_v31  ;;  %v1827_v13 = vld [vmem:[#allocation10 + $0x50] sm:$0xff]  ;;  %v1830_v14 = vld [vmem:[#allocation10 + $0x68] sm:$0xff]  ;;  %v1829_v22 = vld [vmem:[#allocation10 + $0x60] sm:$0xff] }
 0x2b7   :  { %1205 = vmatprep.mubr.f32.mxu1 %v1138_v29  ;;  %v1216_v34 = vsel %vm1136_vm6, %v1125_v28, %v1113_v27  ;;  %v5077_v18 = vpack.c.bf16 %v1827_v13, %v1825_v11  ;;  %v5079_v21 = vpack.c.bf16 %v1832_v17, %v1830_v14  ;;  %v1831_v23 = vld [vmem:[#allocation10 + $0x70] sm:$0xff]  ;;  %v1836_v27 = vld [vmem:[#allocation10 + $0x98] sm:$0xff]  ;;  %v1854_v5 = vld [vmem:[#allocation10 + $0x128] sm:$0xff] }
 0x2b8   :  { %1206 = vmatmul.mubr.f32.vlgmr.msra.gmra.mrb[0].mxu1 %v1137_v26  ;;  %v1217_v37 = vsel %vm1136_vm6, %v1131_v33, %v1119_v30  ;;  %v1834_v26 = vld [vmem:[#allocation10 + $0x88] sm:$0xff]  ;;  %v5081_v28 = vpack.c.bf16 %v1831_v23, %v1829_v22  ;;  %v1833_v30 = vld [vmem:[#allocation10 + $0x80] sm:$0xff]  ;;  %v1835_v33 = vld [vmem:[#allocation10 + $0x90] sm:$0xff] }
 0x2b9   :  { %5038 = vmatpush3.bf16.msra.mxu1 %v6628_v43  ;;  %1284 = vmatprep.mubr.f32.mxu1 %v1217_v37  ;;  %v5083_v29 = vpack.c.bf16 %v1836_v27, %v1834_v26  ;;  %v1840_v37 = vld [vmem:[#allocation10 + $0xb8] sm:$0xff]  ;;  %v1855_v11 = vld [vmem:[#allocation10 + $0x130] sm:$0xff]  ;;  %v1858_v13 = vld [vmem:[#allocation10 + $0x148] sm:$0xff] }
 0x2ba   :  { %5040 = vmatprep.subr.bf16.mxu1 %v6630_v44  ;;  %v1856_v31 = vld [vmem:[#allocation10 + $0x138] sm:$0xff]  ;;  %v1859_v22 = vld [vmem:[#allocation10 + $0x150] sm:$0xff]  ;;  %v1862_v23 = vld [vmem:[#allocation10 + $0x168] sm:$0xff] }
 0x2bb   :  { %v1860_v14 = vld [vmem:[#allocation10 + $0x158] sm:$0xff] }
 0x2bc   :  { %v1864_v26 = vld [vmem:[#allocation10 + $0x178] sm:$0xff] }
 0x2bd   :  { %5042 = vmatpush3.bf16.msra.mxu1 %v6646_v49 }
 0x2be   :  { %5044 = vmatprep.subr.bf16.mxu1 %v6649_v50 }
 0x2c1   :  { %5046 = vmatpush3.bf16.msra.mxu1 %v6664_v55 }
 0x2c2   :  { %5048 = vmatprep.subr.bf16.mxu1 %v6667_v56 }
 0x2c5   :  { %5050 = vmatpush3.bf16.msra.mxu1 %v6718_v54 }
 0x2c6   :  { %5052 = vmatprep.subr.bf16.mxu1 %v6727_v59 }
 0x2c9   :  { %5054 = vmatpush3.bf16.msra.mxu1 %v6735_v62 }
 0x2ca   :  { %5056 = vmatprep.subr.bf16.mxu1 %v6745_v1 }
 0x2cd   :  { %5058 = vmatpush3.bf16.msra.mxu1 %v6753_v4 }
 0x2ce   :  { %5060 = vmatprep.subr.bf16.mxu1 %v6763_v6 }
 0x2d1   :  { %5062 = vmatpush3.bf16.msra.mxu1 %v6771_v9 }
 0x2d2   :  { %5064 = vmatprep.subr.bf16.mxu1 %v6781_v12 }
 0x2d5   :  { %5066 = vmatpush3.bf16.msra.mxu1 %v6789_v15 }
 0x2d6   :  { %1297 = vmatprep.subr.mxu1 %v182_v25 }
 0x2d8   :  { %1285 = vmatmul.mubr.f32.vlgmr.msra.gmra.mrb[2].mxu1 %v1216_v34  ;;  %v1838_v34 = vld [vmem:[#allocation10 + $0xa8] sm:$0xff] }
 0x2d9   :  { %1361 = vmatprep.mubr.f32.mxu1 %v6374_v0  ;;  %1298 = vmatpush1.msra.mxu1 %v181_v38 }
 0x2da   :  { %1371 = vmatprep.subr.mxu1 %v182_v25  ;;  %v5085_v25 = vpack.c.bf16 %v1835_v33, %v1833_v30  ;;  %v1863_v30 = vld [vmem:[#allocation10 + $0x170] sm:$0xff]  ;;  %v1866_v33 = vld [vmem:[#allocation10 + $0x188] sm:$0xff] }
 0x38b   :  { %v4543_v40 = vpop.f32.mrb[0].mxu1 }
 0x38c   :  { %v4544_v41 = vpop.f32.mrb[1].mxu1 }
 0x38d   :  { %v4545_v42 = vadd.f32 %v4544_v41, %v4543_v40  ;;  %v1837_v40 = vld [vmem:[#allocation10 + $0xa0] sm:$0xff]  ;;  %v1839_v41 = vld [vmem:[#allocation10 + $0xb0] sm:$0xff] }
 0x38f   :  { %v1211_v32 = vmul.f32 0.00390625, %v4545_v42  ;;  %v1842_v42 = vld [vmem:[#allocation10 + $0xc8] sm:$0xff] }
 0x391   :  { %4506 = vmatmul.mubr.msk.f32.vlgmr.msra.gmra.mrb[4].mxu1 %vm1293_vm7, %v1211_v32  ;;  %v1291_v48 = vmul.f32 %v1211_v32, %v1211_v32  ;;  %v1844_v32 = vld [vmem:[#allocation10 + $0xd8] sm:$0xff] }
 0x392   :  { %1372 = vmatpush1.msra.mxu1 %v181_v38  ;;  %1435 = vmatprep.mubr.f32.mxu1 %v6374_v0  ;;  %v5087_v38 = vpack.c.bf16 %v1840_v37, %v1838_v34  ;;  %v1868_v34 = vld [vmem:[#allocation10 + $0x198] sm:$0xff] }
 0x393   :  { %5068 = vmatprep.subr.bf16.mxu1 %v5067_v58  ;;  %v1847_v58 = vld [vmem:[#allocation10 + $0xf0] sm:$0xff] }
 0x394   :  { %v5097_v24 = vpack.c.bf16 %v1847_v58, %v1845_v57 }
 0x3ab   :  { %v4578_v45 = vpop.f32.mrb[2].mxu1 }
 0x3ac   :  { %v4579_v46 = vpop.f32.mrb[3].mxu1 }
 0x3ad   :  { %v4580_v47 = vadd.f32 %v4579_v46, %v4578_v45  ;;  %v5089_v45 = vpack.c.bf16 %v1839_v41, %v1837_v40  ;;  %v5091_v46 = vpack.c.bf16 %v1844_v32, %v1842_v42  ;;  %v1867_v40 = vld [vmem:[#allocation10 + $0x190] sm:$0xff]  ;;  %v1870_v41 = vld [vmem:[#allocation10 + $0x1a8] sm:$0xff]  ;;  %v1872_v42 = vld [vmem:[#allocation10 + $0x1b8] sm:$0xff] }
 0x3af   :  { %v1290_v35 = vmul.f32 0.00390625, %v4580_v47  ;;  %v1841_v47 = vld [vmem:[#allocation10 + $0xc0] sm:$0xff] }
 0x3b1   :  { %v1292_v51 = vsub.f32 %v1290_v35, %v1291_v48  ;;  %v1843_v48 = vld [vmem:[#allocation10 + $0xd0] sm:$0xff]  ;;  %v1846_v35 = vld [vmem:[#allocation10 + $0xe8] sm:$0xff] }
 0x3b2   :  { %v5093_v52 = vpack.c.bf16 %v1843_v48, %v1841_v47  ;;  %v1871_v47 = vld [vmem:[#allocation10 + $0x1b0] sm:$0xff] }
 0x3b3   :  { %4507 = vmatmul.mubr.msk.f32.vlgmr.msra.gmra.mrb[6].mxu1 %vm1293_vm7, %v1292_v51  ;;  %v1848_v51 = vld [vmem:[#allocation10 + $0xf8] sm:$0xff] }
 0x3b4   :  { %5070 = vmatpush1.bf16.msra.mxu1 %v5069_v63  ;;  %v5095_v53 = vpack.c.bf16 %v1848_v51, %v1846_v35  ;;  %v5099_v63 = vpack.c.bf16 %v1852_v61, %v1850_v60 }
 0x3b5   :  { %5072 = vmatprep.subr.bf16.mxu1 %v5071_v2  ;;  %v1849_v2 = vld [vmem:[#allocation10 + $0x100] sm:$0xff] }
 0x3b6   :  { %v5101_v7 = vpack.c.bf16 %v1851_v3, %v1849_v2  ;;  %v6378_v3 = vmov 1966171168  }
 0x3b8   :  { %5074 = vmatpush1.bf16.msra.mxu1 %v5073_v8  ;;  %v5103_v8 = vpack.c.bf16 %v1856_v31, %v1854_v5  ;;  %v1476_v5 = vunpack.c.l.s4 %v6378_v3 }
 0x3b9   :  { %5076 = vmatprep.subr.bf16.mxu1 %v5075_v10  ;;  %v1853_v10 = vld [vmem:[#allocation10 + $0x120] sm:$0xff] }
 0x3ba   :  { %v5105_v17 = vpack.c.bf16 %v1855_v11, %v1853_v10  ;;  %v1477_v10 = vunpack.c.0.s8 %v1476_v5 }
 0x3bc   :  { %5078 = vmatpush1.bf16.msra.mxu1 %v5077_v18  ;;  %v5107_v18 = vpack.c.bf16 %v1860_v14, %v1858_v13 }
 0x3bd   :  { %5080 = vmatprep.subr.bf16.mxu1 %v5079_v21  ;;  %v1857_v21 = vld [vmem:[#allocation10 + $0x140] sm:$0xff] }
 0x3be   :  { %v5109_v27 = vpack.c.bf16 %v1859_v22, %v1857_v21 }
 0x3c0   :  { %5082 = vmatpush1.bf16.msra.mxu1 %v5081_v28  ;;  %v5111_v28 = vpack.c.bf16 %v1864_v26, %v1862_v23 }
 0x3c1   :  { %5084 = vmatprep.subr.bf16.mxu1 %v5083_v29  ;;  %v1861_v29 = vld [vmem:[#allocation10 + $0x160] sm:$0xff] }
 0x3c2   :  { %v5113_v37 = vpack.c.bf16 %v1863_v30, %v1861_v29 }
 0x3c4   :  { %5086 = vmatpush1.bf16.msra.mxu1 %v5085_v25  ;;  %v5115_v25 = vpack.c.bf16 %v1868_v34, %v1866_v33 }
 0x3c5   :  { %5088 = vmatprep.subr.bf16.mxu1 %v5087_v38  ;;  %v1865_v38 = vld [vmem:[#allocation10 + $0x180] sm:$0xff] }
 0x3c6   :  { %v5117_v32 = vpack.c.bf16 %v1867_v40, %v1865_v38  ;;  %v1876_v38 = vld [vmem:[#allocation10 + $0x1d8] sm:$0xff] }
 0x3c8   :  { %5090 = vmatpush1.bf16.msra.mxu1 %v5089_v45  ;;  %v5119_v45 = vpack.c.bf16 %v1872_v42, %v1870_v41 }
 0x3c9   :  { %5092 = vmatprep.subr.bf16.mxu1 %v5091_v46  ;;  %v1869_v46 = vld [vmem:[#allocation10 + $0x1a0] sm:$0xff] }
 0x3ca   :  { %v5121_v48 = vpack.c.bf16 %v1871_v47, %v1869_v46  ;;  %v1875_v46 = vld [vmem:[#allocation10 + $0x1d0] sm:$0xff] }
 0x3cc   :  { %5094 = vmatpush1.bf16.msra.mxu1 %v5093_v52  ;;  %v1445_v52 = vlaneseq }
 0x3cd   :  { %5096 = vmatprep.subr.bf16.mxu1 %v5095_v53 }
 0x3ce   :  { %v1446_v60 = vshrl.u32 %v1445_v52, 7 }
 0x3d0   :  { %5098 = vmatpush1.bf16.msra.mxu1 %v5097_v24  ;;  %v6847_v24 = vsub.s32 0, %v1446_v60  ;;  %v6849_v2 = vsub.s32 1, %v1446_v60  ;;  %v6855_v22 = vsub.s32 %v1477_v10, %v1446_v60  ;;  %v1878_v60 = vld [vmem:[#allocation10 + $0x1e8] sm:$0xff] }
 0x3d1   :  { %5100 = vmatprep.subr.bf16.mxu1 %v5099_v63  ;;  %v1078_v63 = vld [vmem:[#allocation7] sm:$0x3] }
 0x3d2   :  { %v1448_v31 = vrot.slane %v1078_v63, %v6847_v24 }
 0x3d4   :  { %5102 = vmatpush1.bf16.msra.mxu1 %v5101_v7  ;;  %v1452_v7 = vrot.slane %v1078_v63, %v6849_v2 }
 0x3d5   :  { %5104 = vmatprep.subr.bf16.mxu1 %v5103_v8  ;;  %v1079_v8 = vld [vmem:[#allocation9] sm:$0x3] }
 0x3d6   :  { %v1467_v21 = vrot.slane %v1079_v8, %v6849_v2 }
 0x3d8   :  { %5106 = vmatpush1.bf16.msra.mxu1 %v5105_v17  ;;  %v1463_v17 = vrot.slane %v1079_v8, %v6847_v24 }
 0x3d9   :  { %5108 = vmatprep.subr.bf16.mxu1 %v5107_v18 }
 0x3dc   :  { %5110 = vmatpush1.bf16.msra.mxu1 %v5109_v27 }
 0x3dd   :  { %5112 = vmatprep.subr.bf16.mxu1 %v5111_v28 }
 0x3e0   :  { %5114 = vmatpush1.bf16.msra.mxu1 %v5113_v37 }
 0x3e1   :  { %5116 = vmatprep.subr.bf16.mxu1 %v5115_v25  ;;  %v1874_v25 = vld [vmem:[#allocation10 + $0x1c8] sm:$0xff] }
 0x3e2   :  { %v5123_v47 = vpack.c.bf16 %v1876_v38, %v1874_v25  ;;  %v1947_v38 = vld [vmem:[#allocation10 + $0x410] sm:$0xff] }
 0x3e4   :  { %5118 = vmatpush1.bf16.msra.mxu1 %v5117_v32 }
 0x3e5   :  { %5120 = vmatprep.subr.bf16.mxu1 %v5119_v45  ;;  %v1873_v45 = vld [vmem:[#allocation10 + $0x1c0] sm:$0xff] }
 0x3e8   :  { %5122 = vmatpush1.bf16.msra.mxu1 %v5121_v48  ;;  %v5125_v48 = vpack.c.bf16 %v1875_v46, %v1873_v45  ;;  %v1949_v45 = vld [vmem:[#allocation10 + $0x420] sm:$0xff]  ;;  %v1951_v46 = vld [vmem:[#allocation10 + $0x430] sm:$0xff] }
 0x3e9   :  { %5124 = vmatprep.subr.bf16.mxu1 %v5123_v47  ;;  %v1954_v47 = vld [vmem:[#allocation10 + $0x448] sm:$0xff] }
 0x3ec   :  { %5126 = vmatpush1.bf16.msra.mxu1 %v5125_v48  ;;  %v1956_v48 = vld [vmem:[#allocation10 + $0x458] sm:$0xff] }
 0x464   :  { %v1363_v35 = vpop.f32.mrb[4].mxu1 }
 0x465   :  { %v1365_v51 = vpop.f32.mrb[5].mxu1 }
 0x486   :  { %v1437_v53 = vpop.f32.mrb[6].mxu1 }
 0x487   :  { %v1438_v57 = vadd.f32 1e-05, %v1437_v53  ;;  %v1439_v58 = vpop.f32.mrb[7].mxu1 }
 0x488   :  { %v1440_v61 = vadd.f32 1e-05, %v1439_v58 }
 0x489   :  { %6119 = vrsqrt.f32 %v1438_v57 }
 0x48a   :  { %6121 = vrsqrt.f32 %v1440_v61  ;;  %v1880_v61 = vld [vmem:[#allocation10 + $0x1f8] sm:$0xff] }
 0x493   :  { %v6120_v11 = vpop.eup %6119 }
 0x494   :  { %v6122_v13 = vpop.eup %6121  ;;  %v1455_v14 = vmul.f32 %v6120_v11, %v1448_v31  ;;  %v1877_v31 = vld [vmem:[#allocation10 + $0x1e0] sm:$0xff] }
 0x495   :  { %v1456_v18 = vmul.f32 %v6122_v13, %v1452_v7  ;;  %v1879_v7 = vld [vmem:[#allocation10 + $0x1f0] sm:$0xff] }
 0x496   :  { %v1457_v23 = vmul.f32 %v1455_v14, %v1363_v35  ;;  %v5129_v10 = vpack.c.bf16 %v1879_v7, %v1877_v31  ;;  %v1882_v31 = vld [vmem:[#allocation10 + $0x208] sm:$0xff]  ;;  %v1884_v7 = vld [vmem:[#allocation10 + $0x218] sm:$0xff] }
 0x497   :  { %v1458_v26 = vmul.f32 %v1456_v18, %v1365_v51  ;;  %v1474_v27 = vcombine.low %v1455_v14, %v1456_v18 }
 0x498   :  { %v1470_v28 = vsub.f32 %v1463_v17, %v1457_v23 }
 0x499   :  { %v1471_v29 = vsub.f32 %v1467_v21, %v1458_v26  ;;  %v1481_v30 = vrot.slane %v1474_v27, %v6855_v22 }
 0x49b   :  { %v1489_v33 = vrot.slane %v1481_v30, %v6855_v22  ;;  %v1523_v34 = vcombine.low %v1470_v28, %v1471_v29  ;;  %v1482_v37 = vcombine.high %v1481_v30, %v1481_v30 }
 0x49d   :  { %v1504_v40 = vrot.slane %v1489_v33, %v6849_v2  ;;  %v1530_v41 = vrot.slane %v1523_v34, %v6855_v22  ;;  %v1500_v42 = vrot.slane %v1489_v33, %v6847_v24  ;;  %v1496_v32 = vrot.slane %v1482_v37, %v6855_v22  ;;  %v1946_v33 = vld [vmem:[#allocation10 + $0x408] sm:$0xff]  ;;  %v1948_v34 = vld [vmem:[#allocation10 + $0x418] sm:$0xff]  ;;  %v1945_v37 = vld [vmem:[#allocation10 + $0x400] sm:$0xff] }
 0x49e   :  { %v5195_v25 = vpack.c.bf16 %v1948_v34, %v1946_v33  ;;  %v1974_v33 = vld [vmem:[#allocation10 + $0x4e8] sm:$0xff]  ;;  %v1976_v34 = vld [vmem:[#allocation10 + $0x4f8] sm:$0xff] }
 0x49f   :  { %v1518_v35 = vmul.f32 %v1504_v40, %v6799_v19  ;;  %v1538_v51 = vrot.slane %v1530_v41, %v6855_v22  ;;  %v1517_v52 = vmul.f32 %v1500_v42, %v6794_v16  ;;  %v1512_v53 = vrot.slane %v1496_v32, %v6849_v2  ;;  %v1950_v40 = vld [vmem:[#allocation10 + $0x428] sm:$0xff] }
 0x4a0   :  { %v1531_v57 = vcombine.high %v1530_v41, %v1530_v41  ;;  %v1508_v58 = vrot.slane %v1496_v32, %v6847_v24  ;;  %v5127_v19 = vpack.c.bf16 %v1880_v61, %v1878_v60  ;;  %v1952_v41 = vld [vmem:[#allocation10 + $0x438] sm:$0xff]  ;;  %v5197_v42 = vpack.c.bf16 %v1947_v38, %v1945_v37  ;;  %5196 = vmatprep.subr.bf16.mxu0 %v5195_v25  ;;  %v1973_v38 = vld [vmem:[#allocation10 + $0x4e0] sm:$0xff] }
 0x4a1   :  { %v1553_v63 = vrot.slane %v1538_v51, %v6849_v2  ;;  %v1549_v3 = vrot.slane %v1538_v51, %v6847_v24  ;;  %v1520_v5 = vmul.f32 %v1512_v53, %v6811_v36  ;;  %v5199_v32 = vpack.c.bf16 %v1952_v41, %v1950_v40  ;;  %v1955_v53 = vld [vmem:[#allocation10 + $0x450] sm:$0xff]  ;;  %v1978_v41 = vld [vmem:[#allocation10 + $0x508] sm:$0xff] }
 0x4a2   :  { %v1545_v16 = vrot.slane %v1531_v57, %v6855_v22  ;;  %v1519_v8 = vmul.f32 %v1508_v58, %v6806_v20  ;;  %5128 = vmatprep.subr.bf16.mxu1 %v5127_v19  ;;  %5198 = vmatpush1.bf16.msra.mxu0 %v5197_v42  ;;  %v5203_v51 = vpack.c.bf16 %v1956_v48, %v1954_v47  ;;  %v1958_v57 = vld [vmem:[#allocation10 + $0x468] sm:$0xff]  ;;  %v1960_v58 = vld [vmem:[#allocation10 + $0x478] sm:$0xff]  ;;  %v1975_v40 = vld [vmem:[#allocation10 + $0x4f0] sm:$0xff] }
 0x4a3   :  { %v1567_v11 = vadd.f32 %v1553_v63, %v1518_v35  ;;  %v1566_v13 = vadd.f32 %v1549_v3, %v1517_v52  ;;  %5130 = vmatpush1.bf16.msra.mxu1 %v5129_v10  ;;  %v5201_v35 = vpack.c.bf16 %v1951_v46, %v1949_v45  ;;  %5200 = vmatprep.subr.bf16.mxu0 %v5199_v32  ;;  %v1953_v52 = vld [vmem:[#allocation10 + $0x440] sm:$0xff]  ;;  %v1959_v3 = vld [vmem:[#allocation10 + $0x470] sm:$0xff]  ;;  %v1964_v19 = vld [vmem:[#allocation10 + $0x498] sm:$0xff] }
 0x4a4   :  { %v1561_v14 = vrot.slane %v1545_v16, %v6849_v2  ;;  %v1557_v17 = vrot.slane %v1545_v16, %v6847_v24  ;;  %v5205_v60 = vpack.c.bf16 %v1955_v53, %v1953_v52  ;;  %v5207_v61 = vpack.c.bf16 %v1960_v58, %v1958_v57  ;;  %v1957_v63 = vld [vmem:[#allocation10 + $0x460] sm:$0xff]  ;;  %v1980_v42 = vld [vmem:[#allocation10 + $0x518] sm:$0xff]  ;;  %v1979_v47 = vld [vmem:[#allocation10 + $0x510] sm:$0xff] }
 0x4a5   :  { %v1571_v18 = vmax.f32 %v1567_v11, 0.0  ;;  %v1570_v21 = vmax.f32 %v1566_v13, 0.0  ;;  %v5131_v16 = vpack.c.bf16 %v1884_v7, %v1882_v31  ;;  %v1961_v11 = vld [vmem:[#allocation10 + $0x480] sm:$0xff]  ;;  %v1963_v13 = vld [vmem:[#allocation10 + $0x490] sm:$0xff]  ;;  %v5223_v25 = vpack.c.bf16 %v1976_v34, %v1974_v33  ;;  %v1982_v48 = vld [vmem:[#allocation10 + $0x528] sm:$0xff] }
 0x4a6   :  { %v1569_v36 = vadd.f32 %v1561_v14, %v1520_v5  ;;  %v1568_v23 = vadd.f32 %v1557_v17, %v1519_v8  ;;  %5202 = vmatpush1.bf16.msra.mxu0 %v5201_v35  ;;  %v1962_v5 = vld [vmem:[#allocation10 + $0x488] sm:$0xff]  ;;  %v5209_v8 = vpack.c.bf16 %v1959_v3, %v1957_v63  ;;  %v1968_v17 = vld [vmem:[#allocation10 + $0x4b8] sm:$0xff]  ;;  %v5225_v32 = vpack.c.bf16 %v1975_v40, %v1973_v38  ;;  %v1977_v46 = vld [vmem:[#allocation10 + $0x500] sm:$0xff] }
 0x4a7   :  { %v1593_v26 = vrot.slane %v1571_v18, 7  ;;  %v1592_v27 = vrot.slane %v1570_v21, 7  ;;  %5204 = vmatprep.subr.bf16.mxu0 %v5203_v51  ;;  %v5211_v10 = vpack.c.bf16 %v1964_v19, %v1962_v5  ;;  %5132 = vmatprep.subr.bf16.mxu1 %v5131_v16  ;;  %v1966_v14 = vld [vmem:[#allocation10 + $0x4a8] sm:$0xff]  ;;  %v5213_v18 = vpack.c.bf16 %v1963_v13, %v1961_v11  ;;  %v1984_v35 = vld [vmem:[#allocation10 + $0x538] sm:$0xff]  ;;  %v1981_v53 = vld [vmem:[#allocation10 + $0x520] sm:$0xff] }
 0x4a8   :  { %v1573_v28 = vmax.f32 %v1569_v36, 0.0  ;;  %v1572_v29 = vmax.f32 %v1568_v23, 0.0  ;;  %v5215_v21 = vpack.c.bf16 %v1968_v17, %v1966_v14  ;;  %v1965_v36 = vld [vmem:[#allocation10 + $0x4a0] sm:$0xff]  ;;  %v1967_v23 = vld [vmem:[#allocation10 + $0x4b0] sm:$0xff]  ;;  %v5227_v45 = vpack.c.bf16 %v1980_v42, %v1978_v41  ;;  %v1986_v58 = vld [vmem:[#allocation10 + $0x548] sm:$0xff] }
 0x4a9   :  { %1598 = vrot.lane.b32.xlu1 %v1593_v26, %s6379_s7  ;;  %1596 = vrot.lane.b32.xlu0 %v1592_v27, %s6379_s7  ;;  %v1970_v26 = vld [vmem:[#allocation10 + $0x4c8] sm:$0xff]  ;;  %v1972_v27 = vld [vmem:[#allocation10 + $0x4d8] sm:$0xff]  ;;  %v5229_v51 = vpack.c.bf16 %v1979_v47, %v1977_v46  ;;  %v5231_v52 = vpack.c.bf16 %v1984_v35, %v1982_v48  ;;  %v1983_v57 = vld [vmem:[#allocation10 + $0x530] sm:$0xff] }
 0x4aa   :  { %v1595_v20 = vrot.slane %v1573_v28, 7  ;;  %v1594_v30 = vrot.slane %v1572_v29, 7  ;;  %5206 = vmatpush1.bf16.msra.mxu0 %v5205_v60  ;;  %v5217_v28 = vpack.c.bf16 %v1967_v23, %v1965_v36  ;;  %v5219_v29 = vpack.c.bf16 %v1972_v27, %v1970_v26  ;;  %v1988_v60 = vld [vmem:[#allocation10 + $0x558] sm:$0xff]  ;;  %v1985_v3 = vld [vmem:[#allocation10 + $0x540] sm:$0xff]  ;;  %v1987_v5 = vld [vmem:[#allocation10 + $0x550] sm:$0xff] }
 0x4ab   :  { %5208 = vmatprep.subr.bf16.mxu0 %v5207_v61  ;;  %v5233_v61 = vpack.c.bf16 %v1983_v57, %v1981_v53  ;;  %v5235_v63 = vpack.c.bf16 %v1988_v60, %v1986_v58  ;;  %v1990_v19 = vld [vmem:[#allocation10 + $0x568] sm:$0xff]  ;;  %v1992_v31 = vld [vmem:[#allocation10 + $0x578] sm:$0xff]  ;;  %v5237_v7 = vpack.c.bf16 %v1987_v5, %v1985_v3  ;;  %v2007_v47 = vld [vmem:[#allocation10 + $0x5f0] sm:$0xff] }
 0x4ac   :  { %v5239_v16 = vpack.c.bf16 %v1992_v31, %v1990_v19  ;;  %v1994_v11 = vld [vmem:[#allocation10 + $0x588] sm:$0xff]  ;;  %v1996_v13 = vld [vmem:[#allocation10 + $0x598] sm:$0xff]  ;;  %v1885_v19 = vld [vmem:[#allocation10 + $0x220] sm:$0xff] }
 0x4ad   :  { %1602 = vrot.lane.b32.xlu1 %v1595_v20, %s6379_s7  ;;  %1600 = vrot.lane.b32.xlu0 %v1594_v30, %s6379_s7  ;;  %v1969_v20 = vld [vmem:[#allocation10 + $0x4c0] sm:$0xff]  ;;  %v1971_v30 = vld [vmem:[#allocation10 + $0x4d0] sm:$0xff]  ;;  %v5243_v17 = vpack.c.bf16 %v1996_v13, %v1994_v11  ;;  %v1998_v36 = vld [vmem:[#allocation10 + $0x5a8] sm:$0xff] }
 0x4ae   :  { %5210 = vmatpush1.bf16.msra.mxu0 %v5209_v8  ;;  %v5221_v37 = vpack.c.bf16 %v1971_v30, %v1969_v20  ;;  %v1989_v8 = vld [vmem:[#allocation10 + $0x560] sm:$0xff]  ;;  %v2000_v23 = vld [vmem:[#allocation10 + $0x5b8] sm:$0xff]  ;;  %v2002_v20 = vld [vmem:[#allocation10 + $0x5c8] sm:$0xff] }
 0x4af   :  { %5212 = vmatprep.subr.bf16.mxu0 %v5211_v10  ;;  %v1991_v10 = vld [vmem:[#allocation10 + $0x570] sm:$0xff]  ;;  %v5247_v27 = vpack.c.bf16 %v2000_v23, %v1998_v36  ;;  %v2004_v30 = vld [vmem:[#allocation10 + $0x5d8] sm:$0xff]  ;;  %v2006_v40 = vld [vmem:[#allocation10 + $0x5e8] sm:$0xff] }
 0x4b0   :  { %v5241_v14 = vpack.c.bf16 %v1991_v10, %v1989_v8  ;;  %v5251_v34 = vpack.c.bf16 %v2004_v30, %v2002_v20  ;;  %v2008_v41 = vld [vmem:[#allocation10 + $0x5f8] sm:$0xff]  ;;  %v1886_v3 = vld [vmem:[#allocation10 + $0x228] sm:$0xff]  ;;  %v1887_v31 = vld [vmem:[#allocation10 + $0x230] sm:$0xff] }
 0x4b1   :  { %v5255_v42 = vpack.c.bf16 %v2008_v41, %v2006_v40  ;;  %v1888_v5 = vld [vmem:[#allocation10 + $0x238] sm:$0xff]  ;;  %v1890_v10 = vld [vmem:[#allocation10 + $0x248] sm:$0xff] }
 0x4b2   :  { %5214 = vmatpush1.bf16.msra.mxu0 %v5213_v18  ;;  %v1993_v18 = vld [vmem:[#allocation10 + $0x580] sm:$0xff] }
 0x4b3   :  { %5216 = vmatprep.subr.bf16.mxu0 %v5215_v21  ;;  %v1995_v21 = vld [vmem:[#allocation10 + $0x590] sm:$0xff] }
 0x4b4   :  { %v5245_v26 = vpack.c.bf16 %v1995_v21, %v1993_v18 }
 0x4b6   :  { %5218 = vmatpush1.bf16.msra.mxu0 %v5217_v28  ;;  %v1997_v28 = vld [vmem:[#allocation10 + $0x5a0] sm:$0xff] }
 0x4b7   :  { %5220 = vmatprep.subr.bf16.mxu0 %v5219_v29  ;;  %v1999_v29 = vld [vmem:[#allocation10 + $0x5b0] sm:$0xff] }
 0x4b8   :  { %v5249_v33 = vpack.c.bf16 %v1999_v29, %v1997_v28  ;;  %v1889_v29 = vld [vmem:[#allocation10 + $0x240] sm:$0xff] }
 0x4ba   :  { %5222 = vmatpush1.bf16.msra.mxu0 %v5221_v37  ;;  %v2001_v37 = vld [vmem:[#allocation10 + $0x5c0] sm:$0xff] }
 0x4bb   :  { %5224 = vmatprep.subr.bf16.mxu0 %v5223_v25  ;;  %v2003_v25 = vld [vmem:[#allocation10 + $0x5d0] sm:$0xff] }
 0x4bc   :  { %v5253_v38 = vpack.c.bf16 %v2003_v25, %v2001_v37  ;;  %v5137_v37 = vpack.c.bf16 %v1887_v31, %v1885_v19  ;;  %v1891_v25 = vld [vmem:[#allocation10 + $0x250] sm:$0xff] }
 0x4bd   :  { %v1895_v19 = vld [vmem:[#allocation10 + $0x270] sm:$0xff] }
 0x4be   :  { %5226 = vmatpush1.bf16.msra.mxu0 %v5225_v32  ;;  %v2005_v32 = vld [vmem:[#allocation10 + $0x5e0] sm:$0xff] }
 0x4bf   :  { %5228 = vmatprep.subr.bf16.mxu0 %v5227_v45  ;;  %v5257_v35 = vpack.c.bf16 %v2007_v47, %v2005_v32 }
 0x4c2   :  { %5230 = vmatpush1.bf16.msra.mxu0 %v5229_v51  ;;  %v2010_v51 = vld [vmem:[#allocation10 + $0x608] sm:$0xff] }
 0x4c3   :  { %5232 = vmatprep.subr.bf16.mxu0 %v5231_v52  ;;  %v2012_v52 = vld [vmem:[#allocation10 + $0x618] sm:$0xff] }
 0x4c4   :  { %v5259_v53 = vpack.c.bf16 %v2012_v52, %v2010_v51 }
 0x4c6   :  { %5234 = vmatpush1.bf16.msra.mxu0 %v5233_v61  ;;  %v1881_v61 = vld [vmem:[#allocation10 + $0x200] sm:$0xff] }
 0x4c7   :  { %5236 = vmatprep.subr.bf16.mxu0 %v5235_v63  ;;  %v1883_v63 = vld [vmem:[#allocation10 + $0x210] sm:$0xff] }
 0x4c8   :  { %v5133_v8 = vpack.c.bf16 %v1883_v63, %v1881_v61  ;;  %v5141_v63 = vpack.c.bf16 %v1891_v25, %v1889_v29  ;;  %v1903_v25 = vld [vmem:[#allocation10 + $0x2b0] sm:$0xff] }
 0x4ca   :  { %5238 = vmatpush1.bf16.msra.mxu0 %v5237_v7 }
 0x4cb   :  { %5240 = vmatprep.subr.bf16.mxu0 %v5239_v16 }
 0x4ce   :  { %5242 = vmatpush1.bf16.msra.mxu0 %v5241_v14 }
 0x4cf   :  { %5244 = vmatprep.subr.bf16.mxu0 %v5243_v17  ;;  %v5135_v17 = vpack.c.bf16 %v1888_v5, %v1886_v3  ;;  %v1893_v5 = vld [vmem:[#allocation10 + $0x260] sm:$0xff] }
 0x4d2   :  { %5246 = vmatpush1.bf16.msra.mxu0 %v5245_v26 }
 0x4d3   :  { %5248 = vmatprep.subr.bf16.mxu0 %v5247_v27  ;;  %v1892_v27 = vld [vmem:[#allocation10 + $0x258] sm:$0xff] }
 0x4d6   :  { %5250 = vmatpush1.bf16.msra.mxu0 %v5249_v33 }
 0x4d7   :  { %5252 = vmatprep.subr.bf16.mxu0 %v5251_v34 }
 0x4da   :  { %5254 = vmatpush1.bf16.msra.mxu0 %v5253_v38 }
 0x4db   :  { %5256 = vmatprep.subr.bf16.mxu0 %v5255_v42  ;;  %v5139_v42 = vpack.c.bf16 %v1892_v27, %v1890_v10  ;;  %v1900_v10 = vld [vmem:[#allocation10 + $0x298] sm:$0xff]  ;;  %v1897_v27 = vld [vmem:[#allocation10 + $0x280] sm:$0xff] }
 0x4de   :  { %5258 = vmatpush1.bf16.msra.mxu0 %v5257_v35  ;;  %v1896_v35 = vld [vmem:[#allocation10 + $0x278] sm:$0xff] }
 0x4df   :  { %5260 = vmatprep.subr.bf16.mxu0 %v5259_v53 }
 0x51b   :  { %v1599_v45 = vpop.permute.xlu1 %1598  ;;  %v1597_v46 = vpop.permute.xlu0 %1596 }
 0x51c   :  { %1616 = vst.msk [vmem:[#allocation3 + $0x10] sm:$0xfe] %vm1615_vm10, %v1599_v45  ;;  %v1604_v48 = vsel %vm228_vm5, %v1597_v46, %v1599_v45 }
 0x51d   :  { %1621 = vst.msk [vmem:[#allocation3 + $0x28] sm:$0x1] %vm1620_vm11, %v1599_v45  ;;  %1614 = vst [vmem:[#allocation3 + $0x8] sm:$0xfe] %v1604_v48 }
 0x51e   :  { %1613 = vst.msk [vmem:[#allocation3] sm:$0xfe] %vm1612_vm12, %v1597_v46  ;;  %1619 = vst [vmem:[#allocation3 + $0x20] sm:$0x1] %v1604_v48  ;;  %v1894_v48 = vld [vmem:[#allocation10 + $0x268] sm:$0xff] }
 0x51f   :  { %1618 = vst.msk [vmem:[#allocation3 + $0x18] sm:$0x1] %vm1617_vm13, %v1597_v46  ;;  %v1603_v57 = vpop.permute.xlu1 %1602  ;;  %v1601_v58 = vpop.permute.xlu0 %1600  ;;  %v5143_v3 = vpack.c.bf16 %v1896_v35, %v1894_v48  ;;  %v1906_v35 = vld [vmem:[#allocation10 + $0x2c8] sm:$0xff] }
 0x520   :  { %1624 = vst.msk [vmem:[#allocation3 + $0x40] sm:$0xfe] %vm1615_vm10, %v1603_v57  ;;  %v1605_v60 = vsel %vm228_vm5, %v1601_v58, %v1603_v57 }
 0x521   :  { %1627 = vst.msk [vmem:[#allocation3 + $0x58] sm:$0x1] %vm1620_vm11, %v1603_v57  ;;  %1623 = vst [vmem:[#allocation3 + $0x38] sm:$0xfe] %v1605_v60 }
 0x522   :  { %1622 = vst.msk [vmem:[#allocation3 + $0x30] sm:$0xfe] %vm1612_vm12, %v1601_v58  ;;  %1626 = vst [vmem:[#allocation3 + $0x50] sm:$0x1] %v1605_v60 }
 0x523   :  { %1625 = vst.msk [vmem:[#allocation3 + $0x48] sm:$0x1] %vm1617_vm13, %v1601_v58  ;;  %v6887_v16 = vld [vmem:[#allocation3 + $0x10] sm:$0xff] }
 0x524   :  { %v6891_v11 = vld [vmem:[#allocation3 + $0x8] sm:$0xff]  ;;  %v1709_v26 = vrot.slane %v6887_v16, 1 }
 0x525   :  { %v6885_v7 = vld [vmem:[#allocation3] sm:$0xff]  ;;  %2457 = vmatprep.mubr.f32.mxu1 %v6891_v11  ;;  %v6049_v18 = vpack.i.bf16 %v6887_v16, %v6891_v11  ;;  %v6900_v21 = vld [vmem:[#allocation3 + $0x28] sm:$0x3]  ;;  %v1694_v36 = vrot.slane %v6891_v11, 1 }
 0x526   :  { %1667 = vrot.lane.b32.xlu1 %v6885_v7, %s6380_s28  ;;  %v6893_v13 = vld [vmem:[#allocation3 + $0x18] sm:$0x3]  ;;  %v6895_v14 = vld [vmem:[#allocation3 + $0x20] sm:$0x3]  ;;  %2458 = vmatmul.mubr.f32.vlgmr.msra.gmra.mrb[8].mxu1 %v6885_v7  ;;  %v1710_v28 = vrot.slane %v6900_v21, 1  ;;  %v1691_v33 = vrot.slane %v6885_v7, 1 }
 0x527   :  { %v1695_v23 = vrot.slane %v6895_v14, 1  ;;  %6050 = vrot.lane.b32.xlu0 %v6049_v18, %s6380_s28  ;;  %v6910_v30 = vld [vmem:[#allocation3 + $0x40] sm:$0xff]  ;;  %v1692_v34 = vrot.slane %v6893_v13, 1  ;;  %5134 = vmatpush1.bf16.msra.mxu1 %v5133_v8  ;;  %v1898_v8 = vld [vmem:[#allocation10 + $0x288] sm:$0xff] }
 0x528   :  { %v6916_v38 = vld [vmem:[#allocation3 + $0x38] sm:$0xff]  ;;  %5136 = vmatprep.subr.bf16.mxu1 %v5135_v17  ;;  %v1711_v46 = vsel %vm490_vm3, %v1709_v26, %v1710_v28  ;;  %v1712_v53 = vrot.slane %v6910_v30, 1  ;;  %v5147_v26 = vpack.c.bf16 %v1900_v10, %v1898_v8  ;;  %v1910_v10 = vld [vmem:[#allocation10 + $0x2e8] sm:$0xff] }
 0x529   :  { %v6908_v20 = vld [vmem:[#allocation3 + $0x30] sm:$0xff]  ;;  %2463 = vmatprep.mubr.f32.mxu1 %v6916_v38  ;;  %v6925_v32 = vpack.i.bf16 %v6910_v30, %v6916_v38  ;;  %v6928_v45 = vsel %vm490_vm3, %v1694_v36, %v1695_v23  ;;  %v6931_v47 = vld [vmem:[#allocation3 + $0x58] sm:$0x3]  ;;  %v1700_v51 = vrot.slane %v6916_v38, 1  ;;  %v6941_v58 = vsel %vm490_vm3, %v1691_v33, %v1692_v34  ;;  %v1904_v34 = vld [vmem:[#allocation10 + $0x2b8] sm:$0xff] }
 0x52a   :  { %1673 = vrot.lane.b32.xlu1 %v6908_v20, %s6380_s28  ;;  %v6918_v40 = vld [vmem:[#allocation3 + $0x48] sm:$0x3]  ;;  %v6920_v41 = vld [vmem:[#allocation3 + $0x50] sm:$0x3]  ;;  %2464 = vmatmul.mubr.f32.gmra.mrb[10].mxu1 %v6908_v20  ;;  %v1713_v57 = vrot.slane %v6931_v47, 1  ;;  %v1697_v60 = vrot.slane %v6908_v20, 1  ;;  %v6059_v31 = vpack.i.bf16 %v1711_v46, %v6928_v45  ;;  %v5145_v23 = vpack.c.bf16 %v1895_v19, %v1893_v5 }
 0x52b   :  { %v1701_v52 = vrot.slane %v6920_v41, 1  ;;  %6055 = vrot.lane.b32.xlu0 %v6925_v32, %s6380_s28  ;;  %v1698_v61 = vrot.slane %v6918_v40, 1  ;;  %5138 = vmatpush1.bf16.msra.mxu1 %v5137_v37  ;;  %v1899_v28 = vld [vmem:[#allocation10 + $0x290] sm:$0xff]  ;;  %v1902_v33 = vld [vmem:[#allocation10 + $0x2a8] sm:$0xff]  ;;  %v1901_v37 = vld [vmem:[#allocation10 + $0x2a0] sm:$0xff]  ;;  %v1761_v5 = vrot.slane %v6908_v20, 2 }
 0x52c   :  { %5140 = vmatprep.subr.bf16.mxu1 %v5139_v42  ;;  %v1714_v18 = vsel %vm490_vm3, %v1712_v53, %v1713_v57  ;;  %v5149_v42 = vpack.c.bf16 %v1899_v28, %v1897_v27  ;;  %v5151_v46 = vpack.c.bf16 %v1904_v34, %v1902_v33  ;;  %v5153_v48 = vpack.c.bf16 %v1903_v25, %v1901_v37  ;;  %v1905_v19 = vld [vmem:[#allocation10 + $0x2c0] sm:$0xff]  ;;  %v1907_v8 = vld [vmem:[#allocation10 + $0x2d0] sm:$0xff]  ;;  %v1916_v37 = vld [vmem:[#allocation10 + $0x318] sm:$0xff] }
 0x52d   :  { %v6949_v17 = vsel %vm490_vm3, %v1700_v51, %v1701_v52  ;;  %v6954_v36 = vsel %vm490_vm3, %v1697_v60, %v1698_v61  ;;  %v1908_v51 = vld [vmem:[#allocation10 + $0x2d8] sm:$0xff]  ;;  %v1758_v52 = vrot.slane %v6891_v11, 2  ;;  %v1759_v53 = vrot.slane %v6895_v14, 2  ;;  %v1909_v27 = vld [vmem:[#allocation10 + $0x2e0] sm:$0xff]  ;;  %v1911_v28 = vld [vmem:[#allocation10 + $0x2f0] sm:$0xff] }
 0x52e   :  { %1715 = vrot.lane.b32.xlu1 %v6941_v58, %s6381_s5  ;;  %v6064_v29 = vpack.i.bf16 %v1714_v18, %v6949_v17  ;;  %v1771_v57 = vrot.slane %v6887_v16, 2  ;;  %v1772_v60 = vrot.slane %v6900_v21, 2  ;;  %v1762_v61 = vrot.slane %v6918_v40, 2  ;;  %v1912_v21 = vld [vmem:[#allocation10 + $0x2f8] sm:$0xff] }
 0x52f   :  { %6060 = vrot.lane.b32.xlu0 %v6059_v31, %s6381_s5  ;;  %5142 = vmatpush1.bf16.msra.mxu1 %v5141_v63  ;;  %v1755_v63 = vrot.slane %v6885_v7, 2  ;;  %v5155_v14 = vpack.c.bf16 %v1908_v51, %v1906_v35  ;;  %v6974_v40 = vsel %vm784_vm4, %v1758_v52, %v1759_v53  ;;  %v1764_v34 = vrot.slane %v6916_v38, 2  ;;  %v1913_v38 = vld [vmem:[#allocation10 + $0x300] sm:$0xff]  ;;  %v1915_v52 = vld [vmem:[#allocation10 + $0x310] sm:$0xff] }
 0x530   :  { %5144 = vmatprep.subr.bf16.mxu1 %v5143_v3  ;;  %v1756_v3 = vrot.slane %v6893_v13, 2  ;;  %v6982_v18 = vsel %vm784_vm4, %v1761_v5, %v1762_v61  ;;  %v5161_v35 = vpack.c.bf16 %v1911_v28, %v1909_v27  ;;  %v6089_v53 = vpack.i.bf16 %v6885_v7, %v6887_v16  ;;  %v1917_v61 = vld [vmem:[#allocation10 + $0x320] sm:$0xff]  ;;  %v1922_v7 = vld [vmem:[#allocation10 + $0x348] sm:$0xff]  ;;  %v1924_v16 = vld [vmem:[#allocation10 + $0x358] sm:$0xff] }
 0x531   :  { %v6084_v25 = vpack.i.bf16 %v6891_v11, %v6982_v18  ;;  %v1918_v11 = vld [vmem:[#allocation10 + $0x328] sm:$0xff]  ;;  %v1925_v27 = vld [vmem:[#allocation10 + $0x360] sm:$0xff] }
 0x532   :  { %1721 = vrot.lane.b32.xlu1 %v6954_v36, %s6381_s5  ;;  %v6979_v13 = vsel %vm784_vm4, %v1755_v63, %v1756_v3  ;;  %v1919_v63 = vld [vmem:[#allocation10 + $0x330] sm:$0xff] }
 0x533   :  { %6065 = vrot.lane.b32.xlu0 %v6064_v29, %s6381_s5  ;;  %5146 = vmatpush1.bf16.msra.mxu1 %v5145_v23  ;;  %v5157_v23 = vpack.c.bf16 %v1907_v8, %v1905_v19  ;;  %v5169_v5 = vpack.c.bf16 %v1919_v63, %v1917_v61  ;;  %v1921_v19 = vld [vmem:[#allocation10 + $0x340] sm:$0xff]  ;;  %v1923_v8 = vld [vmem:[#allocation10 + $0x350] sm:$0xff]  ;;  %v1944_v61 = vld [vmem:[#allocation10 + $0x3f8] sm:$0xff] }
 0x534   :  { %5148 = vmatprep.subr.bf16.mxu1 %v5147_v26  ;;  %v5159_v26 = vpack.c.bf16 %v1912_v21, %v1910_v10  ;;  %v1926_v21 = vld [vmem:[#allocation10 + $0x368] sm:$0xff] }
 0x536   :  { %1735 = vrot.lane.b32.xlu1 %v6941_v58, %s6380_s28 }
 0x537   :  { %6070 = vrot.lane.b32.xlu0 %v6059_v31, %s6380_s28  ;;  %5150 = vmatpush1.bf16.msra.mxu1 %v5149_v42  ;;  %v1773_v31 = vsel %vm784_vm4, %v1771_v57, %v1772_v60  ;;  %v1765_v42 = vrot.slane %v6920_v41, 2  ;;  %v1920_v57 = vld [vmem:[#allocation10 + $0x338] sm:$0xff] }
 0x538   :  { %5152 = vmatprep.subr.bf16.mxu1 %v5151_v46  ;;  %v6079_v33 = vpack.i.bf16 %v1773_v31, %v6974_v40  ;;  %v1774_v46 = vrot.slane %v6910_v30, 2  ;;  %v5167_v60 = vpack.c.bf16 %v1920_v57, %v1918_v11  ;;  %v1928_v31 = vld [vmem:[#allocation10 + $0x378] sm:$0xff] }
 0x539   :  { %v6998_v41 = vsel %vm784_vm4, %v1764_v34, %v1765_v42  ;;  %v1932_v34 = vld [vmem:[#allocation10 + $0x398] sm:$0xff]  ;;  %v1931_v42 = vld [vmem:[#allocation10 + $0x390] sm:$0xff] }
 0x53a   :  { %1741 = vrot.lane.b32.xlu1 %v6954_v36, %s6380_s28  ;;  %v6109_v10 = vpack.i.bf16 %v6998_v41, %v6979_v13 }
 0x53b   :  { %6075 = vrot.lane.b32.xlu0 %v6064_v29, %s6380_s28  ;;  %5154 = vmatpush1.bf16.msra.mxu1 %v5153_v48  ;;  %v1914_v29 = vld [vmem:[#allocation10 + $0x308] sm:$0xff]  ;;  %v1775_v48 = vrot.slane %v6931_v47, 2  ;;  %v5165_v47 = vpack.c.bf16 %v1915_v52, %v1913_v38  ;;  %v1935_v38 = vld [vmem:[#allocation10 + $0x3b0] sm:$0xff] }
 0x53c   :  { %5156 = vmatprep.subr.bf16.mxu1 %v5155_v14  ;;  %v5163_v51 = vpack.c.bf16 %v1916_v37, %v1914_v29  ;;  %v5171_v14 = vpack.c.bf16 %v1924_v16, %v1922_v7  ;;  %v1938_v52 = vld [vmem:[#allocation10 + $0x3c8] sm:$0xff]  ;;  %v1941_v7 = vld [vmem:[#allocation10 + $0x3e0] sm:$0xff]  ;;  %v1943_v16 = vld [vmem:[#allocation10 + $0x3f0] sm:$0xff] }
 0x53d   :  { %v1776_v30 = vsel %vm784_vm4, %v1774_v46, %v1775_v48  ;;  %v1934_v46 = vld [vmem:[#allocation10 + $0x3a8] sm:$0xff]  ;;  %v1936_v48 = vld [vmem:[#allocation10 + $0x3b8] sm:$0xff] }
 0x53e   :  { %1777 = vrot.lane.b32.xlu1 %v6979_v13, %s6381_s5  ;;  %v6104_v3 = vpack.i.bf16 %v1776_v30, %v6998_v41  ;;  %v6114_v28 = vpack.i.bf16 %v6982_v18, %v1776_v30  ;;  %v1937_v30 = vld [vmem:[#allocation10 + $0x3c0] sm:$0xff] }
 0x53f   :  { %6080 = vrot.lane.b32.xlu0 %v6079_v33, %s6381_s5  ;;  %5158 = vmatpush1.bf16.msra.mxu1 %v5157_v23  ;;  %v5173_v23 = vpack.c.bf16 %v1923_v8, %v1921_v19  ;;  %v2009_v19 = vld [vmem:[#allocation10 + $0x600] sm:$0xff]  ;;  %v2011_v8 = vld [vmem:[#allocation10 + $0x610] sm:$0xff] }
 0x540   :  { %5160 = vmatprep.subr.bf16.mxu1 %v5159_v26  ;;  %v5175_v26 = vpack.c.bf16 %v1928_v31, %v1926_v21  ;;  %v2014_v21 = vld [vmem:[#allocation10 + $0x628] sm:$0xff]  ;;  %v2016_v31 = vld [vmem:[#allocation10 + $0x638] sm:$0xff] }
 0x542   :  { %6085 = vrot.lane.b32.xlu1 %v6084_v25, %s6381_s5  ;;  %v1929_v25 = vld [vmem:[#allocation10 + $0x380] sm:$0xff] }
 0x543   :  { %6090 = vrot.lane.b32.xlu0 %v6089_v53, %s6381_s5  ;;  %5162 = vmatpush1.bf16.msra.mxu1 %v5161_v35  ;;  %v5183_v35 = vpack.c.bf16 %v1936_v48, %v1934_v46  ;;  %v1940_v53 = vld [vmem:[#allocation10 + $0x3d8] sm:$0xff] }
 0x544   :  { %5164 = vmatprep.subr.bf16.mxu1 %v5163_v51  ;;  %v1933_v51 = vld [vmem:[#allocation10 + $0x3a0] sm:$0xff]  ;;  %v5187_v57 = vpack.c.bf16 %v1940_v53, %v1938_v52  ;;  %v2020_v46 = vld [vmem:[#allocation10 + $0x658] sm:$0xff] }
 0x545   :  { %v5185_v11 = vpack.c.bf16 %v1935_v38, %v1933_v51 }
 0x546   :  { %6095 = vrot.lane.b32.xlu1 %v6079_v33, %s6380_s28  ;;  %v1930_v33 = vld [vmem:[#allocation10 + $0x388] sm:$0xff] }
 0x547   :  { %6105 = vrot.lane.b32.xlu0 %v6104_v3, %s6381_s5  ;;  %5166 = vmatpush1.bf16.msra.mxu1 %v5165_v47  ;;  %v5179_v37 = vpack.c.bf16 %v1932_v34, %v1930_v33  ;;  %v1939_v47 = vld [vmem:[#allocation10 + $0x3d0] sm:$0xff]  ;;  %v5263_v34 = vpack.c.bf16 %v2016_v31, %v2014_v21 }
 0x548   :  { %5168 = vmatprep.subr.bf16.mxu1 %v5167_v60  ;;  %v1942_v60 = vld [vmem:[#allocation10 + $0x3e8] sm:$0xff]  ;;  %v5189_v63 = vpack.c.bf16 %v1939_v47, %v1937_v30 }
 0x549   :  { %v5191_v3 = vpack.c.bf16 %v1944_v61, %v1942_v60  ;;  %v2022_v47 = vld [vmem:[#allocation10 + $0x668] sm:$0xff]  ;;  %v2024_v60 = vld [vmem:[#allocation10 + $0x678] sm:$0xff] }
 0x54a   :  { %6100 = vrot.lane.b32.xlu1 %v6925_v32, %s6381_s5  ;;  %v1927_v32 = vld [vmem:[#allocation10 + $0x370] sm:$0xff] }
 0x54b   :  { %6110 = vrot.lane.b32.xlu0 %v6109_v10, %s6380_s28  ;;  %5170 = vmatpush1.bf16.msra.mxu1 %v5169_v5  ;;  %v5177_v29 = vpack.c.bf16 %v1927_v32, %v1925_v27  ;;  %v5193_v5 = vpack.c.bf16 %v1943_v16, %v1941_v7  ;;  %v5261_v32 = vpack.c.bf16 %v2011_v8, %v2009_v19  ;;  %v2021_v16 = vld [vmem:[#allocation10 + $0x660] sm:$0xff]  ;;  %v2026_v8 = vld [vmem:[#allocation10 + $0x688] sm:$0xff] }
 0x54c   :  { %5172 = vmatprep.subr.bf16.mxu1 %v5171_v14  ;;  %v5271_v7 = vpack.c.bf16 %v2024_v60, %v2022_v47 }
 0x54e   :  { %1652 = vrot.lane.b32.xlu1 %v6908_v20, %s6381_s5  ;;  %v5181_v20 = vpack.c.bf16 %v1931_v42, %v1929_v25  ;;  %v2018_v42 = vld [vmem:[#allocation10 + $0x648] sm:$0xff] }
 0x54f   :  { %6115 = vrot.lane.b32.xlu0 %v6114_v28, %s6380_s28  ;;  %5174 = vmatpush1.bf16.msra.mxu1 %v5173_v23  ;;  %v5267_v53 = vpack.c.bf16 %v2020_v46, %v2018_v42 }
 0x550   :  { %5176 = vmatprep.subr.bf16.mxu1 %v5175_v26 }
 0x553   :  { %5178 = vmatpush1.bf16.msra.mxu1 %v5177_v29  ;;  %v2013_v29 = vld [vmem:[#allocation10 + $0x620] sm:$0xff] }
 0x554   :  { %5180 = vmatprep.subr.bf16.mxu1 %v5179_v37  ;;  %v2015_v37 = vld [vmem:[#allocation10 + $0x630] sm:$0xff] }
 0x555   :  { %v5265_v51 = vpack.c.bf16 %v2015_v37, %v2013_v29  ;;  %v2030_v29 = vld [vmem:[#allocation10 + $0x6a8] sm:$0xff]  ;;  %v2032_v37 = vld [vmem:[#allocation10 + $0x6b8] sm:$0xff] }
 0x557   :  { %5182 = vmatpush1.bf16.msra.mxu1 %v5181_v20 }
 0x558   :  { %5184 = vmatprep.subr.bf16.mxu1 %v5183_v35 }
 0x55b   :  { %5186 = vmatpush1.bf16.msra.mxu1 %v5185_v11  ;;  %v2017_v11 = vld [vmem:[#allocation10 + $0x640] sm:$0xff] }
 0x55c   :  { %5188 = vmatprep.subr.bf16.mxu1 %v5187_v57  ;;  %v2019_v57 = vld [vmem:[#allocation10 + $0x650] sm:$0xff] }
 0x55f   :  { %5190 = vmatpush1.bf16.msra.mxu1 %v5189_v63 }
 0x560   :  { %5192 = vmatprep.subr.bf16.mxu1 %v5191_v3  ;;  %v5269_v3 = vpack.c.bf16 %v2019_v57, %v2017_v11 }
 0x563   :  { %5194 = vmatpush1.bf16.msra.mxu1 %v5193_v5  ;;  %v2023_v5 = vld [vmem:[#allocation10 + $0x670] sm:$0xff] }
 0x564   :  { %5644 = vmatprep.subr.bf16.mxu1 %v6617_v39 }
 0x598   :  { %v1668_v14 = vpop.permute.xlu1 %1667 }
 0x599   :  { %v6051_v10 = vpop.permute.xlu0 %6050 }
 0x59a   :  { %v6053_v23 = vunpack.i.h.bf16 %v6051_v10  ;;  %v6052_v26 = vunpack.i.l.bf16 %v6051_v10  ;;  %v2028_v10 = vld [vmem:[#allocation10 + $0x698] sm:$0xff] }
 0x59c   :  { %v1674_v27 = vpop.permute.xlu1 %1673  ;;  %v1680_v28 = vsel %vm1576_vm8, %v6052_v26, %v6053_v23  ;;  %v1679_v33 = vsel %vm1576_vm8, %v1668_v14, %v6052_v26  ;;  %v5273_v26 = vpack.c.bf16 %v2023_v5, %v2021_v16  ;;  %v2038_v5 = vld [vmem:[#allocation10 + $0x6e8] sm:$0xff] }
 0x59d   :  { %v6056_v25 = vpop.permute.xlu0 %6055  ;;  %2611 = vmatprep.mubr.f32.mxu0 %v1680_v28 }
 0x59e   :  { %v6058_v48 = vunpack.i.h.bf16 %v6056_v25  ;;  %v6057_v20 = vunpack.i.l.bf16 %v6056_v25  ;;  %2612 = vmatmul.mubr.f32.vlgmr.msra.gmra.mrb[4].mxu0 %v1679_v33 }
 0x59f   :  { %5262 = vmatpush1.bf16.msra.mxu0 %v5261_v32  ;;  %v2027_v32 = vld [vmem:[#allocation10 + $0x690] sm:$0xff] }
 0x5a0   :  { %v1716_v35 = vpop.permute.xlu1 %1715  ;;  %v1682_v38 = vsel %vm1576_vm8, %v6057_v20, %v6058_v48  ;;  %5264 = vmatprep.subr.bf16.mxu0 %v5263_v34  ;;  %v1681_v52 = vsel %vm1576_vm8, %v1674_v27, %v6057_v20  ;;  %v2025_v27 = vld [vmem:[#allocation10 + $0x680] sm:$0xff]  ;;  %v5279_v48 = vpack.c.bf16 %v2032_v37, %v2030_v29  ;;  %v2042_v37 = vld [vmem:[#allocation10 + $0x708] sm:$0xff] }
 0x5a1   :  { %v7019_v30 = vpop.permute.xlu0 %6060  ;;  %2617 = vmatprep.mubr.f32.mxu0 %v1682_v38  ;;  %v5277_v46 = vpack.c.bf16 %v2027_v32, %v2025_v27  ;;  %v2029_v20 = vld [vmem:[#allocation10 + $0x6a0] sm:$0xff] }
 0x5a2   :  { %v6062_v61 = vunpack.i.l.bf16 %v7019_v30  ;;  %2618 = vmatmul.mubr.f32.gmra.mrb[6].mxu0 %v1681_v52  ;;  %v2034_v52 = vld [vmem:[#allocation10 + $0x6c8] sm:$0xff] }
 0x5a3   :  { %5266 = vmatpush1.bf16.msra.mxu0 %v5265_v51  ;;  %2688 = vmatprep.mubr.f32.mxu0 %v6928_v45  ;;  %v5275_v45 = vpack.c.bf16 %v2028_v10, %v2026_v8 }
 0x5a4   :  { %v1722_v63 = vpop.permute.xlu1 %1721  ;;  %5268 = vmatprep.subr.bf16.mxu0 %v5267_v53  ;;  %v7026_v14 = vsel %vm1658_vm14, %v1716_v35, %v6062_v61  ;;  %v2031_v35 = vld [vmem:[#allocation10 + $0x6b0] sm:$0xff]  ;;  %v2036_v53 = vld [vmem:[#allocation10 + $0x6d8] sm:$0xff] }
 0x5a5   :  { %v6066_v19 = vpop.permute.xlu0 %6065  ;;  %v5281_v47 = vpack.c.bf16 %v2031_v35, %v2029_v20  ;;  %v5283_v60 = vpack.c.bf16 %v2036_v53, %v2034_v52 }
 0x5a6   :  { %v6068_v21 = vunpack.i.h.bf16 %v6066_v19  ;;  %v6067_v31 = vunpack.i.l.bf16 %v6066_v19  ;;  %v2040_v19 = vld [vmem:[#allocation10 + $0x6f8] sm:$0xff] }
 0x5a7   :  { %5270 = vmatpush1.bf16.msra.mxu0 %v5269_v3  ;;  %v2035_v3 = vld [vmem:[#allocation10 + $0x6d0] sm:$0xff] }
 0x5a8   :  { %v1736_v23 = vpop.permute.xlu1 %1735  ;;  %5272 = vmatprep.subr.bf16.mxu0 %v5271_v7  ;;  %v7029_v28 = vsel %vm1658_vm14, %v6067_v31, %v6068_v21  ;;  %v7032_v33 = vsel %vm1658_vm14, %v1722_v63, %v6067_v31  ;;  %v2033_v63 = vld [vmem:[#allocation10 + $0x6c0] sm:$0xff] }
 0x5a9   :  { %v7034_v34 = vpop.permute.xlu0 %6070  ;;  %v5285_v31 = vpack.c.bf16 %v2035_v3, %v2033_v63  ;;  %v2041_v63 = vld [vmem:[#allocation10 + $0x700] sm:$0xff]  ;;  %v2043_v3 = vld [vmem:[#allocation10 + $0x710] sm:$0xff] }
 0x5aa   :  { %v6072_v25 = vunpack.i.l.bf16 %v7034_v34 }
 0x5ab   :  { %5274 = vmatpush1.bf16.msra.mxu0 %v5273_v26  ;;  %v2037_v26 = vld [vmem:[#allocation10 + $0x6e0] sm:$0xff] }
 0x5ac   :  { %v1742_v42 = vpop.permute.xlu1 %1741  ;;  %5276 = vmatprep.subr.bf16.mxu0 %v5275_v45  ;;  %v7040_v51 = vsel %vm1576_vm8, %v1736_v23, %v6072_v25  ;;  %v5287_v23 = vpack.c.bf16 %v2040_v19, %v2038_v5  ;;  %v2039_v45 = vld [vmem:[#allocation10 + $0x6f0] sm:$0xff]  ;;  %v2048_v5 = vld [vmem:[#allocation10 + $0x738] sm:$0xff] }
 0x5ad   :  { %v7042_v38 = vpop.permute.xlu0 %6075  ;;  %v5289_v52 = vpack.c.bf16 %v2039_v45, %v2037_v26  ;;  %v5293_v45 = vpack.c.bf16 %v2043_v3, %v2041_v63  ;;  %v2051_v63 = vld [vmem:[#allocation10 + $0x750] sm:$0xff]  ;;  %v2054_v3 = vld [vmem:[#allocation10 + $0x768] sm:$0xff] }
 0x5ae   :  { %v6077_v11 = vunpack.i.l.bf16 %v7042_v38 }
 0x5af   :  { %5278 = vmatpush1.bf16.msra.mxu0 %v5277_v46 }
 0x5b0   :  { %v1778_v57 = vpop.permute.xlu1 %1777  ;;  %5280 = vmatprep.subr.bf16.mxu0 %v5279_v48  ;;  %v7048_v7 = vsel %vm1576_vm8, %v1742_v42, %v6077_v11  ;;  %v2044_v42 = vld [vmem:[#allocation10 + $0x718] sm:$0xff] }
 0x5b1   :  { %v6081_v16 = vpop.permute.xlu0 %6080 }
 0x5b2   :  { %v6083_v8 = vunpack.i.h.bf16 %v6081_v16  ;;  %v6082_v10 = vunpack.i.l.bf16 %v6081_v16  ;;  %v2046_v16 = vld [vmem:[#allocation10 + $0x728] sm:$0xff] }
 0x5b3   :  { %5282 = vmatpush1.bf16.msra.mxu0 %v5281_v47 }
 0x5b4   :  { %v6086_v21 = vpop.permute.xlu1 %6085  ;;  %5284 = vmatprep.subr.bf16.mxu0 %v5283_v60  ;;  %v7051_v27 = vsel %vm1658_vm14, %v6082_v10, %v6083_v8  ;;  %v7054_v32 = vsel %vm1658_vm14, %v1778_v57, %v6082_v10  ;;  %v5291_v60 = vpack.c.bf16 %v2044_v42, %v2042_v37  ;;  %v2047_v37 = vld [vmem:[#allocation10 + $0x730] sm:$0xff] }
 0x5b5   :  { %v6091_v29 = vpop.permute.xlu0 %6090  ;;  %v6088_v46 = vunpack.i.h.bf16 %v6086_v21  ;;  %v6087_v19 = vunpack.i.l.bf16 %v6086_v21 }
 0x5b6   :  { %v6093_v48 = vunpack.i.h.bf16 %v6091_v29  ;;  %v6092_v20 = vunpack.i.l.bf16 %v6091_v29  ;;  %v2045_v29 = vld [vmem:[#allocation10 + $0x720] sm:$0xff] }
 0x5b7   :  { %5286 = vmatpush1.bf16.msra.mxu0 %v5285_v31 }
 0x5b8   :  { %v7056_v35 = vpop.permute.xlu1 %6095  ;;  %v1660_v53 = vsel %vm1658_vm14, %v6088_v46, %v6092_v20  ;;  %5288 = vmatprep.subr.bf16.mxu0 %v5287_v23  ;;  %v1659_v47 = vsel %vm1658_vm14, %v6093_v48, %v6088_v46  ;;  %v5295_v23 = vpack.c.bf16 %v2048_v5, %v2046_v16  ;;  %v2050_v46 = vld [vmem:[#allocation10 + $0x748] sm:$0xff]  ;;  %v2052_v48 = vld [vmem:[#allocation10 + $0x758] sm:$0xff] }
 0x5b9   :  { %v7060_v57 = vpop.permute.xlu0 %6105  ;;  %2534 = vmatprep.mubr.f32.mxu1 %v1660_v53  ;;  %v5297_v53 = vpack.c.bf16 %v2047_v37, %v2045_v29  ;;  %v2056_v16 = vld [vmem:[#allocation10 + $0x778] sm:$0xff]  ;;  %v2057_v37 = vld [vmem:[#allocation10 + $0x780] sm:$0xff] }
 0x5ba   :  { %v6107_v8 = vunpack.i.l.bf16 %v7060_v57  ;;  %2535 = vmatmul.mubr.f32.vlgmr.msra.gmra.mrb[8].mxu1 %v1659_v47  ;;  %v5299_v47 = vpack.c.bf16 %v2052_v48, %v2050_v46  ;;  %v2062_v46 = vld [vmem:[#allocation10 + $0x7a8] sm:$0xff]  ;;  %v2064_v48 = vld [vmem:[#allocation10 + $0x7b8] sm:$0xff] }
 0x5bb   :  { %5290 = vmatpush1.bf16.msra.mxu0 %v5289_v52  ;;  %5646 = vmatpush3.bf16.msra.mxu1 %v6628_v43 }
 0x5bc   :  { %v6101_v10 = vpop.permute.xlu1 %6100  ;;  %5292 = vmatprep.subr.bf16.mxu0 %v5291_v60  ;;  %v7067_v42 = vsel %vm1658_vm14, %v6087_v19, %v6107_v8  ;;  %5648 = vmatprep.subr.bf16.mxu1 %v6630_v44  ;;  %v2049_v60 = vld [vmem:[#allocation10 + $0x740] sm:$0xff]  ;;  %v5303_v19 = vpack.c.bf16 %v2056_v16, %v2054_v3 }
 0x5bd   :  { %v6103_v31 = vunpack.i.h.bf16 %v6101_v10  ;;  %v6102_v26 = vunpack.i.l.bf16 %v6101_v10  ;;  %v5301_v5 = vpack.c.bf16 %v2051_v63, %v2049_v60  ;;  %v2053_v10 = vld [vmem:[#allocation10 + $0x760] sm:$0xff]  ;;  %v2066_v60 = vld [vmem:[#allocation10 + $0x7c8] sm:$0xff]  ;;  %v2068_v63 = vld [vmem:[#allocation10 + $0x7d8] sm:$0xff] }
 0x5be   :  { %v5315_v16 = vpack.c.bf16 %v2068_v63, %v2066_v60 }
 0x5bf   :  { %v1662_v21 = vsel %vm1658_vm14, %v6102_v26, %v6103_v31  ;;  %5294 = vmatpush1.bf16.msra.mxu0 %v5293_v45  ;;  %5650 = vmatpush3.bf16.msra.mxu1 %v6646_v49  ;;  %v2055_v31 = vld [vmem:[#allocation10 + $0x770] sm:$0xff]  ;;  %v2060_v45 = vld [vmem:[#allocation10 + $0x798] sm:$0xff] }
 0x5c0   :  { %v1653_v20 = vpop.permute.xlu1 %1652  ;;  %2540 = vmatprep.mubr.f32.mxu1 %v1662_v21  ;;  %5296 = vmatprep.subr.bf16.mxu0 %v5295_v23  ;;  %v5305_v23 = vpack.c.bf16 %v2055_v31, %v2053_v10  ;;  %v2059_v21 = vld [vmem:[#allocation10 + $0x790] sm:$0xff]  ;;  %v2070_v10 = vld [vmem:[#allocation10 + $0x7e8] sm:$0xff]  ;;  %v2072_v31 = vld [vmem:[#allocation10 + $0x7f8] sm:$0xff] }
 0x5c1   :  { %v1661_v52 = vsel %vm1658_vm14, %v1653_v20, %v6102_v26  ;;  %5652 = vmatprep.subr.bf16.mxu1 %v6649_v50  ;;  %v2058_v26 = vld [vmem:[#allocation10 + $0x788] sm:$0xff]  ;;  %v5309_v20 = vpack.c.bf16 %v2059_v21, %v2057_v37  ;;  %v2076_v21 = vld [vmem:[#allocation10 + $0x818] sm:$0xff] }
 0x5c2   :  { %2541 = vmatmul.mubr.f32.gmra.mrb[10].mxu1 %v1661_v52  ;;  %v5307_v29 = vpack.c.bf16 %v2060_v45, %v2058_v26  ;;  %v5311_v52 = vpack.c.bf16 %v2064_v48, %v2062_v46  ;;  %v5319_v45 = vpack.c.bf16 %v2072_v31, %v2070_v10  ;;  %v2074_v37 = vld [vmem:[#allocation10 + $0x808] sm:$0xff]  ;;  %v6063_v10 = vunpack.i.h.bf16 %v7019_v30 }
 0x5c3   :  { %5298 = vmatpush1.bf16.msra.mxu0 %v5297_v53  ;;  %5654 = vmatpush3.bf16.msra.mxu1 %v6664_v55  ;;  %v2061_v53 = vld [vmem:[#allocation10 + $0x7a0] sm:$0xff]  ;;  %v5323_v48 = vpack.c.bf16 %v2076_v21, %v2074_v37 }
 0x5c4   :  { %5300 = vmatprep.subr.bf16.mxu0 %v5299_v47  ;;  %5656 = vmatprep.subr.bf16.mxu1 %v6667_v56  ;;  %v2063_v47 = vld [vmem:[#allocation10 + $0x7b0] sm:$0xff]  ;;  %v1728_v37 = vsel %vm1658_vm14, %v6062_v61, %v6063_v10 }
 0x5c5   :  { %v5313_v3 = vpack.c.bf16 %v2063_v47, %v2061_v53  ;;  %v2078_v53 = vld [vmem:[#allocation10 + $0x828] sm:$0xff]  ;;  %v2080_v47 = vld [vmem:[#allocation10 + $0x838] sm:$0xff] }
 0x5c6   :  { %v5327_v63 = vpack.c.bf16 %v2080_v47, %v2078_v53  ;;  %v2089_v47 = vld [vmem:[#allocation10 + $0x880] sm:$0xff] }
 0x5c7   :  { %5302 = vmatpush1.bf16.msra.mxu0 %v5301_v5  ;;  %5658 = vmatpush3.bf16.msra.mxu1 %v6718_v54  ;;  %v2065_v5 = vld [vmem:[#allocation10 + $0x7c0] sm:$0xff] }
 0x5c8   :  { %5304 = vmatprep.subr.bf16.mxu0 %v5303_v19  ;;  %5660 = vmatprep.subr.bf16.mxu1 %v6727_v59  ;;  %v2067_v19 = vld [vmem:[#allocation10 + $0x7d0] sm:$0xff] }
 0x5c9   :  { %v5317_v26 = vpack.c.bf16 %v2067_v19, %v2065_v5  ;;  %v2082_v5 = vld [vmem:[#allocation10 + $0x848] sm:$0xff]  ;;  %v2084_v19 = vld [vmem:[#allocation10 + $0x858] sm:$0xff] }
 0x5cb   :  { %5306 = vmatpush1.bf16.msra.mxu0 %v5305_v23  ;;  %5662 = vmatpush3.bf16.msra.mxu1 %v6735_v62  ;;  %v2069_v23 = vld [vmem:[#allocation10 + $0x7e0] sm:$0xff] }
 0x5cc   :  { %5308 = vmatprep.subr.bf16.mxu0 %v5307_v29  ;;  %5664 = vmatprep.subr.bf16.mxu1 %v6745_v1  ;;  %v2071_v29 = vld [vmem:[#allocation10 + $0x7f0] sm:$0xff] }
 0x5cd   :  { %v5321_v46 = vpack.c.bf16 %v2071_v29, %v2069_v23  ;;  %v2086_v23 = vld [vmem:[#allocation10 + $0x868] sm:$0xff]  ;;  %v2088_v29 = vld [vmem:[#allocation10 + $0x878] sm:$0xff] }
 0x5cf   :  { %5310 = vmatpush1.bf16.msra.mxu0 %v5309_v20  ;;  %5666 = vmatpush3.bf16.msra.mxu1 %v6753_v4  ;;  %v2073_v20 = vld [vmem:[#allocation10 + $0x800] sm:$0xff] }
 0x5d0   :  { %5312 = vmatprep.subr.bf16.mxu0 %v5311_v52  ;;  %5668 = vmatprep.subr.bf16.mxu1 %v6763_v6  ;;  %v2075_v52 = vld [vmem:[#allocation10 + $0x810] sm:$0xff] }
 0x5d1   :  { %v5325_v60 = vpack.c.bf16 %v2075_v52, %v2073_v20  ;;  %v2092_v20 = vld [vmem:[#allocation10 + $0x898] sm:$0xff] }
 0x5d3   :  { %5314 = vmatpush1.bf16.msra.mxu0 %v5313_v3  ;;  %5670 = vmatpush3.bf16.msra.mxu1 %v6771_v9  ;;  %v2077_v3 = vld [vmem:[#allocation10 + $0x820] sm:$0xff] }
 0x5d4   :  { %5316 = vmatprep.subr.bf16.mxu0 %v5315_v16  ;;  %5672 = vmatprep.subr.bf16.mxu1 %v6781_v12  ;;  %v2079_v16 = vld [vmem:[#allocation10 + $0x830] sm:$0xff] }
 0x5d5   :  { %v5329_v31 = vpack.c.bf16 %v2079_v16, %v2077_v3  ;;  %v2093_v3 = vld [vmem:[#allocation10 + $0x8a0] sm:$0xff]  ;;  %v2095_v16 = vld [vmem:[#allocation10 + $0x8b0] sm:$0xff] }
 0x5d6   :  { %v5345_v10 = vpack.c.bf16 %v2095_v16, %v2093_v3  ;;  %v2114_v3 = vld [vmem:[#allocation10 + $0x948] sm:$0xff]  ;;  %v2116_v16 = vld [vmem:[#allocation10 + $0x958] sm:$0xff] }
 0x5d7   :  { %5318 = vmatpush1.bf16.msra.mxu0 %v5317_v26  ;;  %5674 = vmatpush3.bf16.msra.mxu1 %v6789_v15  ;;  %v2081_v26 = vld [vmem:[#allocation10 + $0x840] sm:$0xff] }
 0x5d8   :  { %5320 = vmatprep.subr.bf16.mxu0 %v5319_v45  ;;  %5676 = vmatprep.subr.bf16.mxu1 %v6617_v39  ;;  %v5331_v39 = vpack.c.bf16 %v2084_v19, %v2082_v5  ;;  %v2083_v45 = vld [vmem:[#allocation10 + $0x850] sm:$0xff]  ;;  %v2098_v5 = vld [vmem:[#allocation10 + $0x8c8] sm:$0xff]  ;;  %v2100_v19 = vld [vmem:[#allocation10 + $0x8d8] sm:$0xff] }
 0x5d9   :  { %v5333_v21 = vpack.c.bf16 %v2083_v45, %v2081_v26  ;;  %v2099_v26 = vld [vmem:[#allocation10 + $0x8d0] sm:$0xff]  ;;  %v2102_v45 = vld [vmem:[#allocation10 + $0x8e8] sm:$0xff] }
 0x5db   :  { %5322 = vmatpush1.bf16.msra.mxu0 %v5321_v46  ;;  %v2087_v46 = vld [vmem:[#allocation10 + $0x870] sm:$0xff] }
 0x5dc   :  { %5324 = vmatprep.subr.bf16.mxu0 %v5323_v48  ;;  %v2090_v48 = vld [vmem:[#allocation10 + $0x888] sm:$0xff] }
 0x5dd   :  { %v5339_v53 = vpack.c.bf16 %v2092_v20, %v2090_v48 }
 0x5de   :  { %2689 = vmatmul.mubr.f32.vlgmr.msra.gmra.mrb[4].mxu0 %v6941_v58  ;;  %v5335_v58 = vpack.c.bf16 %v2088_v29, %v2086_v23  ;;  %v2104_v23 = vld [vmem:[#allocation10 + $0x8f8] sm:$0xff] }
 0x5df   :  { %2694 = vmatprep.mubr.f32.mxu0 %v6949_v17  ;;  %5326 = vmatpush1.bf16.msra.mxu0 %v5325_v60  ;;  %v2085_v17 = vld [vmem:[#allocation10 + $0x860] sm:$0xff]  ;;  %v2091_v60 = vld [vmem:[#allocation10 + $0x890] sm:$0xff] }
 0x5e0   :  { %5328 = vmatprep.subr.bf16.mxu0 %v5327_v63  ;;  %v5337_v52 = vpack.c.bf16 %v2087_v46, %v2085_v17  ;;  %v2096_v63 = vld [vmem:[#allocation10 + $0x8b8] sm:$0xff]  ;;  %v5341_v30 = vpack.c.bf16 %v2091_v60, %v2089_v47  ;;  %v2106_v17 = vld [vmem:[#allocation10 + $0x908] sm:$0xff] }
 0x5e1   :  { %v2108_v46 = vld [vmem:[#allocation10 + $0x918] sm:$0xff]  ;;  %v2110_v47 = vld [vmem:[#allocation10 + $0x928] sm:$0xff] }
 0x5e2   :  { %2695 = vmatmul.mubr.f32.gmra.mrb[6].mxu0 %v6954_v36  ;;  %v2094_v36 = vld [vmem:[#allocation10 + $0x8a8] sm:$0xff]  ;;  %v5355_v20 = vpack.c.bf16 %v2108_v46, %v2106_v17  ;;  %v2112_v60 = vld [vmem:[#allocation10 + $0x938] sm:$0xff] }
 0x5e3   :  { %5330 = vmatpush1.bf16.msra.mxu0 %v5329_v31  ;;  %2765 = vmatprep.mubr.f32.mxu0 %v1728_v37  ;;  %v5343_v61 = vpack.c.bf16 %v2096_v63, %v2094_v36  ;;  %v5347_v31 = vpack.c.bf16 %v2100_v19, %v2098_v5  ;;  %v5351_v37 = vpack.c.bf16 %v2104_v23, %v2102_v45 }
 0x5e4   :  { %5332 = vmatprep.subr.bf16.mxu0 %v5331_v39  ;;  %v2097_v39 = vld [vmem:[#allocation10 + $0x8c0] sm:$0xff]  ;;  %v5359_v63 = vpack.c.bf16 %v2112_v60, %v2110_v47  ;;  %v5363_v19 = vpack.c.bf16 %v2116_v16, %v2114_v3 }
 0x5e5   :  { %v5349_v29 = vpack.c.bf16 %v2099_v26, %v2097_v39  ;;  %v2118_v39 = vld [vmem:[#allocation10 + $0x968] sm:$0xff]  ;;  %v2120_v26 = vld [vmem:[#allocation10 + $0x978] sm:$0xff] }
 0x5e6   :  { %v5367_v23 = vpack.c.bf16 %v2120_v26, %v2118_v39 }
 0x5e7   :  { %5334 = vmatpush1.bf16.msra.mxu0 %v5333_v21  ;;  %v2101_v21 = vld [vmem:[#allocation10 + $0x8e0] sm:$0xff] }
 0x5e8   :  { %5336 = vmatprep.subr.bf16.mxu0 %v5335_v58  ;;  %v2103_v58 = vld [vmem:[#allocation10 + $0x8f0] sm:$0xff] }
 0x5e9   :  { %v5353_v48 = vpack.c.bf16 %v2103_v58, %v2101_v21  ;;  %v2122_v21 = vld [vmem:[#allocation10 + $0x988] sm:$0xff]  ;;  %v2124_v58 = vld [vmem:[#allocation10 + $0x998] sm:$0xff] }
 0x5ea   :  { %v5371_v46 = vpack.c.bf16 %v2124_v58, %v2122_v21 }
 0x5eb   :  { %5338 = vmatpush1.bf16.msra.mxu0 %v5337_v52  ;;  %v2105_v52 = vld [vmem:[#allocation10 + $0x900] sm:$0xff] }
 0x5ec   :  { %5340 = vmatprep.subr.bf16.mxu0 %v5339_v53  ;;  %v2107_v53 = vld [vmem:[#allocation10 + $0x910] sm:$0xff] }
 0x5ed   :  { %v5357_v36 = vpack.c.bf16 %v2107_v53, %v2105_v52  ;;  %v2126_v52 = vld [vmem:[#allocation10 + $0x9a8] sm:$0xff]  ;;  %v2128_v53 = vld [vmem:[#allocation10 + $0x9b8] sm:$0xff] }
 0x5ee   :  { %v5375_v60 = vpack.c.bf16 %v2128_v53, %v2126_v52 }
 0x5ef   :  { %5342 = vmatpush1.bf16.msra.mxu0 %v5341_v30  ;;  %v2109_v30 = vld [vmem:[#allocation10 + $0x920] sm:$0xff] }
 0x5f0   :  { %5344 = vmatprep.subr.bf16.mxu0 %v5343_v61  ;;  %v2111_v61 = vld [vmem:[#allocation10 + $0x930] sm:$0xff] }
 0x5f1   :  { %v5361_v5 = vpack.c.bf16 %v2111_v61, %v2109_v30  ;;  %v2130_v30 = vld [vmem:[#allocation10 + $0x9c8] sm:$0xff]  ;;  %v2132_v61 = vld [vmem:[#allocation10 + $0x9d8] sm:$0xff] }
 0x5f2   :  { %v5379_v16 = vpack.c.bf16 %v2132_v61, %v2130_v30  ;;  %v6073_v30 = vunpack.i.h.bf16 %v7034_v34 }
 0x5f3   :  { %5346 = vmatpush1.bf16.msra.mxu0 %v5345_v10  ;;  %v2113_v10 = vld [vmem:[#allocation10 + $0x940] sm:$0xff] }
 0x5f4   :  { %5348 = vmatprep.subr.bf16.mxu0 %v5347_v31  ;;  %v2115_v31 = vld [vmem:[#allocation10 + $0x950] sm:$0xff] }
 0x5f5   :  { %v5365_v45 = vpack.c.bf16 %v2115_v31, %v2113_v10  ;;  %v2134_v10 = vld [vmem:[#allocation10 + $0x9e8] sm:$0xff]  ;;  %v2136_v31 = vld [vmem:[#allocation10 + $0x9f8] sm:$0xff] }
 0x5f6   :  { %v5383_v26 = vpack.c.bf16 %v2136_v31, %v2134_v10  ;;  %v2152_v10 = vld [vmem:[#allocation10 + $0xa78] sm:$0xff]  ;;  %v1748_v31 = vsel %vm1576_vm8, %v6072_v25, %v6073_v30 }
 0x5f7   :  { %5350 = vmatpush1.bf16.msra.mxu0 %v5349_v29  ;;  %v2117_v29 = vld [vmem:[#allocation10 + $0x960] sm:$0xff]  ;;  %v2168_v30 = vld [vmem:[#allocation10 + $0xaf8] sm:$0xff] }
 0x5f8   :  { %5352 = vmatprep.subr.bf16.mxu0 %v5351_v37  ;;  %v2119_v37 = vld [vmem:[#allocation10 + $0x970] sm:$0xff] }
 0x5f9   :  { %v5369_v17 = vpack.c.bf16 %v2119_v37, %v2117_v29  ;;  %v2138_v29 = vld [vmem:[#allocation10 + $0xa08] sm:$0xff]  ;;  %v2140_v37 = vld [vmem:[#allocation10 + $0xa18] sm:$0xff] }
 0x5fa   :  { %v5387_v58 = vpack.c.bf16 %v2140_v37, %v2138_v29 }
 0x5fb   :  { %5354 = vmatpush1.bf16.msra.mxu0 %v5353_v48  ;;  %v2121_v48 = vld [vmem:[#allocation10 + $0x980] sm:$0xff] }
 0x5fc   :  { %5356 = vmatprep.subr.bf16.mxu0 %v5355_v20  ;;  %v2123_v20 = vld [vmem:[#allocation10 + $0x990] sm:$0xff] }
 0x5fd   :  { %v5373_v47 = vpack.c.bf16 %v2123_v20, %v2121_v48  ;;  %v2142_v48 = vld [vmem:[#allocation10 + $0xa28] sm:$0xff]  ;;  %v2144_v20 = vld [vmem:[#allocation10 + $0xa38] sm:$0xff] }
 0x5fe   :  { %v5391_v53 = vpack.c.bf16 %v2144_v20, %v2142_v48  ;;  %v2159_v48 = vld [vmem:[#allocation10 + $0xab0] sm:$0xff]  ;;  %v2162_v20 = vld [vmem:[#allocation10 + $0xac8] sm:$0xff] }
 0x5ff   :  { %5358 = vmatpush1.bf16.msra.mxu0 %v5357_v36  ;;  %v2125_v36 = vld [vmem:[#allocation10 + $0x9a0] sm:$0xff] }
 0x600   :  { %5360 = vmatprep.subr.bf16.mxu0 %v5359_v63  ;;  %v2127_v63 = vld [vmem:[#allocation10 + $0x9b0] sm:$0xff] }
 0x601   :  { %v5377_v3 = vpack.c.bf16 %v2127_v63, %v2125_v36  ;;  %v2146_v36 = vld [vmem:[#allocation10 + $0xa48] sm:$0xff]  ;;  %v2148_v63 = vld [vmem:[#allocation10 + $0xa58] sm:$0xff] }
 0x603   :  { %5362 = vmatpush1.bf16.msra.mxu0 %v5361_v5  ;;  %v2129_v5 = vld [vmem:[#allocation10 + $0x9c0] sm:$0xff] }
 0x604   :  { %5364 = vmatprep.subr.bf16.mxu0 %v5363_v19  ;;  %v2131_v19 = vld [vmem:[#allocation10 + $0x9d0] sm:$0xff] }
 0x605   :  { %v5381_v39 = vpack.c.bf16 %v2131_v19, %v2129_v5  ;;  %v2147_v5 = vld [vmem:[#allocation10 + $0xa50] sm:$0xff]  ;;  %v2150_v19 = vld [vmem:[#allocation10 + $0xa68] sm:$0xff] }
 0x607   :  { %5366 = vmatpush1.bf16.msra.mxu0 %v5365_v45  ;;  %v2133_v45 = vld [vmem:[#allocation10 + $0x9e0] sm:$0xff] }
 0x608   :  { %5368 = vmatprep.subr.bf16.mxu0 %v5367_v23  ;;  %v2135_v23 = vld [vmem:[#allocation10 + $0x9f0] sm:$0xff] }
 0x609   :  { %v5385_v21 = vpack.c.bf16 %v2135_v23, %v2133_v45  ;;  %v2154_v45 = vld [vmem:[#allocation10 + $0xa88] sm:$0xff]  ;;  %v2156_v23 = vld [vmem:[#allocation10 + $0xa98] sm:$0xff] }
 0x60a   :  { %v5403_v37 = vpack.c.bf16 %v2156_v23, %v2154_v45  ;;  %v2176_v45 = vld [vmem:[#allocation10 + $0xb38] sm:$0xff] }
 0x60b   :  { %5370 = vmatpush1.bf16.msra.mxu0 %v5369_v17  ;;  %v2137_v17 = vld [vmem:[#allocation10 + $0xa00] sm:$0xff] }
 0x60c   :  { %5372 = vmatprep.subr.bf16.mxu0 %v5371_v46  ;;  %v2139_v46 = vld [vmem:[#allocation10 + $0xa10] sm:$0xff] }
 0x60d   :  { %v5389_v52 = vpack.c.bf16 %v2139_v46, %v2137_v17  ;;  %v2160_v17 = vld [vmem:[#allocation10 + $0xab8] sm:$0xff]  ;;  %v2157_v46 = vld [vmem:[#allocation10 + $0xaa0] sm:$0xff] }
 0x60f   :  { %5374 = vmatpush1.bf16.msra.mxu0 %v5373_v47  ;;  %v2141_v47 = vld [vmem:[#allocation10 + $0xa20] sm:$0xff] }
 0x610   :  { %5376 = vmatprep.subr.bf16.mxu0 %v5375_v60  ;;  %v2143_v60 = vld [vmem:[#allocation10 + $0xa30] sm:$0xff] }
 0x611   :  { %v5393_v61 = vpack.c.bf16 %v2143_v60, %v2141_v47  ;;  %v2161_v60 = vld [vmem:[#allocation10 + $0xac0] sm:$0xff] }
 0x613   :  { %5378 = vmatpush1.bf16.msra.mxu0 %v5377_v3  ;;  %v5395_v3 = vpack.c.bf16 %v2148_v63, %v2146_v36  ;;  %v2163_v36 = vld [vmem:[#allocation10 + $0xad0] sm:$0xff]  ;;  %v2166_v63 = vld [vmem:[#allocation10 + $0xae8] sm:$0xff] }
 0x614   :  { %5380 = vmatprep.subr.bf16.mxu0 %v5379_v16  ;;  %v2145_v16 = vld [vmem:[#allocation10 + $0xa40] sm:$0xff] }
 0x617   :  { %5382 = vmatpush1.bf16.msra.mxu0 %v5381_v39  ;;  %v5397_v39 = vpack.c.bf16 %v2147_v5, %v2145_v16  ;;  %v2165_v16 = vld [vmem:[#allocation10 + $0xae0] sm:$0xff]  ;;  %v2167_v5 = vld [vmem:[#allocation10 + $0xaf0] sm:$0xff] }
 0x618   :  { %5384 = vmatprep.subr.bf16.mxu0 %v5383_v26  ;;  %v2151_v26 = vld [vmem:[#allocation10 + $0xa70] sm:$0xff] }
 0x61b   :  { %5386 = vmatpush1.bf16.msra.mxu0 %v5385_v21  ;;  %v2153_v21 = vld [vmem:[#allocation10 + $0xa80] sm:$0xff] }
 0x61c   :  { %5388 = vmatprep.subr.bf16.mxu0 %v5387_v58  ;;  %v2155_v58 = vld [vmem:[#allocation10 + $0xa90] sm:$0xff] }
 0x61d   :  { %v5405_v34 = vpack.c.bf16 %v2155_v58, %v2153_v21  ;;  %v2175_v21 = vld [vmem:[#allocation10 + $0xb30] sm:$0xff]  ;;  %v2178_v58 = vld [vmem:[#allocation10 + $0xb48] sm:$0xff] }
 0x61e   :  { %2766 = vmatmul.mubr.f32.vlgmr.msra.gmra.mrb[4].mxu0 %v7026_v14  ;;  %v5399_v14 = vpack.c.bf16 %v2152_v10, %v2150_v19  ;;  %v2170_v19 = vld [vmem:[#allocation10 + $0xb08] sm:$0xff]  ;;  %v2172_v10 = vld [vmem:[#allocation10 + $0xb18] sm:$0xff] }
 0x61f   :  { %2771 = vmatprep.mubr.f32.mxu0 %v7029_v28  ;;  %5390 = vmatpush1.bf16.msra.mxu0 %v5389_v52  ;;  %v2149_v28 = vld [vmem:[#allocation10 + $0xa60] sm:$0xff]  ;;  %v2164_v52 = vld [vmem:[#allocation10 + $0xad8] sm:$0xff] }
 0x620   :  { %5392 = vmatprep.subr.bf16.mxu0 %v5391_v53  ;;  %v5401_v29 = vpack.c.bf16 %v2151_v26, %v2149_v28  ;;  %v5409_v53 = vpack.c.bf16 %v2159_v48, %v2157_v46  ;;  %v5411_v47 = vpack.c.bf16 %v2164_v52, %v2162_v20  ;;  %v2171_v28 = vld [vmem:[#allocation10 + $0xb10] sm:$0xff]  ;;  %v2174_v26 = vld [vmem:[#allocation10 + $0xb28] sm:$0xff]  ;;  %v2184_v20 = vld [vmem:[#allocation10 + $0xb78] sm:$0xff] }
 0x621   :  { %v2179_v46 = vld [vmem:[#allocation10 + $0xb50] sm:$0xff]  ;;  %v2182_v48 = vld [vmem:[#allocation10 + $0xb68] sm:$0xff] }
 0x622   :  { %2772 = vmatmul.mubr.f32.gmra.mrb[6].mxu0 %v7032_v33  ;;  %v2158_v33 = vld [vmem:[#allocation10 + $0xaa8] sm:$0xff] }
 0x623   :  { %5394 = vmatpush1.bf16.msra.mxu0 %v5393_v61  ;;  %2842 = vmatprep.mubr.f32.mxu0 %v1748_v31  ;;  %v5407_v25 = vpack.c.bf16 %v2160_v17, %v2158_v33  ;;  %v5413_v61 = vpack.c.bf16 %v2163_v36, %v2161_v60  ;;  %v5417_v31 = vpack.c.bf16 %v2167_v5, %v2165_v16  ;;  %v2180_v33 = vld [vmem:[#allocation10 + $0xb58] sm:$0xff]  ;;  %v2183_v60 = vld [vmem:[#allocation10 + $0xb70] sm:$0xff]  ;;  %v2186_v36 = vld [vmem:[#allocation10 + $0xb88] sm:$0xff] }
 0x624   :  { %5396 = vmatprep.subr.bf16.mxu0 %v5395_v3  ;;  %v5415_v3 = vpack.c.bf16 %v2168_v30, %v2166_v63  ;;  %v2188_v63 = vld [vmem:[#allocation10 + $0xb98] sm:$0xff]  ;;  %v2187_v16 = vld [vmem:[#allocation10 + $0xb90] sm:$0xff]  ;;  %v2190_v5 = vld [vmem:[#allocation10 + $0xba8] sm:$0xff] }
 0x627   :  { %5398 = vmatpush1.bf16.msra.mxu0 %v5397_v39  ;;  %v5419_v39 = vpack.c.bf16 %v2172_v10, %v2170_v19  ;;  %v2192_v19 = vld [vmem:[#allocation10 + $0xbb8] sm:$0xff] }
 0x628   :  { %5400 = vmatprep.subr.bf16.mxu0 %v5399_v14  ;;  %v2169_v14 = vld [vmem:[#allocation10 + $0xb00] sm:$0xff] }
 0x629   :  { %v5421_v23 = vpack.c.bf16 %v2171_v28, %v2169_v14  ;;  %v2191_v14 = vld [vmem:[#allocation10 + $0xbb0] sm:$0xff]  ;;  %v2194_v28 = vld [vmem:[#allocation10 + $0xbc8] sm:$0xff] }
 0x62b   :  { %5402 = vmatpush1.bf16.msra.mxu0 %v5401_v29  ;;  %v5423_v29 = vpack.c.bf16 %v2176_v45, %v2174_v26  ;;  %v2196_v26 = vld [vmem:[#allocation10 + $0xbd8] sm:$0xff] }
 0x62c   :  { %5404 = vmatprep.subr.bf16.mxu0 %v5403_v37  ;;  %v2173_v37 = vld [vmem:[#allocation10 + $0xb20] sm:$0xff] }
 0x62d   :  { %v5425_v17 = vpack.c.bf16 %v2175_v21, %v2173_v37  ;;  %v2195_v37 = vld [vmem:[#allocation10 + $0xbd0] sm:$0xff]  ;;  %v2198_v21 = vld [vmem:[#allocation10 + $0xbe8] sm:$0xff] }
 0x62f   :  { %5406 = vmatpush1.bf16.msra.mxu0 %v5405_v34  ;;  %v5427_v34 = vpack.c.bf16 %v2180_v33, %v2178_v58  ;;  %v2200_v58 = vld [vmem:[#allocation10 + $0xbf8] sm:$0xff] }
 0x630   :  { %5408 = vmatprep.subr.bf16.mxu0 %v5407_v25  ;;  %v2177_v25 = vld [vmem:[#allocation10 + $0xb40] sm:$0xff] }
 0x631   :  { %v5429_v52 = vpack.c.bf16 %v2179_v46, %v2177_v25  ;;  %v2199_v25 = vld [vmem:[#allocation10 + $0xbf0] sm:$0xff]  ;;  %v2202_v46 = vld [vmem:[#allocation10 + $0xc08] sm:$0xff] }
 0x633   :  { %5410 = vmatpush1.bf16.msra.mxu0 %v5409_v53  ;;  %v5431_v53 = vpack.c.bf16 %v2184_v20, %v2182_v48  ;;  %v2204_v48 = vld [vmem:[#allocation10 + $0xc18] sm:$0xff] }
 0x634   :  { %5412 = vmatprep.subr.bf16.mxu0 %v5411_v47  ;;  %v2181_v47 = vld [vmem:[#allocation10 + $0xb60] sm:$0xff] }
 0x635   :  { %v5433_v30 = vpack.c.bf16 %v2183_v60, %v2181_v47  ;;  %v2203_v47 = vld [vmem:[#allocation10 + $0xc10] sm:$0xff]  ;;  %v2206_v60 = vld [vmem:[#allocation10 + $0xc28] sm:$0xff] }
 0x637   :  { %5414 = vmatpush1.bf16.msra.mxu0 %v5413_v61  ;;  %v5435_v61 = vpack.c.bf16 %v2188_v63, %v2186_v36  ;;  %v2208_v36 = vld [vmem:[#allocation10 + $0xc38] sm:$0xff]  ;;  %v6078_v63 = vunpack.i.h.bf16 %v7042_v38  ;;  %v2213_v38 = vld [vmem:[#allocation10 + $0xc60] sm:$0xff] }
 0x638   :  { %5416 = vmatprep.subr.bf16.mxu0 %v5415_v3  ;;  %v2185_v3 = vld [vmem:[#allocation10 + $0xb80] sm:$0xff] }
 0x639   :  { %v5437_v10 = vpack.c.bf16 %v2187_v16, %v2185_v3  ;;  %v2205_v3 = vld [vmem:[#allocation10 + $0xc20] sm:$0xff]  ;;  %v2207_v16 = vld [vmem:[#allocation10 + $0xc30] sm:$0xff] }
 0x63b   :  { %5418 = vmatpush1.bf16.msra.mxu0 %v5417_v31  ;;  %v5439_v31 = vpack.c.bf16 %v2192_v19, %v2190_v5  ;;  %v2210_v5 = vld [vmem:[#allocation10 + $0xc48] sm:$0xff]  ;;  %v2212_v19 = vld [vmem:[#allocation10 + $0xc58] sm:$0xff] }
 0x63c   :  { %5420 = vmatprep.subr.bf16.mxu0 %v5419_v39  ;;  %v2189_v39 = vld [vmem:[#allocation10 + $0xba0] sm:$0xff] }
 0x63d   :  { %v5441_v45 = vpack.c.bf16 %v2191_v14, %v2189_v39  ;;  %v5459_v39 = vpack.c.bf16 %v2212_v19, %v2210_v5  ;;  %v2209_v14 = vld [vmem:[#allocation10 + $0xc40] sm:$0xff]  ;;  %v2231_v5 = vld [vmem:[#allocation10 + $0xcf0] sm:$0xff]  ;;  %v2234_v19 = vld [vmem:[#allocation10 + $0xd08] sm:$0xff] }
 0x63f   :  { %5422 = vmatpush1.bf16.msra.mxu0 %v5421_v23  ;;  %v5443_v23 = vpack.c.bf16 %v2196_v26, %v2194_v28  ;;  %v2211_v28 = vld [vmem:[#allocation10 + $0xc50] sm:$0xff]  ;;  %v2214_v26 = vld [vmem:[#allocation10 + $0xc68] sm:$0xff] }
 0x640   :  { %5424 = vmatprep.subr.bf16.mxu0 %v5423_v29  ;;  %v2193_v29 = vld [vmem:[#allocation10 + $0xbc0] sm:$0xff] }
 0x641   :  { %v5445_v33 = vpack.c.bf16 %v2195_v37, %v2193_v29  ;;  %v2215_v29 = vld [vmem:[#allocation10 + $0xc70] sm:$0xff]  ;;  %v2220_v37 = vld [vmem:[#allocation10 + $0xc98] sm:$0xff] }
 0x643   :  { %5426 = vmatpush1.bf16.msra.mxu0 %v5425_v17  ;;  %v5447_v17 = vpack.c.bf16 %v2200_v58, %v2198_v21  ;;  %v5465_v21 = vpack.c.bf16 %v2215_v29, %v2213_v38  ;;  %v2237_v38 = vld [vmem:[#allocation10 + $0xd20] sm:$0xff]  ;;  %v2239_v29 = vld [vmem:[#allocation10 + $0xd30] sm:$0xff] }
 0x644   :  { %5428 = vmatprep.subr.bf16.mxu0 %v5427_v34  ;;  %v2197_v34 = vld [vmem:[#allocation10 + $0xbe0] sm:$0xff] }
 0x645   :  { %v5449_v20 = vpack.c.bf16 %v2199_v25, %v2197_v34  ;;  %v2222_v34 = vld [vmem:[#allocation10 + $0xca8] sm:$0xff]  ;;  %v2224_v25 = vld [vmem:[#allocation10 + $0xcb8] sm:$0xff] }
 0x647   :  { %5430 = vmatpush1.bf16.msra.mxu0 %v5429_v52  ;;  %v5451_v52 = vpack.c.bf16 %v2204_v48, %v2202_v46  ;;  %v5471_v46 = vpack.c.bf16 %v2224_v25, %v2222_v34  ;;  %v2223_v48 = vld [vmem:[#allocation10 + $0xcb0] sm:$0xff]  ;;  %v2246_v34 = vld [vmem:[#allocation10 + $0xd68] sm:$0xff]  ;;  %v2248_v25 = vld [vmem:[#allocation10 + $0xd78] sm:$0xff] }
 0x648   :  { %5432 = vmatprep.subr.bf16.mxu0 %v5431_v53  ;;  %v2201_v53 = vld [vmem:[#allocation10 + $0xc00] sm:$0xff] }
 0x64b   :  { %5434 = vmatpush1.bf16.msra.mxu0 %v5433_v30  ;;  %v5453_v30 = vpack.c.bf16 %v2203_v47, %v2201_v53 }
 0x64c   :  { %5436 = vmatprep.subr.bf16.mxu0 %v5435_v61  ;;  %v5455_v61 = vpack.c.bf16 %v2208_v36, %v2206_v60  ;;  %v2225_v60 = vld [vmem:[#allocation10 + $0xcc0] sm:$0xff]  ;;  %v2227_v36 = vld [vmem:[#allocation10 + $0xcd0] sm:$0xff] }
 0x64f   :  { %5438 = vmatpush1.bf16.msra.mxu0 %v5437_v10  ;;  %v1750_v10 = vsel %vm1576_vm8, %v6077_v11, %v6078_v63  ;;  %v2218_v11 = vld [vmem:[#allocation10 + $0xc88] sm:$0xff] }
 0x650   :  { %5440 = vmatprep.subr.bf16.mxu0 %v5439_v31  ;;  %v5457_v31 = vpack.c.bf16 %v2207_v16, %v2205_v3  ;;  %v5467_v58 = vpack.c.bf16 %v2220_v37, %v2218_v11  ;;  %v2230_v63 = vld [vmem:[#allocation10 + $0xce8] sm:$0xff]  ;;  %v2229_v16 = vld [vmem:[#allocation10 + $0xce0] sm:$0xff]  ;;  %v2244_v37 = vld [vmem:[#allocation10 + $0xd58] sm:$0xff] }
 0x651   :  { %v2242_v11 = vld [vmem:[#allocation10 + $0xd48] sm:$0xff] }
 0x653   :  { %5442 = vmatpush1.bf16.msra.mxu0 %v5441_v45  ;;  %v2216_v45 = vld [vmem:[#allocation10 + $0xc78] sm:$0xff] }
 0x654   :  { %5444 = vmatprep.subr.bf16.mxu0 %v5443_v23  ;;  %v5461_v23 = vpack.c.bf16 %v2211_v28, %v2209_v14  ;;  %v2233_v14 = vld [vmem:[#allocation10 + $0xd00] sm:$0xff]  ;;  %v2235_v28 = vld [vmem:[#allocation10 + $0xd10] sm:$0xff] }
 0x657   :  { %5446 = vmatpush1.bf16.msra.mxu0 %v5445_v33  ;;  %v2217_v33 = vld [vmem:[#allocation10 + $0xc80] sm:$0xff] }
 0x658   :  { %5448 = vmatprep.subr.bf16.mxu0 %v5447_v17  ;;  %v2219_v17 = vld [vmem:[#allocation10 + $0xc90] sm:$0xff] }
 0x65b   :  { %5450 = vmatpush1.bf16.msra.mxu0 %v5449_v20  ;;  %v2226_v20 = vld [vmem:[#allocation10 + $0xcc8] sm:$0xff] }
 0x65c   :  { %5452 = vmatprep.subr.bf16.mxu0 %v5451_v52  ;;  %v2228_v52 = vld [vmem:[#allocation10 + $0xcd8] sm:$0xff] }
 0x65d   :  { %v5475_v47 = vpack.c.bf16 %v2228_v52, %v2226_v20  ;;  %v2250_v20 = vld [vmem:[#allocation10 + $0xd88] sm:$0xff]  ;;  %v2252_v52 = vld [vmem:[#allocation10 + $0xd98] sm:$0xff] }
 0x65e   :  { %2843 = vmatmul.mubr.f32.vlgmr.msra.gmra.mrb[4].mxu0 %v7040_v51  ;;  %v5463_v51 = vpack.c.bf16 %v2216_v45, %v2214_v26  ;;  %v2238_v26 = vld [vmem:[#allocation10 + $0xd28] sm:$0xff]  ;;  %v2240_v45 = vld [vmem:[#allocation10 + $0xd38] sm:$0xff] }
 0x65f   :  { %2848 = vmatprep.mubr.f32.mxu0 %v1750_v10  ;;  %5454 = vmatpush1.bf16.msra.mxu0 %v5453_v30  ;;  %v2232_v30 = vld [vmem:[#allocation10 + $0xcf8] sm:$0xff] }
 0x660   :  { %5456 = vmatprep.subr.bf16.mxu0 %v5455_v61  ;;  %v5477_v61 = vpack.c.bf16 %v2227_v36, %v2225_v60  ;;  %v5479_v3 = vpack.c.bf16 %v2232_v30, %v2230_v63  ;;  %v2236_v10 = vld [vmem:[#allocation10 + $0xd18] sm:$0xff]  ;;  %v2249_v60 = vld [vmem:[#allocation10 + $0xd80] sm:$0xff]  ;;  %v2251_v36 = vld [vmem:[#allocation10 + $0xd90] sm:$0xff] }
 0x661   :  { %v2254_v63 = vld [vmem:[#allocation10 + $0xda8] sm:$0xff]  ;;  %v2256_v30 = vld [vmem:[#allocation10 + $0xdb8] sm:$0xff] }
 0x662   :  { %2849 = vmatmul.mubr.f32.gmra.mrb[6].mxu0 %v7048_v7  ;;  %v5469_v7 = vpack.c.bf16 %v2219_v17, %v2217_v33  ;;  %v2241_v33 = vld [vmem:[#allocation10 + $0xd40] sm:$0xff]  ;;  %v2243_v17 = vld [vmem:[#allocation10 + $0xd50] sm:$0xff] }
 0x663   :  { %5458 = vmatpush1.bf16.msra.mxu0 %v5457_v31  ;;  %2919 = vmatprep.mubr.f32.mxu0 %v6974_v40  ;;  %v2221_v40 = vld [vmem:[#allocation10 + $0xca0] sm:$0xff]  ;;  %v5481_v31 = vpack.c.bf16 %v2231_v5, %v2229_v16  ;;  %v2255_v5 = vld [vmem:[#allocation10 + $0xdb0] sm:$0xff] }
 0x664   :  { %5460 = vmatprep.subr.bf16.mxu0 %v5459_v39  ;;  %v5473_v53 = vpack.c.bf16 %v2223_v48, %v2221_v40  ;;  %v5483_v39 = vpack.c.bf16 %v2236_v10, %v2234_v19  ;;  %v2245_v40 = vld [vmem:[#allocation10 + $0xd60] sm:$0xff]  ;;  %v2247_v48 = vld [vmem:[#allocation10 + $0xd70] sm:$0xff]  ;;  %v2258_v10 = vld [vmem:[#allocation10 + $0xdc8] sm:$0xff] }
 0x665   :  { %v2253_v16 = vld [vmem:[#allocation10 + $0xda0] sm:$0xff] }
 0x667   :  { %5462 = vmatpush1.bf16.msra.mxu0 %v5461_v23  ;;  %v5485_v23 = vpack.c.bf16 %v2235_v28, %v2233_v14  ;;  %v5505_v14 = vpack.c.bf16 %v2255_v5, %v2253_v16  ;;  %v2278_v16 = vld [vmem:[#allocation10 + $0xe68] sm:$0xff]  ;;  %v2280_v5 = vld [vmem:[#allocation10 + $0xe78] sm:$0xff] }
 0x668   :  { %5464 = vmatprep.subr.bf16.mxu0 %v5463_v51  ;;  %v5487_v51 = vpack.c.bf16 %v2240_v45, %v2238_v26  ;;  %v2257_v26 = vld [vmem:[#allocation10 + $0xdc0] sm:$0xff]  ;;  %v2259_v45 = vld [vmem:[#allocation10 + $0xdd0] sm:$0xff] }
 0x66b   :  { %5466 = vmatpush1.bf16.msra.mxu0 %v5465_v21  ;;  %v5489_v21 = vpack.c.bf16 %v2239_v29, %v2237_v38  ;;  %v5509_v29 = vpack.c.bf16 %v2259_v45, %v2257_v26 }
 0x66c   :  { %5468 = vmatprep.subr.bf16.mxu0 %v5467_v58  ;;  %v5491_v58 = vpack.c.bf16 %v2244_v37, %v2242_v11 }
 0x66f   :  { %5470 = vmatpush1.bf16.msra.mxu0 %v5469_v7  ;;  %v5493_v7 = vpack.c.bf16 %v2243_v17, %v2241_v33  ;;  %v2266_v33 = vld [vmem:[#allocation10 + $0xe08] sm:$0xff]  ;;  %v2268_v17 = vld [vmem:[#allocation10 + $0xe18] sm:$0xff] }
 0x670   :  { %5472 = vmatprep.subr.bf16.mxu0 %v5471_v46  ;;  %v5495_v46 = vpack.c.bf16 %v2248_v25, %v2246_v34  ;;  %v5515_v25 = vpack.c.bf16 %v2268_v17, %v2266_v33  ;;  %v2290_v33 = vld [vmem:[#allocation10 + $0xec8] sm:$0xff]  ;;  %v2292_v17 = vld [vmem:[#allocation10 + $0xed8] sm:$0xff] }
 0x673   :  { %5474 = vmatpush1.bf16.msra.mxu0 %v5473_v53  ;;  %v5497_v53 = vpack.c.bf16 %v2247_v48, %v2245_v40  ;;  %v2270_v40 = vld [vmem:[#allocation10 + $0xe28] sm:$0xff]  ;;  %v2272_v48 = vld [vmem:[#allocation10 + $0xe38] sm:$0xff] }
 0x674   :  { %5476 = vmatprep.subr.bf16.mxu0 %v5475_v47  ;;  %v5499_v47 = vpack.c.bf16 %v2252_v52, %v2250_v20  ;;  %v5519_v52 = vpack.c.bf16 %v2272_v48, %v2270_v40  ;;  %v2294_v40 = vld [vmem:[#allocation10 + $0xee8] sm:$0xff]  ;;  %v2296_v48 = vld [vmem:[#allocation10 + $0xef8] sm:$0xff] }
 0x677   :  { %5478 = vmatpush1.bf16.msra.mxu0 %v5477_v61  ;;  %v5501_v61 = vpack.c.bf16 %v2251_v36, %v2249_v60  ;;  %v2274_v60 = vld [vmem:[#allocation10 + $0xe48] sm:$0xff]  ;;  %v2276_v36 = vld [vmem:[#allocation10 + $0xe58] sm:$0xff] }
 0x678   :  { %5480 = vmatprep.subr.bf16.mxu0 %v5479_v3  ;;  %v5503_v3 = vpack.c.bf16 %v2256_v30, %v2254_v63  ;;  %v5523_v30 = vpack.c.bf16 %v2276_v36, %v2274_v60  ;;  %v2298_v60 = vld [vmem:[#allocation10 + $0xf08] sm:$0xff]  ;;  %v2300_v36 = vld [vmem:[#allocation10 + $0xf18] sm:$0xff] }
 0x67b   :  { %5482 = vmatpush1.bf16.msra.mxu0 %v5481_v31  ;;  %v2260_v31 = vld [vmem:[#allocation10 + $0xdd8] sm:$0xff] }
 0x67c   :  { %5484 = vmatprep.subr.bf16.mxu0 %v5483_v39  ;;  %v5507_v28 = vpack.c.bf16 %v2260_v31, %v2258_v10  ;;  %v5527_v31 = vpack.c.bf16 %v2280_v5, %v2278_v16  ;;  %v2302_v16 = vld [vmem:[#allocation10 + $0xf28] sm:$0xff]  ;;  %v2304_v5 = vld [vmem:[#allocation10 + $0xf38] sm:$0xff] }
 0x67f   :  { %5486 = vmatpush1.bf16.msra.mxu0 %v5485_v23  ;;  %v2262_v23 = vld [vmem:[#allocation10 + $0xde8] sm:$0xff] }
 0x680   :  { %5488 = vmatprep.subr.bf16.mxu0 %v5487_v51  ;;  %v2264_v51 = vld [vmem:[#allocation10 + $0xdf8] sm:$0xff] }
 0x681   :  { %v5511_v37 = vpack.c.bf16 %v2264_v51, %v2262_v23  ;;  %v2281_v23 = vld [vmem:[#allocation10 + $0xe80] sm:$0xff]  ;;  %v2283_v51 = vld [vmem:[#allocation10 + $0xe90] sm:$0xff] }
 0x683   :  { %5490 = vmatpush1.bf16.msra.mxu0 %v5489_v21  ;;  %v2261_v21 = vld [vmem:[#allocation10 + $0xde0] sm:$0xff] }
 0x684   :  { %5492 = vmatprep.subr.bf16.mxu0 %v5491_v58  ;;  %v2263_v58 = vld [vmem:[#allocation10 + $0xdf0] sm:$0xff] }
 0x685   :  { %v5513_v34 = vpack.c.bf16 %v2263_v58, %v2261_v21  ;;  %v2287_v58 = vld [vmem:[#allocation10 + $0xeb0] sm:$0xff] }
 0x687   :  { %5494 = vmatpush1.bf16.msra.mxu0 %v5493_v7  ;;  %v2265_v7 = vld [vmem:[#allocation10 + $0xe00] sm:$0xff] }
 0x688   :  { %5496 = vmatprep.subr.bf16.mxu0 %v5495_v46  ;;  %v2267_v46 = vld [vmem:[#allocation10 + $0xe10] sm:$0xff] }
 0x689   :  { %v5517_v20 = vpack.c.bf16 %v2267_v46, %v2265_v7  ;;  %v2289_v7 = vld [vmem:[#allocation10 + $0xec0] sm:$0xff]  ;;  %v2291_v46 = vld [vmem:[#allocation10 + $0xed0] sm:$0xff] }
 0x68b   :  { %5498 = vmatpush1.bf16.msra.mxu0 %v5497_v53  ;;  %v2269_v53 = vld [vmem:[#allocation10 + $0xe20] sm:$0xff] }
 0x68c   :  { %5500 = vmatprep.subr.bf16.mxu0 %v5499_v47  ;;  %v2271_v47 = vld [vmem:[#allocation10 + $0xe30] sm:$0xff] }
 0x68d   :  { %v7107_v19 = vpop.f32.mrb[8].mxu1  ;;  %v5521_v63 = vpack.c.bf16 %v2271_v47, %v2269_v53  ;;  %v2293_v53 = vld [vmem:[#allocation10 + $0xee0] sm:$0xff]  ;;  %v2295_v47 = vld [vmem:[#allocation10 + $0xef0] sm:$0xff] }
 0x68e   :  { %v7109_v39 = vpop.f32.mrb[9].mxu1 }
 0x68f   :  { %5502 = vmatpush1.bf16.msra.mxu0 %v5501_v61  ;;  %v2273_v61 = vld [vmem:[#allocation10 + $0xe40] sm:$0xff] }
 0x690   :  { %5504 = vmatprep.subr.bf16.mxu0 %v5503_v3  ;;  %v2275_v3 = vld [vmem:[#allocation10 + $0xe50] sm:$0xff] }
 0x691   :  { %v5525_v10 = vpack.c.bf16 %v2275_v3, %v2273_v61  ;;  %v2297_v61 = vld [vmem:[#allocation10 + $0xf00] sm:$0xff]  ;;  %v2299_v3 = vld [vmem:[#allocation10 + $0xf10] sm:$0xff] }
 0x693   :  { %5506 = vmatpush1.bf16.msra.mxu0 %v5505_v14  ;;  %v2277_v14 = vld [vmem:[#allocation10 + $0xe60] sm:$0xff] }
 0x694   :  { %5508 = vmatprep.subr.bf16.mxu0 %v5507_v28  ;;  %v2282_v28 = vld [vmem:[#allocation10 + $0xe88] sm:$0xff] }
 0x695   :  { %v7111_v38 = vpop.f32.mrb[10].mxu1 }
 0x696   :  { %v7113_v11 = vpop.f32.mrb[11].mxu1 }
 0x697   :  { %5510 = vmatpush1.bf16.msra.mxu0 %v5509_v29  ;;  %v2286_v29 = vld [vmem:[#allocation10 + $0xea8] sm:$0xff] }
 0x698   :  { %5512 = vmatprep.subr.bf16.mxu0 %v5511_v37  ;;  %v2288_v37 = vld [vmem:[#allocation10 + $0xeb8] sm:$0xff] }
 0x699   :  { %v5535_v21 = vpack.c.bf16 %v2288_v37, %v2286_v29  ;;  %v2310_v29 = vld [vmem:[#allocation10 + $0xf68] sm:$0xff]  ;;  %v2312_v37 = vld [vmem:[#allocation10 + $0xf78] sm:$0xff] }
 0x69b   :  { %5514 = vmatpush1.bf16.msra.mxu0 %v5513_v34 }
 0x69c   :  { %5516 = vmatprep.subr.bf16.mxu0 %v5515_v25  ;;  %v5539_v25 = vpack.c.bf16 %v2292_v17, %v2290_v33  ;;  %v2314_v33 = vld [vmem:[#allocation10 + $0xf88] sm:$0xff]  ;;  %v2316_v17 = vld [vmem:[#allocation10 + $0xf98] sm:$0xff] }
 0x69e   :  { %2920 = vmatmul.mubr.f32.vlgmr.msra.gmra.mrb[4].mxu0 %v6979_v13  ;;  %v2279_v13 = vld [vmem:[#allocation10 + $0xe70] sm:$0xff] }
 0x69f   :  { %2925 = vmatprep.mubr.f32.mxu0 %v6998_v41  ;;  %5518 = vmatpush1.bf16.msra.mxu0 %v5517_v20  ;;  %v2284_v41 = vld [vmem:[#allocation10 + $0xe98] sm:$0xff]  ;;  %v5529_v26 = vpack.c.bf16 %v2279_v13, %v2277_v14  ;;  %v5541_v20 = vpack.c.bf16 %v2291_v46, %v2289_v7  ;;  %v2301_v14 = vld [vmem:[#allocation10 + $0xf20] sm:$0xff]  ;;  %v2303_v13 = vld [vmem:[#allocation10 + $0xf30] sm:$0xff] }
 0x6a0   :  { %5520 = vmatprep.subr.bf16.mxu0 %v5519_v52  ;;  %v5531_v45 = vpack.c.bf16 %v2284_v41, %v2282_v28  ;;  %v5543_v52 = vpack.c.bf16 %v2296_v48, %v2294_v40  ;;  %v2306_v28 = vld [vmem:[#allocation10 + $0xf48] sm:$0xff]  ;;  %v2308_v41 = vld [vmem:[#allocation10 + $0xf58] sm:$0xff]  ;;  %v2313_v7 = vld [vmem:[#allocation10 + $0xf80] sm:$0xff] }
 0x6a1   :  { %v2315_v46 = vld [vmem:[#allocation10 + $0xf90] sm:$0xff]  ;;  %v2318_v40 = vld [vmem:[#allocation10 + $0xfa8] sm:$0xff]  ;;  %v2320_v48 = vld [vmem:[#allocation10 + $0xfb8] sm:$0xff] }
 0x6a2   :  { %2926 = vmatmul.mubr.f32.gmra.mrb[6].mxu0 %v6982_v18  ;;  %v5533_v18 = vpack.c.bf16 %v2283_v51, %v2281_v23  ;;  %v2305_v23 = vld [vmem:[#allocation10 + $0xf40] sm:$0xff]  ;;  %v2307_v51 = vld [vmem:[#allocation10 + $0xf50] sm:$0xff] }
 0x6a3   :  { %5522 = vmatpush1.bf16.msra.mxu0 %v5521_v63  ;;  %2996 = vmatprep.mubr.f32.mxu0 %v7051_v27  ;;  %v2285_v27 = vld [vmem:[#allocation10 + $0xea0] sm:$0xff]  ;;  %v5545_v63 = vpack.c.bf16 %v2295_v47, %v2293_v53  ;;  %v2319_v47 = vld [vmem:[#allocation10 + $0xfb0] sm:$0xff] }
 0x6a4   :  { %5524 = vmatprep.subr.bf16.mxu0 %v5523_v30  ;;  %v5537_v34 = vpack.c.bf16 %v2287_v58, %v2285_v27  ;;  %v5547_v30 = vpack.c.bf16 %v2300_v36, %v2298_v60  ;;  %v2309_v27 = vld [vmem:[#allocation10 + $0xf60] sm:$0xff]  ;;  %v2311_v58 = vld [vmem:[#allocation10 + $0xf70] sm:$0xff]  ;;  %v2322_v60 = vld [vmem:[#allocation10 + $0xfc8] sm:$0xff] }
 0x6a5   :  { %v2317_v53 = vld [vmem:[#allocation10 + $0xfa0] sm:$0xff]  ;;  %v2324_v36 = vld [vmem:[#allocation10 + $0xfd8] sm:$0xff] }
 0x6a7   :  { %5526 = vmatpush1.bf16.msra.mxu0 %v5525_v10  ;;  %v5549_v10 = vpack.c.bf16 %v2299_v3, %v2297_v61  ;;  %v2321_v61 = vld [vmem:[#allocation10 + $0xfc0] sm:$0xff]  ;;  %v2323_v3 = vld [vmem:[#allocation10 + $0xfd0] sm:$0xff] }
 0x6a8   :  { %5528 = vmatprep.subr.bf16.mxu0 %v5527_v31  ;;  %v5551_v31 = vpack.c.bf16 %v2304_v5, %v2302_v16  ;;  %v2326_v16 = vld [vmem:[#allocation10 + $0xfe8] sm:$0xff]  ;;  %v2328_v5 = vld [vmem:[#allocation10 + $0xff8] sm:$0xff] }
 0x6ab   :  { %5530 = vmatpush1.bf16.msra.mxu0 %v5529_v26  ;;  %v5553_v26 = vpack.c.bf16 %v2303_v13, %v2301_v14  ;;  %v2325_v14 = vld [vmem:[#allocation10 + $0xfe0] sm:$0xff]  ;;  %v2327_v13 = vld [vmem:[#allocation10 + $0xff0] sm:$0xff] }
 0x6ac   :  { %5532 = vmatprep.subr.bf16.mxu0 %v5531_v45  ;;  %v5555_v45 = vpack.c.bf16 %v2308_v41, %v2306_v28  ;;  %v2330_v28 = vld [vmem:[#allocation10 + $0x1008] sm:$0xff]  ;;  %v2332_v41 = vld [vmem:[#allocation10 + $0x1018] sm:$0xff] }
 0x6af   :  { %5534 = vmatpush1.bf16.msra.mxu0 %v5533_v18  ;;  %v5557_v18 = vpack.c.bf16 %v2307_v51, %v2305_v23  ;;  %v2329_v23 = vld [vmem:[#allocation10 + $0x1000] sm:$0xff]  ;;  %v2331_v51 = vld [vmem:[#allocation10 + $0x1010] sm:$0xff] }
 0x6b0   :  { %5536 = vmatprep.subr.bf16.mxu0 %v5535_v21  ;;  %v5559_v21 = vpack.c.bf16 %v2312_v37, %v2310_v29  ;;  %v2334_v29 = vld [vmem:[#allocation10 + $0x1028] sm:$0xff]  ;;  %v2336_v37 = vld [vmem:[#allocation10 + $0x1038] sm:$0xff] }
 0x6b3   :  { %5538 = vmatpush1.bf16.msra.mxu0 %v5537_v34  ;;  %v5561_v34 = vpack.c.bf16 %v2311_v58, %v2309_v27  ;;  %v5583_v27 = vpack.c.bf16 %v2336_v37, %v2334_v29  ;;  %v2333_v58 = vld [vmem:[#allocation10 + $0x1020] sm:$0xff]  ;;  %v2355_v29 = vld [vmem:[#allocation10 + $0x10d0] sm:$0xff]  ;;  %v2358_v37 = vld [vmem:[#allocation10 + $0x10e8] sm:$0xff] }
 0x6b4   :  { %5540 = vmatprep.subr.bf16.mxu0 %v5539_v25  ;;  %v5563_v25 = vpack.c.bf16 %v2316_v17, %v2314_v33  ;;  %v2335_v33 = vld [vmem:[#allocation10 + $0x1030] sm:$0xff]  ;;  %v2338_v17 = vld [vmem:[#allocation10 + $0x1048] sm:$0xff] }
 0x6b7   :  { %5542 = vmatpush1.bf16.msra.mxu0 %v5541_v20  ;;  %v5565_v20 = vpack.c.bf16 %v2315_v46, %v2313_v7  ;;  %v6097_v7 = vunpack.i.l.bf16 %v7056_v35 }
 0x6b8   :  { %5544 = vmatprep.subr.bf16.mxu0 %v5543_v52  ;;  %v5567_v52 = vpack.c.bf16 %v2320_v48, %v2318_v40  ;;  %v5585_v40 = vpack.c.bf16 %v2335_v33, %v2333_v58  ;;  %v2357_v58 = vld [vmem:[#allocation10 + $0x10e0] sm:$0xff]  ;;  %v2359_v33 = vld [vmem:[#allocation10 + $0x10f0] sm:$0xff] }
 0x6bb   :  { %5546 = vmatpush1.bf16.msra.mxu0 %v5545_v63  ;;  %v5569_v63 = vpack.c.bf16 %v2319_v47, %v2317_v53  ;;  %v2342_v53 = vld [vmem:[#allocation10 + $0x1068] sm:$0xff]  ;;  %v2344_v47 = vld [vmem:[#allocation10 + $0x1078] sm:$0xff] }
 0x6bc   :  { %5548 = vmatprep.subr.bf16.mxu0 %v5547_v30  ;;  %v5571_v30 = vpack.c.bf16 %v2324_v36, %v2322_v60  ;;  %v2343_v36 = vld [vmem:[#allocation10 + $0x1070] sm:$0xff] }
 0x6bf   :  { %5550 = vmatpush1.bf16.msra.mxu0 %v5549_v10  ;;  %v5573_v10 = vpack.c.bf16 %v2323_v3, %v2321_v61 }
 0x6c0   :  { %5552 = vmatprep.subr.bf16.mxu0 %v5551_v31  ;;  %v5575_v31 = vpack.c.bf16 %v2328_v5, %v2326_v16  ;;  %v2345_v16 = vld [vmem:[#allocation10 + $0x1080] sm:$0xff]  ;;  %v2347_v5 = vld [vmem:[#allocation10 + $0x1090] sm:$0xff] }
 0x6c3   :  { %5554 = vmatpush1.bf16.msra.mxu0 %v5553_v26  ;;  %v5577_v26 = vpack.c.bf16 %v2327_v13, %v2325_v14  ;;  %v2349_v13 = vld [vmem:[#allocation10 + $0x10a0] sm:$0xff] }
 0x6c4   :  { %5556 = vmatprep.subr.bf16.mxu0 %v5555_v45  ;;  %v5579_v45 = vpack.c.bf16 %v2332_v41, %v2330_v28  ;;  %v2351_v28 = vld [vmem:[#allocation10 + $0x10b0] sm:$0xff]  ;;  %v2354_v41 = vld [vmem:[#allocation10 + $0x10c8] sm:$0xff] }
 0x6c7   :  { %5558 = vmatpush1.bf16.msra.mxu0 %v5557_v18  ;;  %v6108_v18 = vunpack.i.h.bf16 %v7060_v57  ;;  %v5591_v57 = vpack.c.bf16 %v2344_v47, %v2342_v53 }
 0x6c8   :  { %5560 = vmatprep.subr.bf16.mxu0 %v5559_v21  ;;  %v5581_v21 = vpack.c.bf16 %v2331_v51, %v2329_v23  ;;  %v2353_v51 = vld [vmem:[#allocation10 + $0x10c0] sm:$0xff] }
 0x6c9   :  { %v1792_v46 = vsel %vm1658_vm14, %v6107_v8, %v6108_v18  ;;  %v2341_v8 = vld [vmem:[#allocation10 + $0x1060] sm:$0xff]  ;;  %v2360_v18 = vld [vmem:[#allocation10 + $0x10f8] sm:$0xff] }
 0x6ca   :  { %v5593_v61 = vpack.c.bf16 %v2343_v36, %v2341_v8  ;;  %v2372_v8 = vld [vmem:[#allocation10 + $0x1158] sm:$0xff] }
 0x6cb   :  { %5562 = vmatpush1.bf16.msra.mxu0 %v5561_v34  ;;  %v2340_v34 = vld [vmem:[#allocation10 + $0x1058] sm:$0xff] }
 0x6cc   :  { %5564 = vmatprep.subr.bf16.mxu0 %v5563_v25  ;;  %v6098_v25 = vunpack.i.h.bf16 %v7056_v35  ;;  %v5587_v48 = vpack.c.bf16 %v2340_v34, %v2338_v17  ;;  %v2362_v17 = vld [vmem:[#allocation10 + $0x1108] sm:$0xff]  ;;  %v2364_v34 = vld [vmem:[#allocation10 + $0x1118] sm:$0xff] }
 0x6ce   :  { %v1810_v60 = vsel %vm1576_vm8, %v6097_v7, %v6098_v25  ;;  %v5609_v25 = vpack.c.bf16 %v2359_v33, %v2357_v58  ;;  %v2388_v58 = vld [vmem:[#allocation10 + $0x11d8] sm:$0xff] }
 0x6cf   :  { %5566 = vmatpush1.bf16.msra.mxu0 %v5565_v20  ;;  %v2337_v20 = vld [vmem:[#allocation10 + $0x1040] sm:$0xff] }
 0x6d0   :  { %5568 = vmatprep.subr.bf16.mxu0 %v5567_v52  ;;  %v2339_v52 = vld [vmem:[#allocation10 + $0x1050] sm:$0xff] }
 0x6d3   :  { %5570 = vmatpush1.bf16.msra.mxu0 %v5569_v63  ;;  %v2346_v63 = vld [vmem:[#allocation10 + $0x1088] sm:$0xff] }
 0x6d4   :  { %5572 = vmatprep.subr.bf16.mxu0 %v5571_v30  ;;  %v2348_v30 = vld [vmem:[#allocation10 + $0x1098] sm:$0xff] }
 0x6d5   :  { %v5595_v3 = vpack.c.bf16 %v2348_v30, %v2346_v63  ;;  %v2369_v30 = vld [vmem:[#allocation10 + $0x1140] sm:$0xff] }
 0x6d7   :  { %5574 = vmatpush1.bf16.msra.mxu0 %v5573_v10  ;;  %v2352_v10 = vld [vmem:[#allocation10 + $0x10b8] sm:$0xff] }
 0x6d8   :  { %5576 = vmatprep.subr.bf16.mxu0 %v5575_v31  ;;  %v5597_v31 = vpack.c.bf16 %v2347_v5, %v2345_v16  ;;  %v2376_v16 = vld [vmem:[#allocation10 + $0x1178] sm:$0xff] }
 0x6db   :  { %5578 = vmatpush1.bf16.msra.mxu0 %v5577_v26  ;;  %v2356_v26 = vld [vmem:[#allocation10 + $0x10d8] sm:$0xff] }
 0x6dc   :  { %5580 = vmatprep.subr.bf16.mxu0 %v5579_v45  ;;  %v5601_v45 = vpack.c.bf16 %v2351_v28, %v2349_v13  ;;  %v5603_v23 = vpack.c.bf16 %v2356_v26, %v2354_v41  ;;  %v2380_v13 = vld [vmem:[#allocation10 + $0x1198] sm:$0xff]  ;;  %v2377_v26 = vld [vmem:[#allocation10 + $0x1180] sm:$0xff] }
 0x6de   :  { %2997 = vmatmul.mubr.f32.vlgmr.msra.gmra.mrb[4].mxu0 %v7054_v32  ;;  %v5589_v32 = vpack.c.bf16 %v2339_v52, %v2337_v20  ;;  %v2366_v20 = vld [vmem:[#allocation10 + $0x1128] sm:$0xff]  ;;  %v2368_v52 = vld [vmem:[#allocation10 + $0x1138] sm:$0xff] }
 0x6df   :  { %3002 = vmatprep.mubr.f32.mxu0 %v1792_v46  ;;  %5582 = vmatpush1.bf16.msra.mxu0 %v5581_v21  ;;  %v5605_v21 = vpack.c.bf16 %v2355_v29, %v2353_v51  ;;  %v5611_v46 = vpack.c.bf16 %v2364_v34, %v2362_v17  ;;  %v5615_v47 = vpack.c.bf16 %v2368_v52, %v2366_v20  ;;  %v2384_v51 = vld [vmem:[#allocation10 + $0x11b8] sm:$0xff]  ;;  %v2385_v34 = vld [vmem:[#allocation10 + $0x11c0] sm:$0xff] }
 0x6e0   :  { %5584 = vmatprep.subr.bf16.mxu0 %v5583_v27  ;;  %v5607_v27 = vpack.c.bf16 %v2360_v18, %v2358_v37  ;;  %v2381_v18 = vld [vmem:[#allocation10 + $0x11a0] sm:$0xff] }
 0x6e2   :  { %3003 = vmatmul.mubr.f32.gmra.mrb[6].mxu0 %v7067_v42  ;;  %v2350_v42 = vld [vmem:[#allocation10 + $0x10a8] sm:$0xff] }
 0x6e3   :  { %5586 = vmatpush1.bf16.msra.mxu0 %v5585_v40  ;;  %3073 = vmatprep.mubr.f32.mxu0 %v1810_v60  ;;  %v5599_v14 = vpack.c.bf16 %v2352_v10, %v2350_v42  ;;  %v2361_v40 = vld [vmem:[#allocation10 + $0x1100] sm:$0xff] }
 0x6e4   :  { %5588 = vmatprep.subr.bf16.mxu0 %v5587_v48  ;;  %v2363_v48 = vld [vmem:[#allocation10 + $0x1110] sm:$0xff]  ;;  %v2365_v60 = vld [vmem:[#allocation10 + $0x1120] sm:$0xff] }
 0x6e5   :  { %v5613_v53 = vpack.c.bf16 %v2363_v48, %v2361_v40  ;;  %v2373_v10 = vld [vmem:[#allocation10 + $0x1160] sm:$0xff]  ;;  %v2390_v40 = vld [vmem:[#allocation10 + $0x11e8] sm:$0xff]  ;;  %v2392_v48 = vld [vmem:[#allocation10 + $0x11f8] sm:$0xff] }
 0x6e6   :  { %v5639_v52 = vpack.c.bf16 %v2392_v48, %v2390_v40 }
 0x6e7   :  { %5590 = vmatpush1.bf16.msra.mxu0 %v5589_v32  ;;  %v2367_v32 = vld [vmem:[#allocation10 + $0x1130] sm:$0xff] }
 0x6e8   :  { %5592 = vmatprep.subr.bf16.mxu0 %v5591_v57  ;;  %v2370_v57 = vld [vmem:[#allocation10 + $0x1148] sm:$0xff]  ;;  %v5617_v36 = vpack.c.bf16 %v2367_v32, %v2365_v60 }
 0x6e9   :  { %v5619_v63 = vpack.c.bf16 %v2372_v8, %v2370_v57 }
 0x6eb   :  { %5594 = vmatpush1.bf16.msra.mxu0 %v5593_v61  ;;  %v2371_v61 = vld [vmem:[#allocation10 + $0x1150] sm:$0xff] }
 0x6ec   :  { %5596 = vmatprep.subr.bf16.mxu0 %v5595_v3  ;;  %v2374_v3 = vld [vmem:[#allocation10 + $0x1168] sm:$0xff]  ;;  %v5621_v5 = vpack.c.bf16 %v2371_v61, %v2369_v30 }
 0x6ed   :  { %v5623_v42 = vpack.c.bf16 %v2376_v16, %v2374_v3 }
 0x6ef   :  { %5598 = vmatpush1.bf16.msra.mxu0 %v5597_v31  ;;  %v2375_v31 = vld [vmem:[#allocation10 + $0x1170] sm:$0xff] }
 0x6f0   :  { %5600 = vmatprep.subr.bf16.mxu0 %v5599_v14  ;;  %v2378_v14 = vld [vmem:[#allocation10 + $0x1188] sm:$0xff]  ;;  %v5625_v28 = vpack.c.bf16 %v2375_v31, %v2373_v10 }
 0x6f1   :  { %v5627_v41 = vpack.c.bf16 %v2380_v13, %v2378_v14 }
 0x6f3   :  { %5602 = vmatpush1.bf16.msra.mxu0 %v5601_v45  ;;  %v2379_v45 = vld [vmem:[#allocation10 + $0x1190] sm:$0xff] }
 0x6f4   :  { %5604 = vmatprep.subr.bf16.mxu0 %v5603_v23  ;;  %v2382_v23 = vld [vmem:[#allocation10 + $0x11a8] sm:$0xff]  ;;  %v5629_v29 = vpack.c.bf16 %v2379_v45, %v2377_v26 }
 0x6f5   :  { %v5631_v37 = vpack.c.bf16 %v2384_v51, %v2382_v23 }
 0x6f7   :  { %5606 = vmatpush1.bf16.msra.mxu0 %v5605_v21  ;;  %v2383_v21 = vld [vmem:[#allocation10 + $0x11b0] sm:$0xff] }
 0x6f8   :  { %5608 = vmatprep.subr.bf16.mxu0 %v5607_v27  ;;  %v2386_v27 = vld [vmem:[#allocation10 + $0x11c8] sm:$0xff]  ;;  %v5633_v33 = vpack.c.bf16 %v2383_v21, %v2381_v18 }
 0x6f9   :  { %v5635_v17 = vpack.c.bf16 %v2388_v58, %v2386_v27 }
 0x6fb   :  { %5610 = vmatpush1.bf16.msra.mxu0 %v5609_v25  ;;  %v2387_v25 = vld [vmem:[#allocation10 + $0x11d0] sm:$0xff] }
 0x6fc   :  { %5612 = vmatprep.subr.bf16.mxu0 %v5611_v46  ;;  %v6111_v46 = vpop.permute.xlu0 %6110  ;;  %v5637_v20 = vpack.c.bf16 %v2387_v25, %v2385_v34 }
 0x6fd   :  { %v6112_v57 = vunpack.i.l.bf16 %v6111_v46 }
 0x6ff   :  { %5614 = vmatpush1.bf16.msra.mxu0 %v5613_v53  ;;  %v2389_v53 = vld [vmem:[#allocation10 + $0x11e0] sm:$0xff]  ;;  %v1809_v30 = vsel %vm1576_vm8, %v6112_v57, %v6097_v7 }
 0x700   :  { %5616 = vmatprep.subr.bf16.mxu0 %v5615_v47  ;;  %v2391_v47 = vld [vmem:[#allocation10 + $0x11f0] sm:$0xff]  ;;  %v6116_v60 = vpop.permute.xlu0 %6115 }
 0x701   :  { %v5641_v32 = vpack.c.bf16 %v2391_v47, %v2389_v53  ;;  %v6117_v8 = vunpack.i.l.bf16 %v6116_v60 }
 0x703   :  { %5618 = vmatpush1.bf16.msra.mxu0 %v5617_v36  ;;  %v6113_v36 = vunpack.i.h.bf16 %v6111_v46 }
 0x704   :  { %5620 = vmatprep.subr.bf16.mxu0 %v5619_v63  ;;  %v6118_v63 = vunpack.i.h.bf16 %v6116_v60 }
 0x705   :  { %v1812_v61 = vsel %vm1576_vm8, %v6113_v36, %v6117_v8 }
 0x706   :  { %v1811_v3 = vsel %vm1576_vm8, %v6118_v63, %v6113_v36 }
 0x707   :  { %5622 = vmatpush1.bf16.msra.mxu0 %v5621_v5 }
 0x708   :  { %5624 = vmatprep.subr.bf16.mxu0 %v5623_v42 }
 0x70b   :  { %5626 = vmatpush1.bf16.msra.mxu0 %v5625_v28 }
 0x70c   :  { %5628 = vmatprep.subr.bf16.mxu0 %v5627_v41 }
 0x70f   :  { %5630 = vmatpush1.bf16.msra.mxu0 %v5629_v29 }
 0x710   :  { %5632 = vmatprep.subr.bf16.mxu0 %v5631_v37 }
 0x713   :  { %5634 = vmatpush1.bf16.msra.mxu0 %v5633_v33 }
 0x714   :  { %5636 = vmatprep.subr.bf16.mxu0 %v5635_v17 }
 0x717   :  { %5638 = vmatpush1.bf16.msra.mxu0 %v5637_v20 }
 0x718   :  { %5640 = vmatprep.subr.bf16.mxu0 %v5639_v52 }
 0x71b   :  { %5642 = vmatpush1.bf16.msra.mxu0 %v5641_v32 }
 0x71e   :  { %3074 = vmatmul.mubr.f32.vlgmr.msra.gmra.mrb[4].mxu0 %v1809_v30 }
 0x71f   :  { %3079 = vmatprep.mubr.f32.mxu0 %v1812_v61 }
 0x722   :  { %3080 = vmatmul.mubr.f32.gmra.mrb[6].mxu0 %v1811_v3 }
 0x7f1   :  { %v3075_v16 = vpop.f32.mrb[4].mxu0 }
 0x7f2   :  { %v7136_v5 = vadd.f32 %v3075_v16, %v7107_v19  ;;  %v3077_v42 = vpop.f32.mrb[5].mxu0 }
 0x7f3   :  { %v7139_v10 = vadd.f32 %v3077_v42, %v7109_v39 }
 0x7f4   :  { %v3088_v31 = vrot.slane %v7136_v5, 4 }
 0x7f5   :  { %v3094_v35 = vrot.slane %v7139_v10, 4  ;;  %v3113_v7 = vmul.f32 %v7139_v10, %v7139_v10  ;;  %v3081_v14 = vpop.f32.mrb[6].mxu0 }
 0x7f6   :  { %v3089_v13 = vadd.f32 %v7136_v5, %v3088_v31  ;;  %v7147_v28 = vadd.f32 %v3081_v14, %v7111_v38  ;;  %v3083_v41 = vpop.f32.mrb[7].mxu0  ;;  %v3112_v14 = vmul.f32 %v7136_v5, %v7136_v5 }
 0x7f7   :  { %v3095_v19 = vadd.f32 %v7139_v10, %v3094_v35  ;;  %v3122_v26 = vrot.slane %v3113_v7, 4  ;;  %v7151_v39 = vadd.f32 %v3083_v41, %v7113_v11 }
 0x7f8   :  { %v3090_v45 = vrot.slane %v3089_v13, 2  ;;  %v3100_v23 = vrot.slane %v7147_v28, 4  ;;  %v3116_v41 = vrot.slane %v3112_v14, 4 }
 0x7f9   :  { %v3106_v51 = vrot.slane %v7151_v39, 4  ;;  %v3115_v29 = vmul.f32 %v7151_v39, %v7151_v39  ;;  %v3096_v37 = vrot.slane %v3095_v19, 2  ;;  %v3123_v18 = vadd.f32 %v3122_v26, %v3113_v7 }
 0x7fa   :  { %v3101_v38 = vadd.f32 %v7147_v28, %v3100_v23  ;;  %v3091_v17 = vadd.f32 %v3090_v45, %v3089_v13  ;;  %v3114_v7 = vmul.f32 %v7147_v28, %v7147_v28  ;;  %v6128_v45 = vld [vmem:[#allocation15] sm:$0xff] }
 0x7fb   :  { %v3107_v21 = vadd.f32 %v7151_v39, %v3106_v51  ;;  %v3134_v27 = vrot.slane %v3115_v29, 4  ;;  %v3097_v58 = vadd.f32 %v3096_v37, %v3095_v19  ;;  %v3124_v33 = vrot.slane %v3123_v18, 2 }
 0x7fc   :  { %v3102_v11 = vrot.slane %v3101_v38, 2  ;;  %v3092_v53 = vrot.slane %v3091_v17, 1  ;;  %v3128_v13 = vrot.slane %v3114_v7, 4  ;;  %v3117_v19 = vadd.f32 %v3116_v41, %v3112_v14  ;;  %v3671_v14 = vld [vmem:[#allocation16 + $0xd8] sm:$0xff]  ;;  %v3654_v41 = vld [vmem:[#allocation16 + $0x50] sm:$0xff] }
 0x7fd   :  { %v3108_v34 = vrot.slane %v3107_v21, 2  ;;  %v3125_v25 = vadd.f32 %v3124_v33, %v3123_v18  ;;  %v3135_v46 = vadd.f32 %v3134_v27, %v3115_v29  ;;  %v3098_v48 = vrot.slane %v3097_v58, 1  ;;  %v3645_v33 = vld [vmem:[#allocation16 + $0x8] sm:$0xff] }
 0x7fe   :  { %v3103_v40 = vadd.f32 %v3102_v11, %v3101_v38  ;;  %v3093_v61 = vadd.f32 %v3092_v53, %v3091_v17  ;;  %v3118_v26 = vrot.slane %v3117_v19, 2  ;;  %v3660_v38 = vld [vmem:[#allocation16 + $0x80] sm:$0xff]  ;;  %v3662_v11 = vld [vmem:[#allocation16 + $0x90] sm:$0xff] }
 0x7ff   :  { %v3109_v20 = vadd.f32 %v3108_v34, %v3107_v21  ;;  %v3136_v52 = vrot.slane %v3135_v46, 2  ;;  %v3126_v32 = vrot.slane %v3125_v25, 1  ;;  %v3099_v36 = vadd.f32 %v3098_v48, %v3097_v58  ;;  %v3661_v21 = vld [vmem:[#allocation16 + $0x88] sm:$0xff]  ;;  %v3644_v58 = vld [vmem:[#allocation16] sm:$0xff]  ;;  %v3663_v34 = vld [vmem:[#allocation16 + $0x98] sm:$0xff] }
 0x800   :  { %v3104_v47 = vrot.slane %v3103_v40, 1  ;;  %v5707_v27 = vpack.c.bf16 %v3661_v21, %v3660_v38  ;;  %v5709_v17 = vpack.c.bf16 %v3645_v33, %v3644_v58  ;;  %v3664_v48 = vld [vmem:[#allocation16 + $0xa0] sm:$0xff]  ;;  %v3086_v38 = vld [vmem:[#allocation12] sm:$0x3] }
 0x801   :  { %v3110_v60 = vrot.slane %v3109_v20, 1  ;;  %v3137_v57 = vadd.f32 %v3136_v52, %v3135_v46  ;;  %v3127_v16 = vadd.f32 %v3126_v32, %v3125_v25  ;;  %v5711_v25 = vpack.c.bf16 %v3663_v34, %v3662_v11  ;;  %v3647_v46 = vld [vmem:[#allocation16 + $0x18] sm:$0xff]  ;;  %v3648_v53 = vld [vmem:[#allocation16 + $0x20] sm:$0xff]  ;;  %v3666_v32 = vld [vmem:[#allocation16 + $0xb0] sm:$0xff] }
 0x802   :  { %v3105_v8 = vadd.f32 %v3104_v47, %v3103_v40  ;;  %v3649_v47 = vld [vmem:[#allocation16 + $0x28] sm:$0xff]  ;;  %v3454_v21 = vrot.slane %v3086_v38, %v6847_v24  ;;  %v3458_v58 = vrot.slane %v3086_v38, %v6849_v2 }
 0x803   :  { %v3111_v63 = vadd.f32 %v3110_v60, %v3109_v20  ;;  %v3138_v30 = vrot.slane %v3137_v57, 1  ;;  %v3665_v20 = vld [vmem:[#allocation16 + $0xa8] sm:$0xff]  ;;  %v5717_v60 = vpack.c.bf16 %v3649_v47, %v3648_v53 }
 0x804   :  { %v3144_v31 = vsel %vm1136_vm6, %v3105_v8, %v3093_v61  ;;  %v5715_v52 = vpack.c.bf16 %v3665_v20, %v3664_v48  ;;  %v3668_v61 = vld [vmem:[#allocation16 + $0xc0] sm:$0xff] }
 0x805   :  { %v3145_v3 = vsel %vm1136_vm6, %v3111_v63, %v3099_v36  ;;  %v3139_v42 = vadd.f32 %v3138_v30, %v3137_v57  ;;  %v3667_v57 = vld [vmem:[#allocation16 + $0xb8] sm:$0xff]  ;;  %v3650_v36 = vld [vmem:[#allocation16 + $0x30] sm:$0xff] }
 0x806   :  { %3212 = vmatprep.mubr.f32.mxu1 %v3145_v3  ;;  %v5719_v8 = vpack.c.bf16 %v3667_v57, %v3666_v32  ;;  %v3651_v63 = vld [vmem:[#allocation16 + $0x38] sm:$0xff]  ;;  %v3669_v3 = vld [vmem:[#allocation16 + $0xc8] sm:$0xff] }
 0x807   :  { %3213 = vmatmul.mubr.f32.vlgmr.msra.gmra.mrb[12].mxu1 %v3144_v31  ;;  %v3224_v35 = vsel %vm1136_vm6, %v3139_v42, %v3127_v16  ;;  %v5721_v30 = vpack.c.bf16 %v3651_v63, %v3650_v36  ;;  %v5723_v16 = vpack.c.bf16 %v3669_v3, %v3668_v61  ;;  %v3652_v42 = vld [vmem:[#allocation16 + $0x40] sm:$0xff]  ;;  %v3653_v31 = vld [vmem:[#allocation16 + $0x48] sm:$0xff] }
 0x808   :  { %5678 = vmatpush3.bf16.msra.mxu1 %v6628_v43  ;;  %3291 = vmatprep.mubr.f32.mxu1 %v3224_v35  ;;  %v3129_v43 = vadd.f32 %v3128_v13, %v3114_v7  ;;  %v5725_v35 = vpack.c.bf16 %v3653_v31, %v3652_v42  ;;  %v3670_v7 = vld [vmem:[#allocation16 + $0xd0] sm:$0xff] }
 0x809   :  { %5680 = vmatprep.subr.bf16.mxu1 %v6630_v44  ;;  %v5727_v13 = vpack.c.bf16 %v3671_v14, %v3670_v7 }
 0x80a   :  { %v3130_v44 = vrot.slane %v3129_v43, 2 }
 0x80c   :  { %5682 = vmatpush3.bf16.msra.mxu1 %v6646_v49  ;;  %v3131_v49 = vadd.f32 %v3130_v44, %v3129_v43  ;;  %v3655_v43 = vld [vmem:[#allocation16 + $0x58] sm:$0xff]  ;;  %v3672_v44 = vld [vmem:[#allocation16 + $0xe0] sm:$0xff] }
 0x80d   :  { %5684 = vmatprep.subr.bf16.mxu1 %v6649_v50  ;;  %v3119_v50 = vadd.f32 %v3118_v26, %v3117_v19  ;;  %v5729_v19 = vpack.c.bf16 %v3655_v43, %v3654_v41  ;;  %v3673_v26 = vld [vmem:[#allocation16 + $0xe8] sm:$0xff]  ;;  %v3676_v43 = vld [vmem:[#allocation16 + $0x100] sm:$0xff] }
 0x810   :  { %5686 = vmatpush3.bf16.msra.mxu1 %v6664_v55  ;;  %v3132_v55 = vrot.slane %v3131_v49, 1 }
 0x811   :  { %5688 = vmatprep.subr.bf16.mxu1 %v6667_v56  ;;  %v3120_v56 = vrot.slane %v3119_v50, 1 }
 0x814   :  { %5690 = vmatpush3.bf16.msra.mxu1 %v6718_v54  ;;  %v3133_v54 = vadd.f32 %v3132_v55, %v3131_v49  ;;  %v5731_v49 = vpack.c.bf16 %v3673_v26, %v3672_v44  ;;  %v3657_v55 = vld [vmem:[#allocation16 + $0x68] sm:$0xff] }
 0x815   :  { %5692 = vmatprep.subr.bf16.mxu1 %v6727_v59  ;;  %v3121_v59 = vadd.f32 %v3120_v56, %v3119_v50  ;;  %v3656_v50 = vld [vmem:[#allocation16 + $0x60] sm:$0xff] }
 0x816   :  { %v5733_v56 = vpack.c.bf16 %v3657_v55, %v3656_v50  ;;  %v3694_v50 = vld [vmem:[#allocation16 + $0x190] sm:$0xff] }
 0x818   :  { %5694 = vmatpush3.bf16.msra.mxu1 %v6735_v62  ;;  %v6127_v62 = vld [vmem:[#allocation15 + $0x8] sm:$0xff] }
 0x819   :  { %5696 = vmatprep.subr.bf16.mxu1 %v6745_v1  ;;  %v3223_v1 = vsel %vm1136_vm6, %v3133_v54, %v3121_v59  ;;  %v3674_v54 = vld [vmem:[#allocation16 + $0xf0] sm:$0xff]  ;;  %v3675_v59 = vld [vmem:[#allocation16 + $0xf8] sm:$0xff] }
 0x81c   :  { %5698 = vmatpush3.bf16.msra.mxu1 %v6753_v4 }
 0x81d   :  { %5700 = vmatprep.subr.bf16.mxu1 %v6763_v6 }
 0x820   :  { %5702 = vmatpush3.bf16.msra.mxu1 %v6771_v9 }
 0x821   :  { %5704 = vmatprep.subr.bf16.mxu1 %v6781_v12 }
 0x824   :  { %5706 = vmatpush3.bf16.msra.mxu1 %v6789_v15 }
 0x825   :  { %3303 = vmatprep.subr.mxu1 %v6127_v62 }
 0x827   :  { %3292 = vmatmul.mubr.f32.vlgmr.msra.gmra.mrb[14].mxu1 %v3223_v1  ;;  %v5735_v1 = vpack.c.bf16 %v3675_v59, %v3674_v54 }
 0x828   :  { %3304 = vmatpush1.msra.mxu1 %v6128_v45  ;;  %3367 = vmatprep.mubr.f32.mxu1 %v6374_v0 }
 0x829   :  { %3377 = vmatprep.subr.mxu1 %v6127_v62  ;;  %v3658_v62 = vld [vmem:[#allocation16 + $0x70] sm:$0xff] }
 0x8da   :  { %v4613_v4 = vpop.f32.mrb[12].mxu1 }
 0x8db   :  { %v4614_v6 = vpop.f32.mrb[13].mxu1 }
 0x8dc   :  { %v4615_v9 = vadd.f32 %v4614_v6, %v4613_v4  ;;  %v3692_v6 = vld [vmem:[#allocation16 + $0x180] sm:$0xff] }
 0x8de   :  { %v3218_v23 = vmul.f32 0.00390625, %v4615_v9  ;;  %v3693_v9 = vld [vmem:[#allocation16 + $0x188] sm:$0xff] }
 0x8e0   :  { %4508 = vmatmul.mubr.msk.f32.vlgmr.msra.gmra.mrb[16].mxu1 %vm1293_vm7, %v3218_v23  ;;  %v3298_v29 = vmul.f32 %v3218_v23, %v3218_v23  ;;  %v5739_v23 = vpack.c.bf16 %v3693_v9, %v3692_v6 }
 0x8e1   :  { %3378 = vmatpush1.msra.mxu1 %v6128_v45  ;;  %3441 = vmatprep.mubr.f32.mxu1 %v6374_v0  ;;  %v3646_v0 = vld [vmem:[#allocation16 + $0x10] sm:$0xff]  ;;  %v3659_v45 = vld [vmem:[#allocation16 + $0x78] sm:$0xff] }
 0x8e2   :  { %5708 = vmatprep.subr.bf16.mxu1 %v5707_v27  ;;  %v5713_v40 = vpack.c.bf16 %v3647_v46, %v3646_v0  ;;  %v5737_v4 = vpack.c.bf16 %v3659_v45, %v3658_v62  ;;  %v3087_v27 = vld [vmem:[#allocation13] sm:$0x3] }
 0x8e3   :  { %v3469_v34 = vrot.slane %v3087_v27, %v6847_v24  ;;  %v3473_v0 = vrot.slane %v3087_v27, %v6849_v2 }
 0x8fa   :  { %v4648_v12 = vpop.f32.mrb[14].mxu1 }
 0x8fb   :  { %v4649_v15 = vpop.f32.mrb[15].mxu1 }
 0x8fc   :  { %v4650_v51 = vadd.f32 %v4649_v15, %v4648_v12 }
 0x8fe   :  { %v3297_v37 = vmul.f32 0.00390625, %v4650_v51 }
 0x900   :  { %v3299_v18 = vsub.f32 %v3297_v37, %v3298_v29 }
 0x902   :  { %4509 = vmatmul.mubr.msk.f32.vlgmr.msra.gmra.mrb[18].mxu1 %vm1293_vm7, %v3299_v18 }
 0x903   :  { %5710 = vmatpush3.bf16.msra.mxu1 %v5709_v17 }
 0x904   :  { %5712 = vmatprep.subr.bf16.mxu1 %v5711_v25 }
 0x907   :  { %5714 = vmatpush3.bf16.msra.mxu1 %v5713_v40 }
 0x908   :  { %5716 = vmatprep.subr.bf16.mxu1 %v5715_v52 }
 0x90b   :  { %5718 = vmatpush3.bf16.msra.mxu1 %v5717_v60 }
 0x90c   :  { %5720 = vmatprep.subr.bf16.mxu1 %v5719_v8 }
 0x90f   :  { %5722 = vmatpush3.bf16.msra.mxu1 %v5721_v30 }
 0x910   :  { %5724 = vmatprep.subr.bf16.mxu1 %v5723_v16 }
 0x913   :  { %5726 = vmatpush3.bf16.msra.mxu1 %v5725_v35 }
 0x914   :  { %5728 = vmatprep.subr.bf16.mxu1 %v5727_v13 }
 0x917   :  { %5730 = vmatpush3.bf16.msra.mxu1 %v5729_v19 }
 0x918   :  { %5732 = vmatprep.subr.bf16.mxu1 %v5731_v49 }
 0x91b   :  { %5734 = vmatpush3.bf16.msra.mxu1 %v5733_v56 }
 0x91c   :  { %5736 = vmatprep.subr.bf16.mxu1 %v5735_v1 }
 0x91f   :  { %5738 = vmatpush3.bf16.msra.mxu1 %v5737_v4 }
 0x920   :  { %5740 = vmatprep.subr.bf16.mxu1 %v5739_v23 }
 0x9b3   :  { %v3369_v12 = vpop.f32.mrb[16].mxu1 }
 0x9b4   :  { %v3371_v15 = vpop.f32.mrb[17].mxu1 }
 0x9d5   :  { %v3443_v51 = vpop.f32.mrb[18].mxu1 }
 0x9d6   :  { %v3444_v29 = vadd.f32 1e-05, %v3443_v51  ;;  %v3445_v37 = vpop.f32.mrb[19].mxu1  ;;  %v3678_v51 = vld [vmem:[#allocation16 + $0x110] sm:$0xff] }
 0x9d7   :  { %v3446_v18 = vadd.f32 1e-05, %v3445_v37 }
 0x9d8   :  { %6123 = vrsqrt.f32 %v3444_v29  ;;  %v3679_v29 = vld [vmem:[#allocation16 + $0x118] sm:$0xff] }
 0x9d9   :  { %6125 = vrsqrt.f32 %v3446_v18 }
 0x9e2   :  { %v6124_v33 = vpop.eup %6123 }
 0x9e3   :  { %v6126_v17 = vpop.eup %6125  ;;  %v3461_v11 = vmul.f32 %v6124_v33, %v3454_v21 }
 0x9e4   :  { %v3462_v25 = vmul.f32 %v6126_v17, %v3458_v58 }
 0x9e5   :  { %v3463_v46 = vmul.f32 %v3461_v11, %v3369_v12 }
 0x9e6   :  { %v3464_v40 = vmul.f32 %v3462_v25, %v3371_v15  ;;  %v3480_v48 = vcombine.low %v3461_v11, %v3462_v25  ;;  %v3696_v11 = vld [vmem:[#allocation16 + $0x1a0] sm:$0xff] }
 0x9e7   :  { %v3476_v20 = vsub.f32 %v3469_v34, %v3463_v46  ;;  %v3697_v34 = vld [vmem:[#allocation16 + $0x1a8] sm:$0xff] }
 0x9e8   :  { %v3477_v52 = vsub.f32 %v3473_v0, %v3464_v40  ;;  %v3487_v53 = vrot.slane %v3480_v48, %v6855_v22  ;;  %v5745_v48 = vpack.c.bf16 %v3679_v29, %v3678_v51  ;;  %v3688_v29 = vld [vmem:[#allocation16 + $0x160] sm:$0xff] }
 0x9ea   :  { %v3488_v47 = vcombine.high %v3487_v53, %v3487_v53  ;;  %v3495_v60 = vrot.slane %v3487_v53, %v6855_v22  ;;  %v3529_v32 = vcombine.low %v3476_v20, %v3477_v52  ;;  %v3680_v20 = vld [vmem:[#allocation16 + $0x120] sm:$0xff]  ;;  %v3681_v52 = vld [vmem:[#allocation16 + $0x128] sm:$0xff] }
 0x9ec   :  { %v3502_v57 = vrot.slane %v3488_v47, %v6855_v22  ;;  %v3506_v8 = vrot.slane %v3495_v60, %v6847_v24  ;;  %v3536_v36 = vrot.slane %v3529_v32, %v6855_v22  ;;  %v3510_v63 = vrot.slane %v3495_v60, %v6849_v2 }
 0x9ee   :  { %v3514_v30 = vrot.slane %v3502_v57, %v6847_v24  ;;  %v3518_v61 = vrot.slane %v3502_v57, %v6849_v2  ;;  %v3537_v3 = vcombine.high %v3536_v36, %v3536_v36  ;;  %v3544_v16 = vrot.slane %v3536_v36, %v6855_v22 }
 0x9ef   :  { %v3523_v42 = vmul.f32 %v7136_v5, %v3506_v8  ;;  %v3524_v31 = vmul.f32 %v7139_v10, %v3510_v63  ;;  %v3677_v5 = vld [vmem:[#allocation16 + $0x108] sm:$0xff]  ;;  %v3695_v10 = vld [vmem:[#allocation16 + $0x198] sm:$0xff]  ;;  %v5747_v8 = vpack.c.bf16 %v3697_v34, %v3696_v11 }
 0x9f0   :  { %v3551_v35 = vrot.slane %v3537_v3, %v6855_v22  ;;  %v3555_v7 = vrot.slane %v3544_v16, %v6847_v24  ;;  %v3559_v14 = vrot.slane %v3544_v16, %v6849_v2  ;;  %v3525_v13 = vmul.f32 %v7147_v28, %v3514_v30  ;;  %v3699_v3 = vld [vmem:[#allocation16 + $0x1b8] sm:$0xff]  ;;  %v3725_v11 = vld [vmem:[#allocation16 + $0x288] sm:$0xff] }
 0x9f1   :  { %v3526_v41 = vmul.f32 %v7151_v39, %v3518_v61  ;;  %v5741_v59 = vpack.c.bf16 %v3677_v5, %v3676_v43  ;;  %v5743_v28 = vpack.c.bf16 %v3695_v10, %v3694_v50  ;;  %v5749_v30 = vpack.c.bf16 %v3681_v52, %v3680_v20  ;;  %v3698_v61 = vld [vmem:[#allocation16 + $0x1b0] sm:$0xff]  ;;  %v3683_v5 = vld [vmem:[#allocation16 + $0x138] sm:$0xff]  ;;  %v3708_v20 = vld [vmem:[#allocation16 + $0x200] sm:$0xff] }
 0x9f2   :  { %v3563_v19 = vrot.slane %v3551_v35, %v6847_v24  ;;  %v3567_v44 = vrot.slane %v3551_v35, %v6849_v2  ;;  %v3572_v26 = vadd.f32 %v3555_v7, %v3523_v42  ;;  %v3573_v49 = vadd.f32 %v3559_v14, %v3524_v31  ;;  %v3709_v52 = vld [vmem:[#allocation16 + $0x208] sm:$0xff] }
 0x9f4   :  { %v3574_v55 = vadd.f32 %v3563_v19, %v3525_v13  ;;  %v3575_v22 = vadd.f32 %v3567_v44, %v3526_v41  ;;  %v7208_v56 = vmax.f32 %v3572_v26, 0.0  ;;  %v7210_v54 = vmax.f32 %v3573_v49, 0.0  ;;  %v3682_v49 = vld [vmem:[#allocation16 + $0x130] sm:$0xff] }
 0x9f5   :  { %v5751_v26 = vpack.c.bf16 %v3699_v3, %v3698_v61 }
 0x9f6   :  { %v7212_v62 = vmax.f32 %v3574_v55, 0.0  ;;  %v7214_v39 = vmax.f32 %v3575_v22, 0.0  ;;  %v3592_v24 = vrot.slane %v7210_v54, 1  ;;  %v3590_v2 = vrot.slane %v7208_v56, 1  ;;  %v3700_v55 = vld [vmem:[#allocation16 + $0x1c0] sm:$0xff]  ;;  %v3701_v22 = vld [vmem:[#allocation16 + $0x1c8] sm:$0xff] }
 0x9f7   :  { %v3599_v1 = vrot.slane %v7210_v54, 2  ;;  %v3596_v45 = vrot.slane %v7208_v56, 2  ;;  %v3607_v4 = vrot.slane %v7210_v54, 3  ;;  %v3604_v6 = vrot.slane %v7208_v56, 3 }
 0x9f8   :  { %v3586_v9 = vrot.slane %v7214_v39, 7  ;;  %v3584_v23 = vrot.slane %v7212_v62, 7  ;;  %v3593_v12 = vsel %vm1136_vm6, %v7214_v39, %v3592_v24  ;;  %v7228_v15 = vsel %vm1136_vm6, %v7212_v62, %v3590_v2  ;;  %v3702_v24 = vld [vmem:[#allocation16 + $0x1d0] sm:$0xff]  ;;  %v3703_v2 = vld [vmem:[#allocation16 + $0x1d8] sm:$0xff] }
 0x9f9   :  { %v3600_v37 = vrot.slane %v7214_v39, 1  ;;  %v3597_v18 = vrot.slane %v7212_v62, 1  ;;  %v3608_v38 = vrot.slane %v7214_v39, 2  ;;  %v3605_v21 = vrot.slane %v7212_v62, 2 }
 0x9fa   :  { %v3587_v27 = vsel %vm1136_vm6, %v3586_v9, %v7210_v54  ;;  %v3585_v58 = vsel %vm1136_vm6, %v3584_v23, %v7208_v56  ;;  %v3615_v33 = vrot.slane %v7210_v54, 4  ;;  %v3616_v17 = vrot.slane %v7214_v39, 3  ;;  %v3704_v9 = vld [vmem:[#allocation16 + $0x1e0] sm:$0xff]  ;;  %v3705_v23 = vld [vmem:[#allocation16 + $0x1e8] sm:$0xff] }
 0x9fb   :  { %3971 = vmatprep.mubr.f32.mxu1 %v3587_v27  ;;  %v7241_v25 = vsel %vm1136_vm6, %v3600_v37, %v3599_v1  ;;  %v7244_v0 = vsel %vm1136_vm6, %v3597_v18, %v3596_v45  ;;  %v7247_v46 = vsel %vm1136_vm6, %v3608_v38, %v3607_v4  ;;  %v7250_v40 = vsel %vm1136_vm6, %v3605_v21, %v3604_v6  ;;  %v3686_v4 = vld [vmem:[#allocation16 + $0x150] sm:$0xff]  ;;  %v3687_v6 = vld [vmem:[#allocation16 + $0x158] sm:$0xff]  ;;  %v3689_v37 = vld [vmem:[#allocation16 + $0x168] sm:$0xff] }
 0x9fc   :  { %3972 = vmatmul.mubr.f32.vlgmr.msra.gmra.mrb[20].mxu1 %v3585_v58  ;;  %v7253_v53 = vsel %vm1136_vm6, %v3616_v17, %v3615_v33  ;;  %v3612_v47 = vrot.slane %v7208_v56, 4  ;;  %v3613_v60 = vrot.slane %v7212_v62, 3  ;;  %v3623_v32 = vrot.slane %v7210_v54, 5  ;;  %v3706_v18 = vld [vmem:[#allocation16 + $0x1f0] sm:$0xff]  ;;  %v3707_v38 = vld [vmem:[#allocation16 + $0x1f8] sm:$0xff]  ;;  %v3724_v17 = vld [vmem:[#allocation16 + $0x280] sm:$0xff] }
 0x9fd   :  { %5742 = vmatpush3.bf16.msra.mxu1 %v5741_v59  ;;  %4041 = vmatprep.mubr.f32.mxu1 %v3593_v12  ;;  %v3624_v57 = vrot.slane %v7214_v39, 4  ;;  %v3620_v36 = vrot.slane %v7208_v56, 5  ;;  %v3621_v63 = vrot.slane %v7212_v62, 4  ;;  %v3631_v31 = vrot.slane %v7210_v54, 6  ;;  %v3690_v58 = vld [vmem:[#allocation16 + $0x170] sm:$0xff]  ;;  %v3691_v33 = vld [vmem:[#allocation16 + $0x178] sm:$0xff] }
 0x9fe   :  { %5744 = vmatprep.subr.bf16.mxu1 %v5743_v28  ;;  %v7262_v16 = vsel %vm1136_vm6, %v3613_v60, %v3612_v47  ;;  %v3632_v7 = vrot.slane %v7214_v39, 5  ;;  %v3628_v14 = vrot.slane %v7208_v56, 6  ;;  %v3629_v13 = vrot.slane %v7212_v62, 5  ;;  %v3726_v47 = vld [vmem:[#allocation16 + $0x290] sm:$0xff]  ;;  %v3727_v60 = vld [vmem:[#allocation16 + $0x298] sm:$0xff] }
 0x9ff   :  { %v7265_v42 = vsel %vm1136_vm6, %v3624_v57, %v3623_v32  ;;  %v7269_v35 = vsel %vm1136_vm6, %v3621_v63, %v3620_v36  ;;  %v3639_v41 = vrot.slane %v7210_v54, 7  ;;  %v3640_v43 = vrot.slane %v7214_v39, 6  ;;  %v3685_v39 = vld [vmem:[#allocation16 + $0x148] sm:$0xff]  ;;  %v3711_v36 = vld [vmem:[#allocation16 + $0x218] sm:$0xff]  ;;  %v3728_v63 = vld [vmem:[#allocation16 + $0x2a0] sm:$0xff] }
 0xa00   :  { %v3636_v19 = vrot.slane %v7208_v56, 7  ;;  %v3637_v44 = vrot.slane %v7212_v62, 6  ;;  %v7279_v50 = vsel %vm1136_vm6, %v3632_v7, %v3631_v31  ;;  %v7282_v10 = vsel %vm1136_vm6, %v3629_v13, %v3628_v14  ;;  %v3684_v62 = vld [vmem:[#allocation16 + $0x140] sm:$0xff]  ;;  %v3713_v7 = vld [vmem:[#allocation16 + $0x228] sm:$0xff]  ;;  %v3730_v14 = vld [vmem:[#allocation16 + $0x2b0] sm:$0xff] }
 0xa01   :  { %5746 = vmatpush3.bf16.msra.mxu1 %v5745_v48  ;;  %v7285_v54 = vsel %vm1136_vm6, %v3640_v43, %v3639_v41  ;;  %v5753_v56 = vpack.c.bf16 %v3683_v5, %v3682_v49  ;;  %v5755_v28 = vpack.c.bf16 %v3701_v22, %v3700_v55  ;;  %v5757_v1 = vpack.c.bf16 %v3685_v39, %v3684_v62  ;;  %v3712_v31 = vld [vmem:[#allocation16 + $0x220] sm:$0xff]  ;;  %v3731_v13 = vld [vmem:[#allocation16 + $0x2b8] sm:$0xff]  ;;  %v3733_v49 = vld [vmem:[#allocation16 + $0x2c8] sm:$0xff] }
 0xa02   :  { %5748 = vmatprep.subr.bf16.mxu1 %v5747_v8  ;;  %v7288_v59 = vsel %vm1136_vm6, %v3637_v44, %v3636_v19  ;;  %v5759_v45 = vpack.c.bf16 %v3703_v2, %v3702_v24  ;;  %v5761_v12 = vpack.c.bf16 %v3687_v6, %v3686_v4  ;;  %v5763_v51 = vpack.c.bf16 %v3705_v23, %v3704_v9  ;;  %v3710_v8 = vld [vmem:[#allocation16 + $0x210] sm:$0xff]  ;;  %v3715_v44 = vld [vmem:[#allocation16 + $0x238] sm:$0xff]  ;;  %v3717_v55 = vld [vmem:[#allocation16 + $0x248] sm:$0xff] }
 0xa03   :  { %v5765_v21 = vpack.c.bf16 %v3689_v37, %v3688_v29  ;;  %v5767_v27 = vpack.c.bf16 %v3707_v38, %v3706_v18  ;;  %v5769_v34 = vpack.c.bf16 %v3691_v33, %v3690_v58  ;;  %v5771_v48 = vpack.c.bf16 %v3725_v11, %v3724_v17  ;;  %v3714_v19 = vld [vmem:[#allocation16 + $0x230] sm:$0xff]  ;;  %v3719_v24 = vld [vmem:[#allocation16 + $0x258] sm:$0xff]  ;;  %v3736_v2 = vld [vmem:[#allocation16 + $0x2e0] sm:$0xff] }
 0xa04   :  { %v5773_v32 = vpack.c.bf16 %v3709_v52, %v3708_v20  ;;  %v5775_v57 = vpack.c.bf16 %v3727_v60, %v3726_v47  ;;  %v5777_v61 = vpack.c.bf16 %v3711_v36, %v3710_v8  ;;  %v5781_v41 = vpack.c.bf16 %v3713_v7, %v3712_v31  ;;  %v3734_v22 = vld [vmem:[#allocation16 + $0x2d0] sm:$0xff]  ;;  %v3720_v6 = vld [vmem:[#allocation16 + $0x260] sm:$0xff]  ;;  %v3721_v9 = vld [vmem:[#allocation16 + $0x268] sm:$0xff] }
 0xa05   :  { %5750 = vmatpush3.bf16.msra.mxu1 %v5749_v30  ;;  %v3729_v30 = vld [vmem:[#allocation16 + $0x2a8] sm:$0xff]  ;;  %v5783_v43 = vpack.c.bf16 %v3731_v13, %v3730_v14  ;;  %v3718_v39 = vld [vmem:[#allocation16 + $0x250] sm:$0xff]  ;;  %v3723_v18 = vld [vmem:[#allocation16 + $0x278] sm:$0xff] }
 0xa06   :  { %5752 = vmatprep.subr.bf16.mxu1 %v5751_v26  ;;  %v5779_v3 = vpack.c.bf16 %v3729_v30, %v3728_v63  ;;  %v3732_v26 = vld [vmem:[#allocation16 + $0x2c0] sm:$0xff]  ;;  %v3738_v23 = vld [vmem:[#allocation16 + $0x2f0] sm:$0xff]  ;;  %v3741_v17 = vld [vmem:[#allocation16 + $0x308] sm:$0xff] }
 0xa07   :  { %v5787_v5 = vpack.c.bf16 %v3733_v49, %v3732_v26  ;;  %v3722_v37 = vld [vmem:[#allocation16 + $0x270] sm:$0xff]  ;;  %v3756_v38 = vld [vmem:[#allocation16 + $0x380] sm:$0xff]  ;;  %v3743_v47 = vld [vmem:[#allocation16 + $0x318] sm:$0xff] }
 0xa08   :  { %v3740_v33 = vld [vmem:[#allocation16 + $0x300] sm:$0xff]  ;;  %v3758_v11 = vld [vmem:[#allocation16 + $0x390] sm:$0xff]  ;;  %v3745_v63 = vld [vmem:[#allocation16 + $0x328] sm:$0xff] }
 0xa09   :  { %5754 = vmatpush3.bf16.msra.mxu1 %v5753_v56  ;;  %v3735_v56 = vld [vmem:[#allocation16 + $0x2d8] sm:$0xff]  ;;  %v3742_v52 = vld [vmem:[#allocation16 + $0x310] sm:$0xff]  ;;  %v3760_v60 = vld [vmem:[#allocation16 + $0x3a0] sm:$0xff] }
 0xa0a   :  { %5756 = vmatprep.subr.bf16.mxu1 %v5755_v28  ;;  %v5791_v62 = vpack.c.bf16 %v3735_v56, %v3734_v22  ;;  %v3744_v36 = vld [vmem:[#allocation16 + $0x320] sm:$0xff]  ;;  %v3762_v30 = vld [vmem:[#allocation16 + $0x3b0] sm:$0xff]  ;;  %v3747_v14 = vld [vmem:[#allocation16 + $0x338] sm:$0xff] }
 0xa0b   :  { %v3746_v7 = vld [vmem:[#allocation16 + $0x330] sm:$0xff]  ;;  %v3764_v13 = vld [vmem:[#allocation16 + $0x3c0] sm:$0xff]  ;;  %v3767_v26 = vld [vmem:[#allocation16 + $0x3d8] sm:$0xff] }
 0xa0c   :  { %v3769_v22 = vld [vmem:[#allocation16 + $0x3e8] sm:$0xff] }
 0xa0d   :  { %5758 = vmatpush3.bf16.msra.mxu1 %v5757_v1  ;;  %v3737_v1 = vld [vmem:[#allocation16 + $0x2e8] sm:$0xff] }
 0xa0e   :  { %5760 = vmatprep.subr.bf16.mxu1 %v5759_v45  ;;  %v5793_v45 = vpack.c.bf16 %v3719_v24, %v3718_v39  ;;  %v5795_v4 = vpack.c.bf16 %v3737_v1, %v3736_v2  ;;  %v3753_v39 = vld [vmem:[#allocation16 + $0x368] sm:$0xff]  ;;  %v3770_v24 = vld [vmem:[#allocation16 + $0x3f0] sm:$0xff]  ;;  %v3771_v2 = vld [vmem:[#allocation16 + $0x3f8] sm:$0xff] }
 0xa11   :  { %5762 = vmatpush3.bf16.msra.mxu1 %v5761_v12  ;;  %v3739_v12 = vld [vmem:[#allocation16 + $0x2f8] sm:$0xff] }
 0xa12   :  { %5764 = vmatprep.subr.bf16.mxu1 %v5763_v51  ;;  %v5797_v51 = vpack.c.bf16 %v3721_v9, %v3720_v6  ;;  %v5799_v29 = vpack.c.bf16 %v3739_v12, %v3738_v23  ;;  %v3755_v6 = vld [vmem:[#allocation16 + $0x378] sm:$0xff]  ;;  %v3788_v9 = vld [vmem:[#allocation16 + $0x480] sm:$0xff]  ;;  %v3789_v23 = vld [vmem:[#allocation16 + $0x488] sm:$0xff] }
 0xa15   :  { %5766 = vmatpush3.bf16.msra.mxu1 %v5765_v21  ;;  %v3757_v21 = vld [vmem:[#allocation16 + $0x388] sm:$0xff] }
 0xa16   :  { %5768 = vmatprep.subr.bf16.mxu1 %v5767_v27  ;;  %v5801_v27 = vpack.c.bf16 %v3723_v18, %v3722_v37  ;;  %v5803_v58 = vpack.c.bf16 %v3757_v21, %v3756_v38  ;;  %v3773_v37 = vld [vmem:[#allocation16 + $0x408] sm:$0xff]  ;;  %v3790_v18 = vld [vmem:[#allocation16 + $0x490] sm:$0xff]  ;;  %v3791_v38 = vld [vmem:[#allocation16 + $0x498] sm:$0xff] }
 0xa19   :  { %5770 = vmatpush3.bf16.msra.mxu1 %v5769_v34  ;;  %v3759_v34 = vld [vmem:[#allocation16 + $0x398] sm:$0xff] }
 0xa1a   :  { %5772 = vmatprep.subr.bf16.mxu1 %v5771_v48  ;;  %v5805_v48 = vpack.c.bf16 %v3741_v17, %v3740_v33  ;;  %v5807_v20 = vpack.c.bf16 %v3759_v34, %v3758_v11  ;;  %v3775_v33 = vld [vmem:[#allocation16 + $0x418] sm:$0xff]  ;;  %v3792_v17 = vld [vmem:[#allocation16 + $0x4a0] sm:$0xff]  ;;  %v3793_v11 = vld [vmem:[#allocation16 + $0x4a8] sm:$0xff] }
 0xa1c   :  { %4042 = vmatmul.mubr.f32.vlgmr.msra.gmra.mrb[22].mxu1 %v7228_v15  ;;  %v5785_v15 = vpack.c.bf16 %v3715_v44, %v3714_v19  ;;  %v3749_v19 = vld [vmem:[#allocation16 + $0x348] sm:$0xff]  ;;  %v3766_v44 = vld [vmem:[#allocation16 + $0x3d0] sm:$0xff] }
 0xa1d   :  { %5774 = vmatpush3.bf16.msra.mxu1 %v5773_v32  ;;  %4111 = vmatprep.mubr.f32.mxu1 %v7241_v25  ;;  %v3716_v25 = vld [vmem:[#allocation16 + $0x240] sm:$0xff]  ;;  %v3761_v32 = vld [vmem:[#allocation16 + $0x3a8] sm:$0xff] }
 0xa1e   :  { %5776 = vmatprep.subr.bf16.mxu1 %v5775_v57  ;;  %v5789_v28 = vpack.c.bf16 %v3717_v55, %v3716_v25  ;;  %v5809_v57 = vpack.c.bf16 %v3743_v47, %v3742_v52  ;;  %v5811_v8 = vpack.c.bf16 %v3761_v32, %v3760_v60  ;;  %v3751_v25 = vld [vmem:[#allocation16 + $0x358] sm:$0xff]  ;;  %v3768_v55 = vld [vmem:[#allocation16 + $0x3e0] sm:$0xff]  ;;  %v3777_v52 = vld [vmem:[#allocation16 + $0x428] sm:$0xff] }
 0xa1f   :  { %v3794_v47 = vld [vmem:[#allocation16 + $0x4b0] sm:$0xff]  ;;  %v3795_v60 = vld [vmem:[#allocation16 + $0x4b8] sm:$0xff] }
 0xa21   :  { %5778 = vmatpush3.bf16.msra.mxu1 %v5777_v61  ;;  %v3763_v61 = vld [vmem:[#allocation16 + $0x3b8] sm:$0xff] }
 0xa22   :  { %5780 = vmatprep.subr.bf16.mxu1 %v5779_v3  ;;  %v5813_v3 = vpack.c.bf16 %v3745_v63, %v3744_v36  ;;  %v5815_v31 = vpack.c.bf16 %v3763_v61, %v3762_v30  ;;  %v3779_v36 = vld [vmem:[#allocation16 + $0x438] sm:$0xff]  ;;  %v3796_v63 = vld [vmem:[#allocation16 + $0x4c0] sm:$0xff]  ;;  %v3797_v30 = vld [vmem:[#allocation16 + $0x4c8] sm:$0xff] }
 0xa23   :  { %v5851_v61 = vpack.c.bf16 %v3797_v30, %v3796_v63  ;;  %v3815_v63 = vld [vmem:[#allocation16 + $0x558] sm:$0xff]  ;;  %v3832_v30 = vld [vmem:[#allocation16 + $0x5e0] sm:$0xff] }
 0xa25   :  { %5782 = vmatpush3.bf16.msra.mxu1 %v5781_v41  ;;  %v3765_v41 = vld [vmem:[#allocation16 + $0x3c8] sm:$0xff] }
 0xa26   :  { %5784 = vmatprep.subr.bf16.mxu1 %v5783_v43  ;;  %v5819_v43 = vpack.c.bf16 %v3765_v41, %v3764_v13  ;;  %v3782_v41 = vld [vmem:[#allocation16 + $0x450] sm:$0xff] }
 0xa29   :  { %5786 = vmatpush3.bf16.msra.mxu1 %v5785_v15  ;;  %v5823_v15 = vpack.c.bf16 %v3767_v26, %v3766_v44  ;;  %v3784_v26 = vld [vmem:[#allocation16 + $0x460] sm:$0xff] }
 0xa2a   :  { %5788 = vmatprep.subr.bf16.mxu1 %v5787_v5  ;;  %v3750_v5 = vld [vmem:[#allocation16 + $0x350] sm:$0xff] }
 0xa2b   :  { %v5825_v56 = vpack.c.bf16 %v3751_v25, %v3750_v5  ;;  %v3803_v5 = vld [vmem:[#allocation16 + $0x4f8] sm:$0xff] }
 0xa2d   :  { %5790 = vmatpush3.bf16.msra.mxu1 %v5789_v28  ;;  %v5827_v28 = vpack.c.bf16 %v3769_v22, %v3768_v55  ;;  %v3786_v22 = vld [vmem:[#allocation16 + $0x470] sm:$0xff] }
 0xa2e   :  { %5792 = vmatprep.subr.bf16.mxu1 %v5791_v62  ;;  %v3752_v62 = vld [vmem:[#allocation16 + $0x360] sm:$0xff] }
 0xa2f   :  { %v5829_v1 = vpack.c.bf16 %v3753_v39, %v3752_v62  ;;  %v3821_v62 = vld [vmem:[#allocation16 + $0x588] sm:$0xff] }
 0xa31   :  { %5794 = vmatpush3.bf16.msra.mxu1 %v5793_v45  ;;  %v5831_v45 = vpack.c.bf16 %v3771_v2, %v3770_v24  ;;  %v3804_v2 = vld [vmem:[#allocation16 + $0x500] sm:$0xff] }
 0xa32   :  { %5796 = vmatprep.subr.bf16.mxu1 %v5795_v4  ;;  %v3754_v4 = vld [vmem:[#allocation16 + $0x370] sm:$0xff] }
 0xa33   :  { %v5833_v12 = vpack.c.bf16 %v3755_v6, %v3754_v4  ;;  %v3823_v4 = vld [vmem:[#allocation16 + $0x598] sm:$0xff] }
 0xa35   :  { %5798 = vmatpush3.bf16.msra.mxu1 %v5797_v51  ;;  %v5835_v51 = vpack.c.bf16 %v3789_v23, %v3788_v9  ;;  %v3806_v23 = vld [vmem:[#allocation16 + $0x510] sm:$0xff] }
 0xa36   :  { %5800 = vmatprep.subr.bf16.mxu1 %v5799_v29  ;;  %v3772_v29 = vld [vmem:[#allocation16 + $0x400] sm:$0xff] }
 0xa37   :  { %v5837_v21 = vpack.c.bf16 %v3773_v37, %v3772_v29  ;;  %v3825_v29 = vld [vmem:[#allocation16 + $0x5a8] sm:$0xff] }
 0xa39   :  { %5802 = vmatpush3.bf16.msra.mxu1 %v5801_v27  ;;  %v5839_v27 = vpack.c.bf16 %v3791_v38, %v3790_v18  ;;  %v3808_v38 = vld [vmem:[#allocation16 + $0x520] sm:$0xff] }
 0xa3a   :  { %5804 = vmatprep.subr.bf16.mxu1 %v5803_v58  ;;  %v3774_v58 = vld [vmem:[#allocation16 + $0x410] sm:$0xff] }
 0xa3b   :  { %v5841_v34 = vpack.c.bf16 %v3775_v33, %v3774_v58  ;;  %v3827_v58 = vld [vmem:[#allocation16 + $0x5b8] sm:$0xff] }
 0xa3c   :  { %4112 = vmatmul.mubr.f32.vlgmr.msra.gmra.mrb[24].mxu1 %v7244_v0  ;;  %v5817_v0 = vpack.c.bf16 %v3747_v14, %v3746_v7  ;;  %v3799_v7 = vld [vmem:[#allocation16 + $0x4d8] sm:$0xff] }
 0xa3d   :  { %5806 = vmatpush3.bf16.msra.mxu1 %v5805_v48  ;;  %4181 = vmatprep.mubr.f32.mxu1 %v7247_v46  ;;  %v3748_v46 = vld [vmem:[#allocation16 + $0x340] sm:$0xff]  ;;  %v5843_v48 = vpack.c.bf16 %v3793_v11, %v3792_v17  ;;  %v3810_v11 = vld [vmem:[#allocation16 + $0x530] sm:$0xff] }
 0xa3e   :  { %5808 = vmatprep.subr.bf16.mxu1 %v5807_v20  ;;  %v5821_v49 = vpack.c.bf16 %v3749_v19, %v3748_v46  ;;  %v3776_v20 = vld [vmem:[#allocation16 + $0x420] sm:$0xff]  ;;  %v3801_v46 = vld [vmem:[#allocation16 + $0x4e8] sm:$0xff] }
 0xa3f   :  { %v5845_v32 = vpack.c.bf16 %v3777_v52, %v3776_v20  ;;  %v3829_v20 = vld [vmem:[#allocation16 + $0x5c8] sm:$0xff] }
 0xa41   :  { %5810 = vmatpush3.bf16.msra.mxu1 %v5809_v57  ;;  %v5847_v57 = vpack.c.bf16 %v3795_v60, %v3794_v47  ;;  %v3813_v47 = vld [vmem:[#allocation16 + $0x548] sm:$0xff]  ;;  %v3830_v60 = vld [vmem:[#allocation16 + $0x5d0] sm:$0xff] }
 0xa42   :  { %5812 = vmatprep.subr.bf16.mxu1 %v5811_v8  ;;  %v3778_v8 = vld [vmem:[#allocation16 + $0x430] sm:$0xff] }
 0xa45   :  { %5814 = vmatpush3.bf16.msra.mxu1 %v5813_v3  ;;  %v3781_v3 = vld [vmem:[#allocation16 + $0x448] sm:$0xff] }
 0xa46   :  { %5816 = vmatprep.subr.bf16.mxu1 %v5815_v31  ;;  %v3798_v31 = vld [vmem:[#allocation16 + $0x4d0] sm:$0xff] }
 0xa47   :  { %v5855_v13 = vpack.c.bf16 %v3799_v7, %v3798_v31  ;;  %v3817_v31 = vld [vmem:[#allocation16 + $0x568] sm:$0xff]  ;;  %v3834_v7 = vld [vmem:[#allocation16 + $0x5f0] sm:$0xff] }
 0xa49   :  { %5818 = vmatpush3.bf16.msra.mxu1 %v5817_v0  ;;  %v3783_v0 = vld [vmem:[#allocation16 + $0x458] sm:$0xff] }
 0xa4a   :  { %5820 = vmatprep.subr.bf16.mxu1 %v5819_v43  ;;  %v3800_v43 = vld [vmem:[#allocation16 + $0x4e0] sm:$0xff]  ;;  %v5857_v19 = vpack.c.bf16 %v3783_v0, %v3782_v41  ;;  %v3818_v0 = vld [vmem:[#allocation16 + $0x570] sm:$0xff] }
 0xa4b   :  { %v5859_v44 = vpack.c.bf16 %v3801_v46, %v3800_v43  ;;  %v3819_v43 = vld [vmem:[#allocation16 + $0x578] sm:$0xff]  ;;  %v3852_v46 = vld [vmem:[#allocation16 + $0x680] sm:$0xff] }
 0xa4d   :  { %5822 = vmatpush3.bf16.msra.mxu1 %v5821_v49  ;;  %v3785_v49 = vld [vmem:[#allocation16 + $0x468] sm:$0xff] }
 0xa4e   :  { %5824 = vmatprep.subr.bf16.mxu1 %v5823_v15  ;;  %v3802_v15 = vld [vmem:[#allocation16 + $0x4f0] sm:$0xff]  ;;  %v5861_v25 = vpack.c.bf16 %v3785_v49, %v3784_v26  ;;  %v3836_v49 = vld [vmem:[#allocation16 + $0x600] sm:$0xff] }
 0xa4f   :  { %v5863_v55 = vpack.c.bf16 %v3803_v5, %v3802_v15  ;;  %v3837_v15 = vld [vmem:[#allocation16 + $0x608] sm:$0xff]  ;;  %v3854_v5 = vld [vmem:[#allocation16 + $0x690] sm:$0xff] }
 0xa51   :  { %5826 = vmatpush3.bf16.msra.mxu1 %v5825_v56  ;;  %v3787_v56 = vld [vmem:[#allocation16 + $0x478] sm:$0xff] }
 0xa52   :  { %5828 = vmatprep.subr.bf16.mxu1 %v5827_v28  ;;  %v3820_v28 = vld [vmem:[#allocation16 + $0x580] sm:$0xff]  ;;  %v5865_v39 = vpack.c.bf16 %v3787_v56, %v3786_v22  ;;  %v3838_v56 = vld [vmem:[#allocation16 + $0x610] sm:$0xff] }
 0xa53   :  { %v5867_v24 = vpack.c.bf16 %v3821_v62, %v3820_v28  ;;  %v3839_v28 = vld [vmem:[#allocation16 + $0x618] sm:$0xff]  ;;  %v3856_v62 = vld [vmem:[#allocation16 + $0x6a0] sm:$0xff] }
 0xa55   :  { %5830 = vmatpush3.bf16.msra.mxu1 %v5829_v1  ;;  %v3805_v1 = vld [vmem:[#allocation16 + $0x508] sm:$0xff] }
 0xa56   :  { %5832 = vmatprep.subr.bf16.mxu1 %v5831_v45  ;;  %v3822_v45 = vld [vmem:[#allocation16 + $0x590] sm:$0xff]  ;;  %v5869_v6 = vpack.c.bf16 %v3805_v1, %v3804_v2  ;;  %v3840_v1 = vld [vmem:[#allocation16 + $0x620] sm:$0xff] }
 0xa57   :  { %v5871_v9 = vpack.c.bf16 %v3823_v4, %v3822_v45  ;;  %v3841_v45 = vld [vmem:[#allocation16 + $0x628] sm:$0xff]  ;;  %v3858_v4 = vld [vmem:[#allocation16 + $0x6b0] sm:$0xff] }
 0xa59   :  { %5834 = vmatpush3.bf16.msra.mxu1 %v5833_v12  ;;  %v3807_v12 = vld [vmem:[#allocation16 + $0x518] sm:$0xff] }
 0xa5a   :  { %5836 = vmatprep.subr.bf16.mxu1 %v5835_v51  ;;  %v3824_v51 = vld [vmem:[#allocation16 + $0x5a0] sm:$0xff]  ;;  %v5873_v37 = vpack.c.bf16 %v3807_v12, %v3806_v23  ;;  %v3842_v12 = vld [vmem:[#allocation16 + $0x630] sm:$0xff] }
 0xa5b   :  { %v5875_v18 = vpack.c.bf16 %v3825_v29, %v3824_v51  ;;  %v3843_v51 = vld [vmem:[#allocation16 + $0x638] sm:$0xff]  ;;  %v3860_v29 = vld [vmem:[#allocation16 + $0x6c0] sm:$0xff] }
 0xa5c   :  { %4182 = vmatmul.mubr.f32.vlgmr.msra.gmra.mrb[26].mxu1 %v7250_v40  ;;  %v5849_v40 = vpack.c.bf16 %v3779_v36, %v3778_v8  ;;  %v3814_v36 = vld [vmem:[#allocation16 + $0x550] sm:$0xff] }
 0xa5d   :  { %5838 = vmatpush3.bf16.msra.mxu1 %v5837_v21  ;;  %4251 = vmatprep.mubr.f32.mxu1 %v7253_v53  ;;  %v3780_v53 = vld [vmem:[#allocation16 + $0x440] sm:$0xff]  ;;  %v3809_v21 = vld [vmem:[#allocation16 + $0x528] sm:$0xff] }
 0xa5e   :  { %5840 = vmatprep.subr.bf16.mxu1 %v5839_v27  ;;  %v5853_v14 = vpack.c.bf16 %v3781_v3, %v3780_v53  ;;  %v3826_v27 = vld [vmem:[#allocation16 + $0x5b0] sm:$0xff]  ;;  %v5877_v33 = vpack.c.bf16 %v3809_v21, %v3808_v38  ;;  %v3816_v3 = vld [vmem:[#allocation16 + $0x560] sm:$0xff]  ;;  %v3845_v38 = vld [vmem:[#allocation16 + $0x648] sm:$0xff] }
 0xa5f   :  { %v5879_v17 = vpack.c.bf16 %v3827_v58, %v3826_v27  ;;  %v3862_v21 = vld [vmem:[#allocation16 + $0x6d0] sm:$0xff]  ;;  %v3863_v27 = vld [vmem:[#allocation16 + $0x6d8] sm:$0xff] }
 0xa61   :  { %5842 = vmatpush3.bf16.msra.mxu1 %v5841_v34  ;;  %v3811_v34 = vld [vmem:[#allocation16 + $0x538] sm:$0xff] }
 0xa62   :  { %5844 = vmatprep.subr.bf16.mxu1 %v5843_v48  ;;  %v3828_v48 = vld [vmem:[#allocation16 + $0x5c0] sm:$0xff] }
 0xa63   :  { %v5883_v52 = vpack.c.bf16 %v3829_v20, %v3828_v48  ;;  %v3865_v48 = vld [vmem:[#allocation16 + $0x6e8] sm:$0xff] }
 0xa65   :  { %5846 = vmatpush3.bf16.msra.mxu1 %v5845_v32  ;;  %v3831_v32 = vld [vmem:[#allocation16 + $0x5d8] sm:$0xff] }
 0xa66   :  { %5848 = vmatprep.subr.bf16.mxu1 %v5847_v57  ;;  %v5887_v8 = vpack.c.bf16 %v3831_v32, %v3830_v60  ;;  %v3867_v60 = vld [vmem:[#allocation16 + $0x6f8] sm:$0xff] }
 0xa69   :  { %5850 = vmatpush3.bf16.msra.mxu1 %v5849_v40  ;;  %v3833_v40 = vld [vmem:[#allocation16 + $0x5e8] sm:$0xff] }
 0xa6a   :  { %5852 = vmatprep.subr.bf16.mxu1 %v5851_v61  ;;  %v5889_v61 = vpack.c.bf16 %v3815_v63, %v3814_v36  ;;  %v5891_v53 = vpack.c.bf16 %v3833_v40, %v3832_v30  ;;  %v3851_v36 = vld [vmem:[#allocation16 + $0x678] sm:$0xff]  ;;  %v3884_v63 = vld [vmem:[#allocation16 + $0x780] sm:$0xff]  ;;  %v3885_v30 = vld [vmem:[#allocation16 + $0x788] sm:$0xff] }
 0xa6d   :  { %5854 = vmatpush3.bf16.msra.mxu1 %v5853_v14  ;;  %v3835_v14 = vld [vmem:[#allocation16 + $0x5f8] sm:$0xff] }
 0xa6e   :  { %5856 = vmatprep.subr.bf16.mxu1 %v5855_v13  ;;  %v5893_v13 = vpack.c.bf16 %v3817_v31, %v3816_v3  ;;  %v5895_v41 = vpack.c.bf16 %v3835_v14, %v3834_v7  ;;  %v3869_v3 = vld [vmem:[#allocation16 + $0x708] sm:$0xff]  ;;  %v3886_v31 = vld [vmem:[#allocation16 + $0x790] sm:$0xff]  ;;  %v3887_v7 = vld [vmem:[#allocation16 + $0x798] sm:$0xff] }
 0xa71   :  { %5858 = vmatpush3.bf16.msra.mxu1 %v5857_v19  ;;  %v3853_v19 = vld [vmem:[#allocation16 + $0x688] sm:$0xff] }
 0xa72   :  { %5860 = vmatprep.subr.bf16.mxu1 %v5859_v44  ;;  %v5897_v44 = vpack.c.bf16 %v3819_v43, %v3818_v0  ;;  %v5899_v26 = vpack.c.bf16 %v3853_v19, %v3852_v46  ;;  %v3871_v0 = vld [vmem:[#allocation16 + $0x718] sm:$0xff]  ;;  %v3888_v43 = vld [vmem:[#allocation16 + $0x7a0] sm:$0xff]  ;;  %v3889_v46 = vld [vmem:[#allocation16 + $0x7a8] sm:$0xff] }
 0xa75   :  { %5862 = vmatpush3.bf16.msra.mxu1 %v5861_v25  ;;  %v3855_v25 = vld [vmem:[#allocation16 + $0x698] sm:$0xff] }
 0xa76   :  { %5864 = vmatprep.subr.bf16.mxu1 %v5863_v55  ;;  %v5901_v55 = vpack.c.bf16 %v3837_v15, %v3836_v49  ;;  %v5903_v22 = vpack.c.bf16 %v3855_v25, %v3854_v5  ;;  %v3873_v49 = vld [vmem:[#allocation16 + $0x728] sm:$0xff]  ;;  %v3890_v15 = vld [vmem:[#allocation16 + $0x7b0] sm:$0xff]  ;;  %v3891_v5 = vld [vmem:[#allocation16 + $0x7b8] sm:$0xff] }
 0xa79   :  { %5866 = vmatpush3.bf16.msra.mxu1 %v5865_v39  ;;  %v3857_v39 = vld [vmem:[#allocation16 + $0x6a8] sm:$0xff] }
 0xa7a   :  { %5868 = vmatprep.subr.bf16.mxu1 %v5867_v24  ;;  %v5905_v24 = vpack.c.bf16 %v3839_v28, %v3838_v56  ;;  %v5907_v2 = vpack.c.bf16 %v3857_v39, %v3856_v62  ;;  %v3875_v56 = vld [vmem:[#allocation16 + $0x738] sm:$0xff]  ;;  %v3892_v28 = vld [vmem:[#allocation16 + $0x7c0] sm:$0xff]  ;;  %v3893_v62 = vld [vmem:[#allocation16 + $0x7c8] sm:$0xff] }
 0xa7b   :  { %v5947_v39 = vpack.c.bf16 %v3893_v62, %v3892_v28 }
 0xa7c   :  { %4252 = vmatmul.mubr.f32.vlgmr.msra.gmra.mrb[28].mxu1 %v7262_v16  ;;  %v5881_v16 = vpack.c.bf16 %v3811_v34, %v3810_v11  ;;  %v3847_v11 = vld [vmem:[#allocation16 + $0x658] sm:$0xff]  ;;  %v3864_v34 = vld [vmem:[#allocation16 + $0x6e0] sm:$0xff] }
 0xa7d   :  { %5870 = vmatpush3.bf16.msra.mxu1 %v5869_v6  ;;  %4321 = vmatprep.mubr.f32.mxu1 %v7265_v42  ;;  %v3812_v42 = vld [vmem:[#allocation16 + $0x540] sm:$0xff]  ;;  %v3859_v6 = vld [vmem:[#allocation16 + $0x6b8] sm:$0xff] }
 0xa7e   :  { %5872 = vmatprep.subr.bf16.mxu1 %v5871_v9  ;;  %v5885_v57 = vpack.c.bf16 %v3813_v47, %v3812_v42  ;;  %v5909_v9 = vpack.c.bf16 %v3841_v45, %v3840_v1  ;;  %v5911_v23 = vpack.c.bf16 %v3859_v6, %v3858_v4  ;;  %v3849_v42 = vld [vmem:[#allocation16 + $0x668] sm:$0xff]  ;;  %v3866_v47 = vld [vmem:[#allocation16 + $0x6f0] sm:$0xff]  ;;  %v3895_v1 = vld [vmem:[#allocation16 + $0x7d8] sm:$0xff] }
 0xa7f   :  { %v3878_v6 = vld [vmem:[#allocation16 + $0x750] sm:$0xff] }
 0xa81   :  { %5874 = vmatpush3.bf16.msra.mxu1 %v5873_v37  ;;  %v3861_v37 = vld [vmem:[#allocation16 + $0x6c8] sm:$0xff] }
 0xa82   :  { %5876 = vmatprep.subr.bf16.mxu1 %v5875_v18  ;;  %v5915_v18 = vpack.c.bf16 %v3861_v37, %v3860_v29  ;;  %v3880_v37 = vld [vmem:[#allocation16 + $0x760] sm:$0xff] }
 0xa85   :  { %5878 = vmatpush3.bf16.msra.mxu1 %v5877_v33  ;;  %v5919_v33 = vpack.c.bf16 %v3863_v27, %v3862_v21 }
 0xa86   :  { %5880 = vmatprep.subr.bf16.mxu1 %v5879_v17  ;;  %v3846_v17 = vld [vmem:[#allocation16 + $0x650] sm:$0xff] }
 0xa87   :  { %v5921_v20 = vpack.c.bf16 %v3847_v11, %v3846_v17  ;;  %v3882_v17 = vld [vmem:[#allocation16 + $0x770] sm:$0xff]  ;;  %v3883_v11 = vld [vmem:[#allocation16 + $0x778] sm:$0xff] }
 0xa89   :  { %5882 = vmatpush3.bf16.msra.mxu1 %v5881_v16  ;;  %v5923_v16 = vpack.c.bf16 %v3865_v48, %v3864_v34  ;;  %v5961_v34 = vpack.c.bf16 %v3883_v11, %v3882_v17  ;;  %v4510_v48 = vld [vmem:[#allocation18] ss:$0 sm:$0xff] }
 0xa8a   :  { %5884 = vmatprep.subr.bf16.mxu1 %v5883_v52  ;;  %v3848_v52 = vld [vmem:[#allocation16 + $0x660] sm:$0xff] }
 0xa8b   :  { %v5925_v32 = vpack.c.bf16 %v3849_v42, %v3848_v52 }
 0xa8d   :  { %5886 = vmatpush3.bf16.msra.mxu1 %v5885_v57  ;;  %v5927_v57 = vpack.c.bf16 %v3867_v60, %v3866_v47 }
 0xa8e   :  { %5888 = vmatprep.subr.bf16.mxu1 %v5887_v8  ;;  %v3850_v8 = vld [vmem:[#allocation16 + $0x670] sm:$0xff] }
 0xa8f   :  { %v5929_v40 = vpack.c.bf16 %v3851_v36, %v3850_v8 }
 0xa91   :  { %5890 = vmatpush3.bf16.msra.mxu1 %v5889_v61  ;;  %v5931_v61 = vpack.c.bf16 %v3885_v30, %v3884_v63 }
 0xa92   :  { %5892 = vmatprep.subr.bf16.mxu1 %v5891_v53  ;;  %v3868_v53 = vld [vmem:[#allocation16 + $0x700] sm:$0xff] }
 0xa93   :  { %v5933_v14 = vpack.c.bf16 %v3869_v3, %v3868_v53 }
 0xa95   :  { %5894 = vmatpush3.bf16.msra.mxu1 %v5893_v13  ;;  %v5935_v13 = vpack.c.bf16 %v3887_v7, %v3886_v31 }
 0xa96   :  { %5896 = vmatprep.subr.bf16.mxu1 %v5895_v41  ;;  %v3870_v41 = vld [vmem:[#allocation16 + $0x710] sm:$0xff] }
 0xa97   :  { %v5937_v19 = vpack.c.bf16 %v3871_v0, %v3870_v41 }
 0xa99   :  { %5898 = vmatpush3.bf16.msra.mxu1 %v5897_v44  ;;  %v5939_v44 = vpack.c.bf16 %v3889_v46, %v3888_v43 }
 0xa9a   :  { %5900 = vmatprep.subr.bf16.mxu1 %v5899_v26  ;;  %v3872_v26 = vld [vmem:[#allocation16 + $0x720] sm:$0xff] }
 0xa9b   :  { %v5941_v25 = vpack.c.bf16 %v3873_v49, %v3872_v26 }
 0xa9c   :  { %4322 = vmatmul.mubr.f32.vlgmr.msra.gmra.mrb[30].mxu1 %v7269_v35  ;;  %v5913_v35 = vpack.c.bf16 %v3843_v51, %v3842_v12  ;;  %v3897_v12 = vld [vmem:[#allocation16 + $0x7e8] sm:$0xff] }
 0xa9d   :  { %5902 = vmatpush3.bf16.msra.mxu1 %v5901_v55  ;;  %4391 = vmatprep.mubr.f32.mxu1 %v7279_v50  ;;  %v3844_v50 = vld [vmem:[#allocation16 + $0x640] sm:$0xff]  ;;  %v5943_v55 = vpack.c.bf16 %v3891_v5, %v3890_v15 }
 0xa9e   :  { %5904 = vmatprep.subr.bf16.mxu1 %v5903_v22  ;;  %v5917_v58 = vpack.c.bf16 %v3845_v38, %v3844_v50  ;;  %v3874_v22 = vld [vmem:[#allocation16 + $0x730] sm:$0xff]  ;;  %v3899_v38 = vld [vmem:[#allocation16 + $0x7f8] sm:$0xff] }
 0xa9f   :  { %v3898_v50 = vld [vmem:[#allocation16 + $0x7f0] sm:$0xff] }
 0xaa1   :  { %5906 = vmatpush3.bf16.msra.mxu1 %v5905_v24  ;;  %v3877_v24 = vld [vmem:[#allocation16 + $0x748] sm:$0xff] }
 0xaa2   :  { %5908 = vmatprep.subr.bf16.mxu1 %v5907_v2  ;;  %v3894_v2 = vld [vmem:[#allocation16 + $0x7d0] sm:$0xff] }
 0xaa3   :  { %v5951_v4 = vpack.c.bf16 %v3895_v1, %v3894_v2 }
 0xaa5   :  { %5910 = vmatpush3.bf16.msra.mxu1 %v5909_v9  ;;  %v3879_v9 = vld [vmem:[#allocation16 + $0x758] sm:$0xff] }
 0xaa6   :  { %5912 = vmatprep.subr.bf16.mxu1 %v5911_v23  ;;  %v3896_v23 = vld [vmem:[#allocation16 + $0x7e0] sm:$0xff]  ;;  %v5953_v51 = vpack.c.bf16 %v3879_v9, %v3878_v6 }
 0xaa7   :  { %v5955_v29 = vpack.c.bf16 %v3897_v12, %v3896_v23 }
 0xaa9   :  { %5914 = vmatpush3.bf16.msra.mxu1 %v5913_v35  ;;  %v3881_v35 = vld [vmem:[#allocation16 + $0x768] sm:$0xff] }
 0xaaa   :  { %5916 = vmatprep.subr.bf16.mxu1 %v5915_v18 }
 0xaad   :  { %5918 = vmatpush3.bf16.msra.mxu1 %v5917_v58  ;;  %v5957_v58 = vpack.c.bf16 %v3881_v35, %v3880_v37 }
 0xaae   :  { %5920 = vmatprep.subr.bf16.mxu1 %v5919_v33  ;;  %v5959_v33 = vpack.c.bf16 %v3899_v38, %v3898_v50 }
 0xab1   :  { %5922 = vmatpush3.bf16.msra.mxu1 %v5921_v20 }
 0xab2   :  { %5924 = vmatprep.subr.bf16.mxu1 %v5923_v16 }
 0xab5   :  { %5926 = vmatpush3.bf16.msra.mxu1 %v5925_v32 }
 0xab6   :  { %5928 = vmatprep.subr.bf16.mxu1 %v5927_v57 }
 0xab9   :  { %5930 = vmatpush3.bf16.msra.mxu1 %v5929_v40 }
 0xaba   :  { %5932 = vmatprep.subr.bf16.mxu1 %v5931_v61 }
 0xabc   :  { %4392 = vmatmul.mubr.f32.vlgmr.msra.gmra.mrb[32].mxu1 %v7282_v10  ;;  %v5945_v10 = vpack.c.bf16 %v3875_v56, %v3874_v22 }
 0xabd   :  { %5934 = vmatpush3.bf16.msra.mxu1 %v5933_v14  ;;  %4461 = vmatprep.mubr.f32.mxu1 %v7285_v54  ;;  %v3876_v54 = vld [vmem:[#allocation16 + $0x740] sm:$0xff] }
 0xabe   :  { %5936 = vmatprep.subr.bf16.mxu1 %v5935_v13  ;;  %v5949_v45 = vpack.c.bf16 %v3877_v24, %v3876_v54 }
 0xac1   :  { %5938 = vmatpush3.bf16.msra.mxu1 %v5937_v19 }
 0xac2   :  { %5940 = vmatprep.subr.bf16.mxu1 %v5939_v44 }
 0xac5   :  { %5942 = vmatpush3.bf16.msra.mxu1 %v5941_v25 }
 0xac6   :  { %5944 = vmatprep.subr.bf16.mxu1 %v5943_v55 }
 0xac9   :  { %5946 = vmatpush3.bf16.msra.mxu1 %v5945_v10 }
 0xaca   :  { %5948 = vmatprep.subr.bf16.mxu1 %v5947_v39 }
 0xacd   :  { %5950 = vmatpush3.bf16.msra.mxu1 %v5949_v45 }
 0xace   :  { %5952 = vmatprep.subr.bf16.mxu1 %v5951_v4 }
 0xacf   :  { %v4683_v18 = vpop.f32.mrb[20].mxu1 }
 0xad0   :  { %v4684_v21 = vpop.f32.mrb[21].mxu1 }
 0xad1   :  { %v4685_v27 = vadd.f32 %v4684_v21, %v4683_v18  ;;  %5954 = vmatpush3.bf16.msra.mxu1 %v5953_v51 }
 0xad2   :  { %5956 = vmatprep.subr.bf16.mxu1 %v5955_v29 }
 0xad3   :  { %v3974_v52 = vadd.f32 %v4685_v27, %v4510_v48 }
 0xad5   :  { %5958 = vmatpush3.bf16.msra.mxu1 %v5957_v58 }
 0xad6   :  { %5960 = vmatprep.subr.bf16.mxu1 %v5959_v33 }
 0xad9   :  { %5962 = vmatpush3.bf16.msra.mxu1 %v5961_v34 }
 0xadc   :  { %4462 = vmatmul.mubr.f32.vlgmr.msra.gmra.mrb[34].mxu1 %v7288_v59 }
 0xaef   :  { %v4718_v20 = vpop.f32.mrb[22].mxu1 }
 0xaf0   :  { %v4719_v16 = vpop.f32.mrb[23].mxu1 }
 0xaf1   :  { %v4720_v42 = vadd.f32 %v4719_v16, %v4718_v20 }
 0xaf3   :  { %v4044_v47 = vadd.f32 %v4720_v42, %v3974_v52 }
 0xb0f   :  { %v4753_v60 = vpop.f32.mrb[24].mxu1 }
 0xb10   :  { %v4754_v32 = vpop.f32.mrb[25].mxu1 }
 0xb11   :  { %v4755_v57 = vadd.f32 %v4754_v32, %v4753_v60 }
 0xb13   :  { %v4114_v8 = vadd.f32 %v4755_v57, %v4044_v47 }
 0xb2f   :  { %v4788_v36 = vpop.f32.mrb[26].mxu1 }
 0xb30   :  { %v4789_v63 = vpop.f32.mrb[27].mxu1 }
 0xb31   :  { %v4790_v30 = vadd.f32 %v4789_v63, %v4788_v36 }
 0xb33   :  { %v4184_v40 = vadd.f32 %v4790_v30, %v4114_v8 }
 0xb4f   :  { %v4823_v61 = vpop.f32.mrb[28].mxu1 }
 0xb50   :  { %v4824_v53 = vpop.f32.mrb[29].mxu1 }
 0xb51   :  { %v4825_v3 = vadd.f32 %v4824_v53, %v4823_v61 }
 0xb53   :  { %v4254_v31 = vadd.f32 %v4825_v3, %v4184_v40 }
 0xb6f   :  { %v4858_v7 = vpop.f32.mrb[30].mxu1 }
 0xb70   :  { %v4859_v59 = vpop.f32.mrb[31].mxu1 }
 0xb71   :  { %v4860_v14 = vadd.f32 %v4859_v59, %v4858_v7 }
 0xb73   :  { %v4324_v13 = vadd.f32 %v4860_v14, %v4254_v31 }
 0xb8f   :  { %v4893_v41 = vpop.f32.mrb[32].mxu1 }
 0xb90   :  { %v4894_v0 = vpop.f32.mrb[33].mxu1 }
 0xb91   :  { %v4895_v43 = vadd.f32 %v4894_v0, %v4893_v41 }
 0xb93   :  { %v4394_v46 = vadd.f32 %v4895_v43, %v4324_v13 }
 0xbaf   :  { %v4928_v19 = vpop.f32.mrb[34].mxu1 }
 0xbb0   :  { %v4929_v44 = vpop.f32.mrb[35].mxu1 }
 0xbb1   :  { %v4930_v26 = vadd.f32 %v4929_v44, %v4928_v19 }
 0xbb3   :  { %v4464_v49 = vadd.f32 %v4930_v26, %v4394_v46 }
 0xbb5   :  { %v4467_v15 = vmax.f32 %v4464_v49, 0.0 }
 0xbb7   :  { %4468 = vst [vmem:[#allocation19] sm:$0x3] %v4467_v15 }
 0xbb8   :  { %6338 = shalt.err (!%p6335_p6)
}
 0xbb9   :  { %s6339_s14 = scalar_lea.hbm %s7326_s11, 32 }
 0xbba   :  { %p6340_p7 = scmp.ne.s32.totalorder %s7326_s11, %s6339_s14  ;;  %p6343_p8 = scmp.lt.u32.totalorder %s6339_s14, %s7326_s11 }
 0xbbc   :  { %p6345_p9 = pnand %p6343_p8, %p6340_p7 }
 0xbbe   :  { %6348 = shalt.err (!%p6345_p9)
}
 0xbbf   :  { %4478 = dma.vmem_to_hbm [thread:$0]  %s4476_s1, 32, %s7326_s11, [#allocation6]  }
 0xbc0   :  { %6359 = dma.done.wait [#allocation6], 32  }
 0xbc1   :  { %6360 = vsyncadd [#allocation6], 4294967264 }
 0xbc2   :  { %4482 = vsyncpa [#allocation5], 1 }
 0xbc3   :  { %4483 = vsyncpa [#allocation8], 1 }
 0xbc4   :  { %4484 = vsyncpa [#allocation11], 1 }
 0xbc5   :  { %4485 = vsyncpa [#allocation14], 1 }
 0xbc6   :  { %4486 = vsyncpa [#allocation17], 1 }
 0xbc7   :  { %4487 = vsyncpa [#allocation6], 1 }

</bundles_post_ra>
